<compile_context>
chip_gen: v7x
topology: tpu7x:2x2x1
jax: 0.10.0
libtpu: 0.0.40
codegen_flags: <defaults>
</compile_context>

<pallas_src>
import functools

import jax
import jax.numpy as jnp
from jax.experimental import pallas as pl
from jax.experimental.pallas import tpu as pltpu


def _round_up(x, m):
    return ((x + m - 1) // m) * m


# ----------------------------------------------------------------------------
# Generic tiled linear:  (M, K) @ (K, N) + (1, N)  with f32 accumulation.
# Used for the encoder patch embedding, the hoisted attention encoder projection,
# and the batched vocab projection.
# ----------------------------------------------------------------------------
def _matmul_kernel(x_ref, w_ref, b_ref, o_ref, acc_ref):
    k = pl.program_id(2)

    @pl.when(k == 0)
    def _():
        acc_ref[...] = jnp.zeros_like(acc_ref)

    acc_ref[...] += jnp.dot(x_ref[...], w_ref[...],
                            preferred_element_type=jnp.float32)

    @pl.when(k == pl.num_programs(2) - 1)
    def _():
        o_ref[...] = (acc_ref[...] + b_ref[...]).astype(o_ref.dtype)


def pallas_linear(x, w, b, *, tm=256, tn=256, tk=512, out_dtype=jnp.float32,
                  vmem_limit=64 * 1024 * 1024):
    """x: (M, K), w: (K, N), b: (1, N) -> (M, N) in out_dtype (f32 accumulate)."""
    M, K = x.shape
    N = w.shape[1]
    tm = min(tm, _round_up(M, 8))
    tn = min(tn, _round_up(N, 128))
    tk = min(tk, _round_up(K, 128))
    Mp, Kp, Np = _round_up(M, tm), _round_up(K, tk), _round_up(N, tn)

    # Skip the pad / slice HBM copies when shapes already divide the tiles.
    xp = x if (Mp == M and Kp == K) else jnp.pad(x, ((0, Mp - M), (0, Kp - K)))
    wp = w if (Kp == K and Np == N) else jnp.pad(w, ((0, Kp - K), (0, Np - N)))
    bf = b.astype(jnp.float32)
    bp = bf if Np == N else jnp.pad(bf, ((0, 0), (0, Np - N)))

    out = pl.pallas_call(
        _matmul_kernel,
        out_shape=jax.ShapeDtypeStruct((Mp, Np), out_dtype),
        grid_spec=pltpu.PrefetchScalarGridSpec(
            num_scalar_prefetch=0,
            grid=(Mp // tm, Np // tn, Kp // tk),
            in_specs=[
                pl.BlockSpec((tm, tk), lambda i, j, k: (i, k)),
                pl.BlockSpec((tk, tn), lambda i, j, k: (k, j)),
                pl.BlockSpec((1, tn), lambda i, j, k: (0, j)),
            ],
            out_specs=pl.BlockSpec((tm, tn), lambda i, j, k: (i, j)),
            scratch_shapes=[pltpu.VMEM((tm, tn), jnp.float32)],
        ),
        compiler_params=pltpu.CompilerParams(
            dimension_semantics=("parallel", "parallel", "arbitrary"),
            vmem_limit_bytes=vmem_limit),
    )(xp, wp, bp)
    if Mp == M and Np == N:
        return out
    return out[:M, :N]


# ----------------------------------------------------------------------------
# Encoder: im2col (plain-JAX glue) + Pallas conv-as-matmul (bf16 MXU operands).
# ----------------------------------------------------------------------------
def im2col_nonoverlap(images, k):
    """NCHW images, non-overlapping k x k patches (stride == k)."""
    B, C, H, W = images.shape
    oh, ow = H // k, W // k
    x = images.reshape(B, C, oh, k, ow, k)
    x = x.transpose(0, 2, 4, 1, 3, 5)            # (B, oh, ow, C, k, k)
    return x.reshape(B, oh * ow, C * k * k)       # matches conv weight (O, C, k, k).reshape(O, -1)


def encoder_forward(images, params, patch):
    B = images.shape[0]
    patches = im2col_nonoverlap(images, patch)                     # (B, P, C*k*k)
    P, K = patches.shape[1], patches.shape[2]
    flat = patches.reshape(B * P, K).astype(jnp.bfloat16)
    feat = pallas_linear(flat, params["enc_w"].astype(jnp.bfloat16),
                         params["enc_b"])                          # (B*P, Enc) f32
    return feat.reshape(B, P, -1)                                  # (B, num_pixels, encoder_dim)


# ----------------------------------------------------------------------------
# Decoder kernel: whole attention+LSTM recurrence for one batch block.
# grid = (batch_blocks,); the time loop runs inside the kernel (lax.fori_loop).
# ----------------------------------------------------------------------------
def _decoder_seq_kernel(
    feat_ref,      # (BB, P, Enc) f32
    encp_ref,      # (BB, P, A)   f32  (hoisted encoder projection)
    emb_ref,       # (S, BB, E)   f32  (time-major)
    w_init_ref,    # (Enc, 2H)    bf16 [init_h | init_c]
    b_init_ref,    # (1, 2H)      f32
    w_hf_ref,      # (H, A+4H)    bf16 [decoder_proj | whh]
    bd_ref,        # (1, A)       f32
    wa_ref,        # (1, A)       f32  (attention_proj weight row)
    ba_ref,        # (1, 1)       f32
    wih_e_ref,     # (E, 4H)      bf16
    wih_c_ref,     # (Enc, 4H)    bf16
    b_lstm_ref,    # (1, 4H)      f32  (bih + bhh)
    hseq_ref,      # out (S, BB, H)    bf16
    alphas_ref,    # out (S, BB, Ppad) f32 (lane-dense, pixel axis padded)
):
    feat = feat_ref[...]                                   # (BB, P, Enc) f32
    encp = encp_ref[...]                                   # (BB, P, A)   f32
    BB, P, _ = feat.shape
    S = emb_ref.shape[0]
    H = w_hf_ref.shape[0]
    A = bd_ref.shape[1]
    Ppad = alphas_ref.shape[2]

    # inithidden(): one fused MXU matmul gives [h0 | c0].
    mean_enc = jnp.mean(feat, axis=1)                      # (BB, Enc) f32
    hc0 = jnp.dot(mean_enc.astype(jnp.bfloat16), w_init_ref[...],
                  preferred_element_type=jnp.float32) + b_init_ref[...]
    h0, c0 = hc0[:, :H], hc0[:, H:]

    # Hoist loop-invariant loads / broadcasts (JAX does not CSE broadcast_in_dim).
    w_hf = w_hf_ref[...]
    wih_e = wih_e_ref[...]
    wih_c = wih_c_ref[...]
    bd = bd_ref[...]
    ba = ba_ref[...]
    b_lstm = b_lstm_ref[...]
    wa_b = wa_ref[...][None, :, :]                         # (1, 1, A)
    pad_cols = Ppad - P
    zero_pad = jnp.zeros((BB, pad_cols), jnp.float32) if pad_cols else None

    def step(s, carry):
        h, c = carry                                       # (BB, H) f32 each

        # Fused h @ [decoder_proj | whh]: one MXU push of h per step (bf16 operands).
        hp = jnp.dot(h.astype(jnp.bfloat16), w_hf, preferred_element_type=jnp.float32)
        dec_proj = hp[:, :A] + bd                          # (BB, A)
        h_gates = hp[:, A:]                                # (BB, 4H)

        # Attention (encoder projection hoisted); attention_proj has output width 1
        # -> VPU multiply + lane reduce instead of an MXU matmul.
        att = jnp.maximum(encp + dec_proj[:, None, :], 0.0)           # ReLU (BB, P, A)
        scores = jnp.sum(att * wa_b, axis=-1) + ba                    # (BB, P)
        scores = scores - jnp.max(scores, axis=1, keepdims=True)
        exps = jnp.exp(scores)
        alpha = exps * pl.reciprocal(jnp.sum(exps, axis=1, keepdims=True), approx=True)
        context = jnp.sum(feat * alpha[:, :, None], axis=1)           # (BB, Enc) f32

        # LSTMCell (PyTorch gate order i, f, g, o); input concat eliminated.
        emb_s = emb_ref[s].astype(jnp.bfloat16)                       # (BB, E)
        gates = (jnp.dot(emb_s, wih_e, preferred_element_type=jnp.float32)
                 + jnp.dot(context.astype(jnp.bfloat16), wih_c,
                           preferred_element_type=jnp.float32)
                 + h_gates + b_lstm)                                   # (BB, 4H)
        i_g = jax.nn.sigmoid(gates[:, 0 * H:1 * H])
        f_g = jax.nn.sigmoid(gates[:, 1 * H:2 * H])
        g_g = jnp.tanh(gates[:, 2 * H:3 * H])
        o_g = jax.nn.sigmoid(gates[:, 3 * H:4 * H])
        c_new = f_g * c + i_g * g_g
        h_new = o_g * jnp.tanh(c_new)

        # Stores along the untiled leading (time) axis of VMEM-resident output blocks.
        hseq_ref[s] = h_new.astype(hseq_ref.dtype)
        a_out = alpha if pad_cols == 0 else jnp.concatenate([alpha, zero_pad], axis=1)
        alphas_ref[s] = a_out
        return h_new, c_new

    jax.lax.fori_loop(0, S, step, (h0, c0))


def decoder_forward(features, embeds_t, params, bb):
    """features: (BP, P, Enc) f32, embeds_t: (S, BP, E) f32 time-major. BP % bb == 0."""
    BP, P, ENC = features.shape
    S, E = embeds_t.shape[0], embeds_t.shape[2]
    H = params["whh"].shape[0]
    A = params["wd"].shape[1]
    V = params["wf"].shape[1]
    Ppad = _round_up(P, 128)                     # lane-dense alphas output
    BB = bb
    assert BP % BB == 0

    # Hoisted time-invariant attention encoder projection: features @ We + be.
    enc_proj = pallas_linear(
        features.reshape(BP * P, ENC).astype(jnp.bfloat16),
        params["we"].astype(jnp.bfloat16),
        params["be"],
    ).reshape(BP, P, A)

    # Fused bf16 weights: [init_h | init_c], [decoder_proj | whh]; summed LSTM biases.
    w_init = jnp.concatenate([params["winh"], params["winc"]], axis=1).astype(jnp.bfloat16)
    b_init = jnp.concatenate([params["binh"], params["binc"]], axis=1)
    w_hf = jnp.concatenate([params["wd"], params["whh"]], axis=1).astype(jnp.bfloat16)
    wih_e = params["wih_e"].astype(jnp.bfloat16)
    wih_c = params["wih_c"].astype(jnp.bfloat16)
    b_lstm = params["bih"] + params["bhh"]

    full_blk = lambda a: pl.BlockSpec(a.shape, lambda b: (0,) * a.ndim)
    # TODO(synk): on v7x (64 MiB VMEM) the constant-index weight blocks could be
    #             single-buffered (pipeline_mode=pl.Buffered(1)) and features/enc_proj
    #             kept bf16-resident to fit a larger BB; defaults kept for portability.
    grid_spec = pltpu.PrefetchScalarGridSpec(
        num_scalar_prefetch=0,
        grid=(BP // BB,),
        in_specs=[
            pl.BlockSpec((BB, P, ENC), lambda b: (b, 0, 0)),   # features (resident)
            pl.BlockSpec((BB, P, A), lambda b: (b, 0, 0)),     # enc_proj (resident)
            pl.BlockSpec((S, BB, E), lambda b: (0, b, 0)),     # embeds, time-major
            full_blk(w_init), full_blk(b_init),
            full_blk(w_hf), full_blk(params["bd"]),
            full_blk(params["wa"]), full_blk(params["ba"]),
            full_blk(wih_e), full_blk(wih_c), full_blk(b_lstm),
        ],
        out_specs=[
            pl.BlockSpec((S, BB, H), lambda b: (0, b, 0)),     # hidden sequence (bf16)
            pl.BlockSpec((S, BB, Ppad), lambda b: (0, b, 0)),  # attention weights
        ],
    )

    hseq, alphas = pl.pallas_call(
        _decoder_seq_kernel,
        out_shape=(
            jax.ShapeDtypeStruct((S, BP, H), jnp.bfloat16),
            jax.ShapeDtypeStruct((S, BP, Ppad), jnp.float32),
        ),
        grid_spec=grid_spec,
        compiler_params=pltpu.CompilerParams(
            dimension_semantics=("parallel",),
            vmem_limit_bytes=64 * 1024 * 1024),
    )(
        features, enc_proj, embeds_t,
        w_init, b_init, w_hf, params["bd"], params["wa"], params["ba"],
        wih_e, wih_c, b_lstm,
    )

    # Vocab projection pulled out of the recurrence: one batched bf16 matmul over all
    # (batch*seq) hidden states. Transpose the *small* hseq (not the big preds).
    hseq_bs = jnp.transpose(hseq, (1, 0, 2)).reshape(BP * S, H)
    preds = pallas_linear(hseq_bs, params["wf"].astype(jnp.bfloat16),
                          params["bf"]).reshape(BP, S, V)
    alphas_bs = jnp.transpose(alphas, (1, 0, 2))[:, :, :P]
    return preds, alphas_bs


# ----------------------------------------------------------------------------
# fullmodel wrapper + deterministic parameter init
# ----------------------------------------------------------------------------
def init_params(key, *, embed_size, decoder_dim, encoder_dim, attention_dim,
                vocab_size, in_ch, patch):
    ks = jax.random.split(key, 20)
    g = lambda k, shp: (0.05 * jax.random.normal(k, shp)).astype(jnp.float32)
    Kconv = in_ch * patch * patch
    H = decoder_dim
    return {
        # encoder stand-in (Linear weights stored pre-transposed as (in, out))
        "enc_w": g(ks[0], (Kconv, encoder_dim)),
        "enc_b": g(ks[1], (1, encoder_dim)),
        # attention
        "we": g(ks[2], (encoder_dim, attention_dim)),
        "be": g(ks[3], (1, attention_dim)),
        "wd": g(ks[4], (decoder_dim, attention_dim)),
        "bd": g(ks[5], (1, attention_dim)),
        "wa": g(ks[6], (1, attention_dim)),      # attention_proj weight as a row
        "ba": g(ks[7], (1, 1)),
        # embedding
        "emb_table": g(ks[8], (vocab_size, embed_size)),
        # init_h / init_c
        "winh": g(ks[9], (encoder_dim, H)),
        "binh": g(ks[10], (1, H)),
        "winc": g(ks[11], (encoder_dim, H)),
        "binc": g(ks[12], (1, H)),
        # LSTMCell (input weight split so no concat is needed in the kernel)
        "wih_e": g(ks[13], (embed_size, 4 * H)),
        "wih_c": g(ks[14], (encoder_dim, 4 * H)),
        "whh": g(ks[15], (H, 4 * H)),
        "bih": g(ks[16], (1, 4 * H)),
        "bhh": g(ks[17], (1, 4 * H)),
        # fcn
        "wf": g(ks[18], (H, vocab_size)),
        "bf": g(ks[19], (1, vocab_size)),
    }


@functools.partial(jax.jit, static_argnames=("patch", "bb"))
def fullmodel_forward(images, captions, params, patch, bb=64):
    B = images.shape[0]
    features = encoder_forward(images, params, patch)          # (B, num_pixels, encoder_dim)

    # Batch block: tunable, 8-aligned; sized per generation VMEM budget (v7x < v6e/v5e).
    BB = _round_up(min(bb, _round_up(B, 8)), 8)
    BP = _round_up(B, BB)
    features_p = jnp.pad(features, ((0, BP - B), (0, 0), (0, 0)))

    # Embedding lookup (gather glue, outside Pallas), built time-major (S, B, E).
    embeds_t = jnp.take(params["emb_table"], captions.T, axis=0)   # (S, B, E)
    embeds_p = jnp.pad(embeds_t, ((0, 0), (0, BP - B), (0, 0)))

    preds, alphas = decoder_forward(features_p, embeds_p, params, BB)
    return preds[:B], alphas[:B]


if __name__ == "__main__":
    B, C, HW = 2, 3, 32
    PATCH = 8                       # -> num_pixels = (32/8)^2 = 16
    EMBED, DEC, ENC, ATT = 32, 32, 32, 32
    SEQ = 8
    VOCAB = 128

    key = jax.random.PRNGKey(0)
    k_img, k_cap, k_par = jax.random.split(key, 3)
    images = jax.random.normal(k_img, (B, C, HW, HW), dtype=jnp.float32)   # NCHW, like PyTorch
    captions = jax.random.randint(k_cap, (B, SEQ), 0, VOCAB, dtype=jnp.int32)
    params = init_params(
        k_par, embed_size=EMBED, decoder_dim=DEC, encoder_dim=ENC,
        attention_dim=ATT, vocab_size=VOCAB, in_ch=C, patch=PATCH,
    )

    preds, alphas = fullmodel_forward(images, captions, params, PATCH)
    jax.block_until_ready((preds, alphas))
    assert preds.shape == (B, SEQ, VOCAB) and alphas.shape == (B, SEQ, (HW // PATCH) ** 2)
    assert bool(jnp.all(jnp.isfinite(preds))) and bool(jnp.all(jnp.isfinite(alphas)))
    print("KERNEL_OK")
</pallas_src>

<mosaic_0001>
module attributes {stable_mosaic.version = 11 : i64} {
  func.func @_matmul_kernel(%arg0: i32, %arg1: i32, %arg2: i32, %arg3: memref<32x256xbf16, #tpu.memory_space<vmem>>, %arg4: memref<256x128xbf16, #tpu.memory_space<vmem>>, %arg5: memref<1x128xf32, #tpu.memory_space<vmem>>, %arg6: memref<32x128xf32, #tpu.memory_space<vmem>>, %arg7: memref<32x128xf32, #tpu.memory_space<vmem>>) attributes {dimension_semantics = [#tpu.dimension_semantics<parallel>, #tpu.dimension_semantics<parallel>, #tpu.dimension_semantics<arbitrary>], iteration_bounds = array<i64: 1, 1, 1>, scalar_prefetch = 0 : i64, scratch_operands = 1 : i64, tpu.core_type = #tpu.core_type<tc>, window_params = [{transform_indices = @transform_0, window_bounds = array<i64: 32, 256>}, {transform_indices = @transform_1, window_bounds = array<i64: 256, 128>}, {transform_indices = @transform_2, window_bounds = array<i64: 1, 128>}, {transform_indices = @transform_3, window_bounds = array<i64: 32, 128>}]} {
    %c0_i32 = arith.constant 0 : i32
    %0 = arith.cmpi eq, %arg2, %c0_i32 : i32
    %1 = arith.extui %0 : i1 to i32
    %c0_i32_0 = arith.constant 0 : i32
    %2 = arith.cmpi ne, %1, %c0_i32_0 : i32
    scf.if %2 {
      %cst_10 = arith.constant 0.000000e+00 : f32
      %12 = vector.broadcast %cst_10 : f32 to vector<32x128xf32>
      %c0_11 = arith.constant 0 : index
      %c0_12 = arith.constant 0 : index
      %13 = vector.load %arg7[%c0_11, %c0_12] : memref<32x128xf32, #tpu.memory_space<vmem>>, vector<32x128xf32>
      tpu.vector_store %arg7[%c0_11, %c0_12], %12 {strides = array<i32>} : memref<32x128xf32, #tpu.memory_space<vmem>>, vector<32x128xf32>,
    } else {
    }
    %c0 = arith.constant 0 : index
    %c0_1 = arith.constant 0 : index
    %3 = vector.load %arg7[%c0, %c0_1] : memref<32x128xf32, #tpu.memory_space<vmem>>, vector<32x128xf32>
    %c0_2 = arith.constant 0 : index
    %c0_3 = arith.constant 0 : index
    %4 = vector.load %arg3[%c0_2, %c0_3] : memref<32x256xbf16, #tpu.memory_space<vmem>>, vector<32x256xbf16>
    %c0_4 = arith.constant 0 : index
    %c0_5 = arith.constant 0 : index
    %5 = vector.load %arg4[%c0_4, %c0_5] : memref<256x128xbf16, #tpu.memory_space<vmem>>, vector<256x128xbf16>
    %cst = arith.constant dense<0.000000e+00> : vector<32x128xf32>
    %6 = tpu.matmul %4, %5, %cst {dimension_numbers = #tpu.dot_dimension_numbers<[1], [0], [0], [1], [0, 0, 1, 1], [], []>} : vector<32x256xbf16>, vector<256x128xbf16>, vector<32x128xf32> -> vector<32x128xf32>
    %7 = arith.addf %3, %6 : vector<32x128xf32>
    %c0_6 = arith.constant 0 : index
    %c0_7 = arith.constant 0 : index
    %8 = vector.load %arg7[%c0_6, %c0_7] : memref<32x128xf32, #tpu.memory_space<vmem>>, vector<32x128xf32>
    tpu.vector_store %arg7[%c0_6, %c0_7], %7 {strides = array<i32>} : memref<32x128xf32, #tpu.memory_space<vmem>>, vector<32x128xf32>,
    %c0_i32_8 = arith.constant 0 : i32
    %9 = arith.cmpi eq, %arg2, %c0_i32_8 : i32
    %10 = arith.extui %9 : i1 to i32
    %c0_i32_9 = arith.constant 0 : i32
    %11 = arith.cmpi ne, %10, %c0_i32_9 : i32
    scf.if %11 {
      %c0_10 = arith.constant 0 : index
      %c0_11 = arith.constant 0 : index
      %12 = vector.load %arg7[%c0_10, %c0_11] : memref<32x128xf32, #tpu.memory_space<vmem>>, vector<32x128xf32>
      %c0_12 = arith.constant 0 : index
      %c0_13 = arith.constant 0 : index
      %13 = vector.load %arg5[%c0_12, %c0_13] : memref<1x128xf32, #tpu.memory_space<vmem>>, vector<1x128xf32>
      %14 = vector.broadcast %13 : vector<1x128xf32> to vector<32x128xf32>
      %15 = arith.addf %12, %14 : vector<32x128xf32>
      %c0_14 = arith.constant 0 : index
      %c0_15 = arith.constant 0 : index
      %16 = vector.load %arg6[%c0_14, %c0_15] : memref<32x128xf32, #tpu.memory_space<vmem>>, vector<32x128xf32>
      tpu.vector_store %arg6[%c0_14, %c0_15], %15 {strides = array<i32>} : memref<32x128xf32, #tpu.memory_space<vmem>>, vector<32x128xf32>,
    } else {
    }
    return
  }
  func.func @transform_0(%arg0: i32, %arg1: i32, %arg2: i32) -> (i32, i32) {
    %c0_i32 = arith.constant 0 : i32
    return %arg0, %arg2 : i32, i32
  }
  func.func @transform_1(%arg0: i32, %arg1: i32, %arg2: i32) -> (i32, i32) {
    %c0_i32 = arith.constant 0 : i32
    return %arg2, %arg1 : i32, i32
  }
  func.func @transform_2(%arg0: i32, %arg1: i32, %arg2: i32) -> (i32, i32) {
    %c0_i32 = arith.constant 0 : i32
    %c0_i32_0 = arith.constant 0 : i32
    return %c0_i32, %arg1 : i32, i32
  }
  func.func @transform_3(%arg0: i32, %arg1: i32, %arg2: i32) -> (i32, i32) {
    %c0_i32 = arith.constant 0 : i32
    return %arg0, %arg1 : i32, i32
  }
}

module attributes {stable_mosaic.version = 11 : i64} {
  func.func @_matmul_kernel(%arg0: i32, %arg1: i32, %arg2: i32, %arg3: memref<128x128xbf16, #tpu.memory_space<vmem>>, %arg4: memref<128x128xbf16, #tpu.memory_space<vmem>>, %arg5: memref<1x128xf32, #tpu.memory_space<vmem>>, %arg6: memref<128x128xf32, #tpu.memory_space<vmem>>, %arg7: memref<128x128xf32, #tpu.memory_space<vmem>>) attributes {dimension_semantics = [#tpu.dimension_semantics<parallel>, #tpu.dimension_semantics<parallel>, #tpu.dimension_semantics<arbitrary>], iteration_bounds = array<i64: 1, 1, 1>, scalar_prefetch = 0 : i64, scratch_operands = 1 : i64, tpu.core_type = #tpu.core_type<tc>, window_params = [{transform_indices = @transform_0, window_bounds = array<i64: 128, 128>}, {transform_indices = @transform_1, window_bounds = array<i64: 128, 128>}, {transform_indices = @transform_2, window_bounds = array<i64: 1, 128>}, {transform_indices = @transform_3, window_bounds = array<i64: 128, 128>}]} {
    %c0_i32 = arith.constant 0 : i32
    %0 = arith.cmpi eq, %arg2, %c0_i32 : i32
    %1 = arith.extui %0 : i1 to i32
    %c0_i32_0 = arith.constant 0 : i32
    %2 = arith.cmpi ne, %1, %c0_i32_0 : i32
    scf.if %2 {
      %cst_10 = arith.constant 0.000000e+00 : f32
      %12 = vector.broadcast %cst_10 : f32 to vector<128x128xf32>
      %c0_11 = arith.constant 0 : index
      %c0_12 = arith.constant 0 : index
      %13 = vector.load %arg7[%c0_11, %c0_12] : memref<128x128xf32, #tpu.memory_space<vmem>>, vector<128x128xf32>
      tpu.vector_store %arg7[%c0_11, %c0_12], %12 {strides = array<i32>} : memref<128x128xf32, #tpu.memory_space<vmem>>, vector<128x128xf32>,
    } else {
    }
    %c0 = arith.constant 0 : index
    %c0_1 = arith.constant 0 : index
    %3 = vector.load %arg7[%c0, %c0_1] : memref<128x128xf32, #tpu.memory_space<vmem>>, vector<128x128xf32>
    %c0_2 = arith.constant 0 : index
    %c0_3 = arith.constant 0 : index
    %4 = vector.load %arg3[%c0_2, %c0_3] : memref<128x128xbf16, #tpu.memory_space<vmem>>, vector<128x128xbf16>
    %c0_4 = arith.constant 0 : index
    %c0_5 = arith.constant 0 : index
    %5 = vector.load %arg4[%c0_4, %c0_5] : memref<128x128xbf16, #tpu.memory_space<vmem>>, vector<128x128xbf16>
    %cst = arith.constant dense<0.000000e+00> : vector<128x128xf32>
    %6 = tpu.matmul %4, %5, %cst {dimension_numbers = #tpu.dot_dimension_numbers<[1], [0], [0], [1], [0, 0, 1, 1], [], []>} : vector<128x128xbf16>, vector<128x128xbf16>, vector<128x128xf32> -> vector<128x128xf32>
    %7 = arith.addf %3, %6 : vector<128x128xf32>
    %c0_6 = arith.constant 0 : index
    %c0_7 = arith.constant 0 : index
    %8 = vector.load %arg7[%c0_6, %c0_7] : memref<128x128xf32, #tpu.memory_space<vmem>>, vector<128x128xf32>
    tpu.vector_store %arg7[%c0_6, %c0_7], %7 {strides = array<i32>} : memref<128x128xf32, #tpu.memory_space<vmem>>, vector<128x128xf32>,
    %c0_i32_8 = arith.constant 0 : i32
    %9 = arith.cmpi eq, %arg2, %c0_i32_8 : i32
    %10 = arith.extui %9 : i1 to i32
    %c0_i32_9 = arith.constant 0 : i32
    %11 = arith.cmpi ne, %10, %c0_i32_9 : i32
    scf.if %11 {
      %c0_10 = arith.constant 0 : index
      %c0_11 = arith.constant 0 : index
      %12 = vector.load %arg7[%c0_10, %c0_11] : memref<128x128xf32, #tpu.memory_space<vmem>>, vector<128x128xf32>
      %c0_12 = arith.constant 0 : index
      %c0_13 = arith.constant 0 : index
      %13 = vector.load %arg5[%c0_12, %c0_13] : memref<1x128xf32, #tpu.memory_space<vmem>>, vector<1x128xf32>
      %14 = vector.broadcast %13 : vector<1x128xf32> to vector<128x128xf32>
      %15 = arith.addf %12, %14 : vector<128x128xf32>
      %c0_14 = arith.constant 0 : index
      %c0_15 = arith.constant 0 : index
      %16 = vector.load %arg6[%c0_14, %c0_15] : memref<128x128xf32, #tpu.memory_space<vmem>>, vector<128x128xf32>
      tpu.vector_store %arg6[%c0_14, %c0_15], %15 {strides = array<i32>} : memref<128x128xf32, #tpu.memory_space<vmem>>, vector<128x128xf32>,
    } else {
    }
    return
  }
  func.func @transform_0(%arg0: i32, %arg1: i32, %arg2: i32) -> (i32, i32) {
    %c0_i32 = arith.constant 0 : i32
    return %arg0, %arg2 : i32, i32
  }
  func.func @transform_1(%arg0: i32, %arg1: i32, %arg2: i32) -> (i32, i32) {
    %c0_i32 = arith.constant 0 : i32
    return %arg2, %arg1 : i32, i32
  }
  func.func @transform_2(%arg0: i32, %arg1: i32, %arg2: i32) -> (i32, i32) {
    %c0_i32 = arith.constant 0 : i32
    %c0_i32_0 = arith.constant 0 : i32
    return %c0_i32, %arg1 : i32, i32
  }
  func.func @transform_3(%arg0: i32, %arg1: i32, %arg2: i32) -> (i32, i32) {
    %c0_i32 = arith.constant 0 : i32
    return %arg0, %arg1 : i32, i32
  }
}

module attributes {stable_mosaic.version = 11 : i64} {
  func.func @_decoder_seq_kernel(%arg0: i32, %arg1: memref<8x16x32xf32, #tpu.memory_space<vmem>>, %arg2: memref<8x16x32xf32, #tpu.memory_space<vmem>>, %arg3: memref<8x8x32xf32, #tpu.memory_space<vmem>>, %arg4: memref<32x64xbf16, #tpu.memory_space<vmem>>, %arg5: memref<1x64xf32, #tpu.memory_space<vmem>>, %arg6: memref<32x160xbf16, #tpu.memory_space<vmem>>, %arg7: memref<1x32xf32, #tpu.memory_space<vmem>>, %arg8: memref<1x32xf32, #tpu.memory_space<vmem>>, %arg9: memref<1x1xf32, #tpu.memory_space<vmem>>, %arg10: memref<32x128xbf16, #tpu.memory_space<vmem>>, %arg11: memref<32x128xbf16, #tpu.memory_space<vmem>>, %arg12: memref<1x128xf32, #tpu.memory_space<vmem>>, %arg13: memref<8x8x32xbf16, #tpu.memory_space<vmem>>, %arg14: memref<8x8x128xf32, #tpu.memory_space<vmem>>) attributes {dimension_semantics = [#tpu.dimension_semantics<parallel>], iteration_bounds = array<i64: 1>, scalar_prefetch = 0 : i64, scratch_operands = 0 : i64, tpu.core_type = #tpu.core_type<tc>, window_params = [{transform_indices = @transform_0, window_bounds = array<i64: 8, 16, 32>}, {transform_indices = @transform_1, window_bounds = array<i64: 8, 16, 32>}, {transform_indices = @transform_2, window_bounds = array<i64: 8, 8, 32>}, {pipeline_mode = #tpu.pipeline_mode<synchronous>, transform_indices = @transform_3, window_bounds = array<i64: 32, 64>}, {pipeline_mode = #tpu.pipeline_mode<synchronous>, transform_indices = @transform_4, window_bounds = array<i64: 1, 64>}, {pipeline_mode = #tpu.pipeline_mode<synchronous>, transform_indices = @transform_5, window_bounds = array<i64: 32, 160>}, {pipeline_mode = #tpu.pipeline_mode<synchronous>, transform_indices = @transform_6, window_bounds = array<i64: 1, 32>}, {pipeline_mode = #tpu.pipeline_mode<synchronous>, transform_indices = @transform_7, window_bounds = array<i64: 1, 32>}, {pipeline_mode = #tpu.pipeline_mode<synchronous>, transform_indices = @transform_8, window_bounds = array<i64: 1, 1>}, {pipeline_mode = #tpu.pipeline_mode<synchronous>, transform_indices = @transform_9, window_bounds = array<i64: 32, 128>}, {pipeline_mode = #tpu.pipeline_mode<synchronous>, transform_indices = @transform_10, window_bounds = array<i64: 32, 128>}, {pipeline_mode = #tpu.pipeline_mode<synchronous>, transform_indices = @transform_11, window_bounds = array<i64: 1, 128>}, {transform_indices = @transform_12, window_bounds = array<i64: 8, 8, 32>}, {transform_indices = @transform_13, window_bounds = array<i64: 8, 8, 128>}]} {
    %c0 = arith.constant 0 : index
    %c0_0 = arith.constant 0 : index
    %c0_1 = arith.constant 0 : index
    %0 = vector.load %arg1[%c0, %c0_0, %c0_1] : memref<8x16x32xf32, #tpu.memory_space<vmem>>, vector<8x16x32xf32>
    %c0_2 = arith.constant 0 : index
    %c0_3 = arith.constant 0 : index
    %c0_4 = arith.constant 0 : index
    %1 = vector.load %arg2[%c0_2, %c0_3, %c0_4] : memref<8x16x32xf32, #tpu.memory_space<vmem>>, vector<8x16x32xf32>
    %cst = arith.constant dense<0.000000e+00> : vector<8x32xf32>
    %2 = vector.multi_reduction <add>, %0, %cst [1] : vector<8x16x32xf32> to vector<8x32xf32>
    %cst_5 = arith.constant 1.600000e+01 : f32
    %3 = vector.broadcast %cst_5 : f32 to vector<8x32xf32>
    %4 = arith.divf %2, %3 : vector<8x32xf32>
    %5 = arith.truncf %4 : vector<8x32xf32> to vector<8x32xbf16>
    %c0_6 = arith.constant 0 : index
    %c0_7 = arith.constant 0 : index
    %6 = vector.load %arg4[%c0_6, %c0_7] : memref<32x64xbf16, #tpu.memory_space<vmem>>, vector<32x64xbf16>
    %cst_8 = arith.constant dense<0.000000e+00> : vector<8x64xf32>
    %7 = tpu.matmul %5, %6, %cst_8 {dimension_numbers = #tpu.dot_dimension_numbers<[1], [0], [0], [1], [0, 0, 1, 1], [], []>} : vector<8x32xbf16>, vector<32x64xbf16>, vector<8x64xf32> -> vector<8x64xf32>
    %c0_9 = arith.constant 0 : index
    %c0_10 = arith.constant 0 : index
    %8 = vector.load %arg5[%c0_9, %c0_10] : memref<1x64xf32, #tpu.memory_space<vmem>>, vector<1x64xf32>
    %9 = vector.broadcast %8 : vector<1x64xf32> to vector<8x64xf32>
    %10 = arith.addf %7, %9 : vector<8x64xf32>
    %11 = vector.extract_strided_slice %10 {offsets = [0, 0], sizes = [8, 32], strides = [1, 1]} : vector<8x64xf32> to vector<8x32xf32>
    %12 = vector.extract_strided_slice %10 {offsets = [0, 32], sizes = [8, 32], strides = [1, 1]} : vector<8x64xf32> to vector<8x32xf32>
    %c0_11 = arith.constant 0 : index
    %c0_12 = arith.constant 0 : index
    %13 = vector.load %arg6[%c0_11, %c0_12] : memref<32x160xbf16, #tpu.memory_space<vmem>>, vector<32x160xbf16>
    %c0_13 = arith.constant 0 : index
    %c0_14 = arith.constant 0 : index
    %14 = vector.load %arg10[%c0_13, %c0_14] : memref<32x128xbf16, #tpu.memory_space<vmem>>, vector<32x128xbf16>
    %c0_15 = arith.constant 0 : index
    %c0_16 = arith.constant 0 : index
    %15 = vector.load %arg11[%c0_15, %c0_16] : memref<32x128xbf16, #tpu.memory_space<vmem>>, vector<32x128xbf16>
    %c0_17 = arith.constant 0 : index
    %c0_18 = arith.constant 0 : index
    %16 = vector.load %arg7[%c0_17, %c0_18] : memref<1x32xf32, #tpu.memory_space<vmem>>, vector<1x32xf32>
    %c0_19 = arith.constant 0 : index
    %c0_20 = arith.constant 0 : index
    %17 = vector.load %arg9[%c0_19, %c0_20] : memref<1x1xf32, #tpu.memory_space<vmem>>, vector<1x1xf32>
    %c0_21 = arith.constant 0 : index
    %c0_22 = arith.constant 0 : index
    %18 = vector.load %arg12[%c0_21, %c0_22] : memref<1x128xf32, #tpu.memory_space<vmem>>, vector<1x128xf32>
    %c0_23 = arith.constant 0 : index
    %c0_24 = arith.constant 0 : index
    %19 = vector.load %arg8[%c0_23, %c0_24] : memref<1x32xf32, #tpu.memory_space<vmem>>, vector<1x32xf32>
    %20 = vector.shape_cast %19 : vector<1x32xf32> to vector<1x1x32xf32>
    %cst_25 = arith.constant 0.000000e+00 : f32
    %21 = vector.broadcast %cst_25 : f32 to vector<8x112xf32>
    %c0_i32 = arith.constant 0 : i32
    %c8_i32 = arith.constant 8 : i32
    %22 = arith.addi %c0_i32, %c8_i32 : i32
    %c1_i32 = arith.constant 1 : i32
    %23:2 = scf.for %arg15 = %c0_i32 to %22 step %c1_i32 iter_args(%arg16 = %11, %arg17 = %12) -> (vector<8x32xf32>, vector<8x32xf32>)  : i32 {
      %24 = arith.truncf %arg16 : vector<8x32xf32> to vector<8x32xbf16>
      %cst_27 = arith.constant dense<0.000000e+00> : vector<8x160xf32>
      %25 = tpu.matmul %24, %13, %cst_27 {dimension_numbers = #tpu.dot_dimension_numbers<[1], [0], [0], [1], [0, 0, 1, 1], [], []>} : vector<8x32xbf16>, vector<32x160xbf16>, vector<8x160xf32> -> vector<8x160xf32>
      %26 = vector.extract_strided_slice %25 {offsets = [0, 0], sizes = [8, 32], strides = [1, 1]} : vector<8x160xf32> to vector<8x32xf32>
      %27 = vector.broadcast %16 : vector<1x32xf32> to vector<8x32xf32>
      %28 = arith.addf %26, %27 : vector<8x32xf32>
      %29 = vector.extract_strided_slice %25 {offsets = [0, 32], sizes = [8, 128], strides = [1, 1]} : vector<8x160xf32> to vector<8x128xf32>
      %30 = vector.shape_cast %28 : vector<8x32xf32> to vector<8x1x32xf32>
      %31 = vector.broadcast %30 : vector<8x1x32xf32> to vector<8x16x32xf32>
      %32 = arith.addf %1, %31 : vector<8x16x32xf32>
      %cst_28 = arith.constant 0.000000e+00 : f32
      %33 = vector.broadcast %cst_28 : f32 to vector<8x16x32xf32>
      %34 = arith.maximumf %32, %33 : vector<8x16x32xf32>
      %35 = vector.broadcast %20 : vector<1x1x32xf32> to vector<8x16x32xf32>
      %36 = arith.mulf %34, %35 : vector<8x16x32xf32>
      %cst_29 = arith.constant dense<0.000000e+00> : vector<8x16xf32>
      %37 = vector.multi_reduction <add>, %36, %cst_29 [2] : vector<8x16x32xf32> to vector<8x16xf32>
      %38 = vector.broadcast %17 : vector<1x1xf32> to vector<8x16xf32>
      %39 = arith.addf %37, %38 : vector<8x16xf32>
      %cst_30 = arith.constant dense<0xFF800000> : vector<8xf32>
      %40 = vector.multi_reduction <maximumf>, %39, %cst_30 [1] : vector<8x16xf32> to vector<8xf32>
      %41 = vector.shape_cast %40 : vector<8xf32> to vector<8x1xf32>
      %42 = vector.broadcast %41 : vector<8x1xf32> to vector<8x16xf32>
      %43 = arith.subf %39, %42 : vector<8x16xf32>
      %44 = math.exp %43 : vector<8x16xf32>
      %cst_31 = arith.constant dense<0.000000e+00> : vector<8xf32>
      %45 = vector.multi_reduction <add>, %44, %cst_31 [1] : vector<8x16xf32> to vector<8xf32>
      %46 = vector.shape_cast %45 : vector<8xf32> to vector<8x1xf32>
      %47 = tpu.reciprocal %46 {approx = true} : vector<8x1xf32> -> vector<8x1xf32>
      %48 = vector.broadcast %47 : vector<8x1xf32> to vector<8x16xf32>
      %49 = arith.mulf %44, %48 : vector<8x16xf32>
      %50 = vector.shape_cast %49 : vector<8x16xf32> to vector<8x16x1xf32>
      %51 = vector.broadcast %50 : vector<8x16x1xf32> to vector<8x16x32xf32>
      %52 = arith.mulf %0, %51 : vector<8x16x32xf32>
      %cst_32 = arith.constant dense<0.000000e+00> : vector<8x32xf32>
      %53 = vector.multi_reduction <add>, %52, %cst_32 [1] : vector<8x16x32xf32> to vector<8x32xf32>
      %54 = arith.index_cast %arg15 : i32 to index
      %c0_33 = arith.constant 0 : index
      %c0_34 = arith.constant 0 : index
      %55 = vector.load %arg3[%54, %c0_33, %c0_34] : memref<8x8x32xf32, #tpu.memory_space<vmem>>, vector<1x8x32xf32>
      %56 = vector.shape_cast %55 : vector<1x8x32xf32> to vector<8x32xf32>
      %57 = arith.truncf %56 : vector<8x32xf32> to vector<8x32xbf16>
      %cst_35 = arith.constant dense<0.000000e+00> : vector<8x128xf32>
      %58 = tpu.matmul %57, %14, %cst_35 {dimension_numbers = #tpu.dot_dimension_numbers<[1], [0], [0], [1], [0, 0, 1, 1], [], []>} : vector<8x32xbf16>, vector<32x128xbf16>, vector<8x128xf32> -> vector<8x128xf32>
      %59 = arith.truncf %53 : vector<8x32xf32> to vector<8x32xbf16>
      %cst_36 = arith.constant dense<0.000000e+00> : vector<8x128xf32>
      %60 = tpu.matmul %59, %15, %cst_36 {dimension_numbers = #tpu.dot_dimension_numbers<[1], [0], [0], [1], [0, 0, 1, 1], [], []>} : vector<8x32xbf16>, vector<32x128xbf16>, vector<8x128xf32> -> vector<8x128xf32>
      %61 = arith.addf %58, %60 : vector<8x128xf32>
      %62 = arith.addf %61, %29 : vector<8x128xf32>
      %63 = vector.broadcast %18 : vector<1x128xf32> to vector<8x128xf32>
      %64 = arith.addf %62, %63 : vector<8x128xf32>
      %65 = vector.extract_strided_slice %64 {offsets = [0, 0], sizes = [8, 32], strides = [1, 1]} : vector<8x128xf32> to vector<8x32xf32>
      %66 = arith.negf %65 : vector<8x32xf32>
      %67 = math.exp %66 : vector<8x32xf32>
      %cst_37 = arith.constant 1.000000e+00 : f32
      %68 = vector.broadcast %cst_37 : f32 to vector<8x32xf32>
      %69 = arith.addf %68, %67 : vector<8x32xf32>
      %70 = arith.divf %68, %69 : vector<8x32xf32>
      %71 = vector.extract_strided_slice %64 {offsets = [0, 32], sizes = [8, 32], strides = [1, 1]} : vector<8x128xf32> to vector<8x32xf32>
      %72 = arith.negf %71 : vector<8x32xf32>
      %73 = math.exp %72 : vector<8x32xf32>
      %cst_38 = arith.constant 1.000000e+00 : f32
      %74 = vector.broadcast %cst_38 : f32 to vector<8x32xf32>
      %75 = arith.addf %74, %73 : vector<8x32xf32>
      %76 = arith.divf %74, %75 : vector<8x32xf32>
      %77 = vector.extract_strided_slice %64 {offsets = [0, 64], sizes = [8, 32], strides = [1, 1]} : vector<8x128xf32> to vector<8x32xf32>
      %78 = math.tanh %77 : vector<8x32xf32>
      %79 = vector.extract_strided_slice %64 {offsets = [0, 96], sizes = [8, 32], strides = [1, 1]} : vector<8x128xf32> to vector<8x32xf32>
      %80 = arith.negf %79 : vector<8x32xf32>
      %81 = math.exp %80 : vector<8x32xf32>
      %cst_39 = arith.constant 1.000000e+00 : f32
      %82 = vector.broadcast %cst_39 : f32 to vector<8x32xf32>
      %83 = arith.addf %82, %81 : vector<8x32xf32>
      %84 = arith.divf %82, %83 : vector<8x32xf32>
      %85 = arith.mulf %76, %arg17 : vector<8x32xf32>
      %86 = arith.mulf %70, %78 : vector<8x32xf32>
      %87 = arith.addf %85, %86 : vector<8x32xf32>
      %88 = math.tanh %87 : vector<8x32xf32>
      %89 = arith.mulf %84, %88 : vector<8x32xf32>
      %90 = arith.truncf %89 : vector<8x32xf32> to vector<8x32xbf16>
      %91 = arith.index_cast %arg15 : i32 to index
      %c0_40 = arith.constant 0 : index
      %c0_41 = arith.constant 0 : index
      %92 = vector.load %arg13[%91, %c0_40, %c0_41] : memref<8x8x32xbf16, #tpu.memory_space<vmem>>, vector<1x8x32xbf16>
      %93 = vector.shape_cast %92 : vector<1x8x32xbf16> to vector<8x32xbf16>
      %94 = vector.shape_cast %90 : vector<8x32xbf16> to vector<1x8x32xbf16>
      tpu.vector_store %arg13[%91, %c0_40, %c0_41], %94 {strides = array<i32>} : memref<8x8x32xbf16, #tpu.memory_space<vmem>>, vector<1x8x32xbf16>,
      %95 = tpu.concatenate %49, %21 in 1 : vector<8x16xf32>, vector<8x112xf32> -> vector<8x128xf32>
      %96 = arith.index_cast %arg15 : i32 to index
      %c0_42 = arith.constant 0 : index
      %c0_43 = arith.constant 0 : index
      %97 = vector.load %arg14[%96, %c0_42, %c0_43] : memref<8x8x128xf32, #tpu.memory_space<vmem>>, vector<1x8x128xf32>
      %98 = vector.shape_cast %97 : vector<1x8x128xf32> to vector<8x128xf32>
      %99 = vector.shape_cast %95 : vector<8x128xf32> to vector<1x8x128xf32>
      tpu.vector_store %arg14[%96, %c0_42, %c0_43], %99 {strides = array<i32>} : memref<8x8x128xf32, #tpu.memory_space<vmem>>, vector<1x8x128xf32>,
      scf.yield %89, %87 : vector<8x32xf32>, vector<8x32xf32>
    }
    %c8_i32_26 = arith.constant 8 : i32
    return
  }
  func.func @transform_0(%arg0: i32) -> (i32, i32, i32) {
    %c0_i32 = arith.constant 0 : i32
    %c0_i32_0 = arith.constant 0 : i32
    %c0_i32_1 = arith.constant 0 : i32
    return %arg0, %c0_i32, %c0_i32_0 : i32, i32, i32
  }
  func.func @transform_1(%arg0: i32) -> (i32, i32, i32) {
    %c0_i32 = arith.constant 0 : i32
    %c0_i32_0 = arith.constant 0 : i32
    %c0_i32_1 = arith.constant 0 : i32
    return %arg0, %c0_i32, %c0_i32_0 : i32, i32, i32
  }
  func.func @transform_2(%arg0: i32) -> (i32, i32, i32) {
    %c0_i32 = arith.constant 0 : i32
    %c0_i32_0 = arith.constant 0 : i32
    %c0_i32_1 = arith.constant 0 : i32
    return %c0_i32, %arg0, %c0_i32_0 : i32, i32, i32
  }
  func.func @transform_3(%arg0: i32) -> (i32, i32) {
    %c0_i32 = arith.constant 0 : i32
    %c0_i32_0 = arith.constant 0 : i32
    %c0_i32_1 = arith.constant 0 : i32
    return %c0_i32, %c0_i32_0 : i32, i32
  }
  func.func @transform_4(%arg0: i32) -> (i32, i32) {
    %c0_i32 = arith.constant 0 : i32
    %c0_i32_0 = arith.constant 0 : i32
    %c0_i32_1 = arith.constant 0 : i32
    return %c0_i32, %c0_i32_0 : i32, i32
  }
  func.func @transform_5(%arg0: i32) -> (i32, i32) {
    %c0_i32 = arith.constant 0 : i32
    %c0_i32_0 = arith.constant 0 : i32
    %c0_i32_1 = arith.constant 0 : i32
    return %c0_i32, %c0_i32_0 : i32, i32
  }
  func.func @transform_6(%arg0: i32) -> (i32, i32) {
    %c0_i32 = arith.constant 0 : i32
    %c0_i32_0 = arith.constant 0 : i32
    %c0_i32_1 = arith.constant 0 : i32
    return %c0_i32, %c0_i32_0 : i32, i32
  }
  func.func @transform_7(%arg0: i32) -> (i32, i32) {
    %c0_i32 = arith.constant 0 : i32
    %c0_i32_0 = arith.constant 0 : i32
    %c0_i32_1 = arith.constant 0 : i32
    return %c0_i32, %c0_i32_0 : i32, i32
  }
  func.func @transform_8(%arg0: i32) -> (i32, i32) {
    %c0_i32 = arith.constant 0 : i32
    %c0_i32_0 = arith.constant 0 : i32
    %c0_i32_1 = arith.constant 0 : i32
    return %c0_i32, %c0_i32_0 : i32, i32
  }
  func.func @transform_9(%arg0: i32) -> (i32, i32) {
    %c0_i32 = arith.constant 0 : i32
    %c0_i32_0 = arith.constant 0 : i32
    %c0_i32_1 = arith.constant 0 : i32
    return %c0_i32, %c0_i32_0 : i32, i32
  }
  func.func @transform_10(%arg0: i32) -> (i32, i32) {
    %c0_i32 = arith.constant 0 : i32
    %c0_i32_0 = arith.constant 0 : i32
    %c0_i32_1 = arith.constant 0 : i32
    return %c0_i32, %c0_i32_0 : i32, i32
  }
  func.func @transform_11(%arg0: i32) -> (i32, i32) {
    %c0_i32 = arith.constant 0 : i32
    %c0_i32_0 = arith.constant 0 : i32
    %c0_i32_1 = arith.constant 0 : i32
    return %c0_i32, %c0_i32_0 : i32, i32
  }
  func.func @transform_12(%arg0: i32) -> (i32, i32, i32) {
    %c0_i32 = arith.constant 0 : i32
    %c0_i32_0 = arith.constant 0 : i32
    %c0_i32_1 = arith.constant 0 : i32
    return %c0_i32, %arg0, %c0_i32_0 : i32, i32, i32
  }
  func.func @transform_13(%arg0: i32) -> (i32, i32, i32) {
    %c0_i32 = arith.constant 0 : i32
    %c0_i32_0 = arith.constant 0 : i32
    %c0_i32_1 = arith.constant 0 : i32
    return %c0_i32, %arg0, %c0_i32_0 : i32, i32, i32
  }
}

module attributes {stable_mosaic.version = 11 : i64} {
  func.func @_matmul_kernel(%arg0: i32, %arg1: i32, %arg2: i32, %arg3: memref<64x128xbf16, #tpu.memory_space<vmem>>, %arg4: memref<128x128xbf16, #tpu.memory_space<vmem>>, %arg5: memref<1x128xf32, #tpu.memory_space<vmem>>, %arg6: memref<64x128xf32, #tpu.memory_space<vmem>>, %arg7: memref<64x128xf32, #tpu.memory_space<vmem>>) attributes {dimension_semantics = [#tpu.dimension_semantics<parallel>, #tpu.dimension_semantics<parallel>, #tpu.dimension_semantics<arbitrary>], iteration_bounds = array<i64: 1, 1, 1>, scalar_prefetch = 0 : i64, scratch_operands = 1 : i64, tpu.core_type = #tpu.core_type<tc>, window_params = [{transform_indices = @transform_0, window_bounds = array<i64: 64, 128>}, {transform_indices = @transform_1, window_bounds = array<i64: 128, 128>}, {transform_indices = @transform_2, window_bounds = array<i64: 1, 128>}, {transform_indices = @transform_3, window_bounds = array<i64: 64, 128>}]} {
    %c0_i32 = arith.constant 0 : i32
    %0 = arith.cmpi eq, %arg2, %c0_i32 : i32
    %1 = arith.extui %0 : i1 to i32
    %c0_i32_0 = arith.constant 0 : i32
    %2 = arith.cmpi ne, %1, %c0_i32_0 : i32
    scf.if %2 {
      %cst_10 = arith.constant 0.000000e+00 : f32
      %12 = vector.broadcast %cst_10 : f32 to vector<64x128xf32>
      %c0_11 = arith.constant 0 : index
      %c0_12 = arith.constant 0 : index
      %13 = vector.load %arg7[%c0_11, %c0_12] : memref<64x128xf32, #tpu.memory_space<vmem>>, vector<64x128xf32>
      tpu.vector_store %arg7[%c0_11, %c0_12], %12 {strides = array<i32>} : memref<64x128xf32, #tpu.memory_space<vmem>>, vector<64x128xf32>,
    } else {
    }
    %c0 = arith.constant 0 : index
    %c0_1 = arith.constant 0 : index
    %3 = vector.load %arg7[%c0, %c0_1] : memref<64x128xf32, #tpu.memory_space<vmem>>, vector<64x128xf32>
    %c0_2 = arith.constant 0 : index
    %c0_3 = arith.constant 0 : index
    %4 = vector.load %arg3[%c0_2, %c0_3] : memref<64x128xbf16, #tpu.memory_space<vmem>>, vector<64x128xbf16>
    %c0_4 = arith.constant 0 : index
    %c0_5 = arith.constant 0 : index
    %5 = vector.load %arg4[%c0_4, %c0_5] : memref<128x128xbf16, #tpu.memory_space<vmem>>, vector<128x128xbf16>
    %cst = arith.constant dense<0.000000e+00> : vector<64x128xf32>
    %6 = tpu.matmul %4, %5, %cst {dimension_numbers = #tpu.dot_dimension_numbers<[1], [0], [0], [1], [0, 0, 1, 1], [], []>} : vector<64x128xbf16>, vector<128x128xbf16>, vector<64x128xf32> -> vector<64x128xf32>
    %7 = arith.addf %3, %6 : vector<64x128xf32>
    %c0_6 = arith.constant 0 : index
    %c0_7 = arith.constant 0 : index
    %8 = vector.load %arg7[%c0_6, %c0_7] : memref<64x128xf32, #tpu.memory_space<vmem>>, vector<64x128xf32>
    tpu.vector_store %arg7[%c0_6, %c0_7], %7 {strides = array<i32>} : memref<64x128xf32, #tpu.memory_space<vmem>>, vector<64x128xf32>,
    %c0_i32_8 = arith.constant 0 : i32
    %9 = arith.cmpi eq, %arg2, %c0_i32_8 : i32
    %10 = arith.extui %9 : i1 to i32
    %c0_i32_9 = arith.constant 0 : i32
    %11 = arith.cmpi ne, %10, %c0_i32_9 : i32
    scf.if %11 {
      %c0_10 = arith.constant 0 : index
      %c0_11 = arith.constant 0 : index
      %12 = vector.load %arg7[%c0_10, %c0_11] : memref<64x128xf32, #tpu.memory_space<vmem>>, vector<64x128xf32>
      %c0_12 = arith.constant 0 : index
      %c0_13 = arith.constant 0 : index
      %13 = vector.load %arg5[%c0_12, %c0_13] : memref<1x128xf32, #tpu.memory_space<vmem>>, vector<1x128xf32>
      %14 = vector.broadcast %13 : vector<1x128xf32> to vector<64x128xf32>
      %15 = arith.addf %12, %14 : vector<64x128xf32>
      %c0_14 = arith.constant 0 : index
      %c0_15 = arith.constant 0 : index
      %16 = vector.load %arg6[%c0_14, %c0_15] : memref<64x128xf32, #tpu.memory_space<vmem>>, vector<64x128xf32>
      tpu.vector_store %arg6[%c0_14, %c0_15], %15 {strides = array<i32>} : memref<64x128xf32, #tpu.memory_space<vmem>>, vector<64x128xf32>,
    } else {
    }
    return
  }
  func.func @transform_0(%arg0: i32, %arg1: i32, %arg2: i32) -> (i32, i32) {
    %c0_i32 = arith.constant 0 : i32
    return %arg0, %arg2 : i32, i32
  }
  func.func @transform_1(%arg0: i32, %arg1: i32, %arg2: i32) -> (i32, i32) {
    %c0_i32 = arith.constant 0 : i32
    return %arg2, %arg1 : i32, i32
  }
  func.func @transform_2(%arg0: i32, %arg1: i32, %arg2: i32) -> (i32, i32) {
    %c0_i32 = arith.constant 0 : i32
    %c0_i32_0 = arith.constant 0 : i32
    return %c0_i32, %arg1 : i32, i32
  }
  func.func @transform_3(%arg0: i32, %arg1: i32, %arg2: i32) -> (i32, i32) {
    %c0_i32 = arith.constant 0 : i32
    return %arg0, %arg1 : i32, i32
  }
}

</mosaic_0001>

<bundles_post_ra>
// kernel: fullmodel_forward.4
= control target key start
LH: loop header
LB: loop body
LE: loop exit
PB: predicated region body
PF: predicated region fallthrough
CT: control target
= control target key end

     0   :  { %8 = vsyncpa [#allocation4], 0  ;;  %s587_s0 = inlined_call_operand.hbm [shape: bf16[32,256], index: 0, kind: input, shape index: {}]   ;;  %s588_s1 = inlined_call_operand.hbm [shape: bf16[256,128], index: 1, kind: input, shape index: {}]   ;;  %s589_s2 = inlined_call_operand.hbm [shape: f32[1,128], index: 2, kind: input, shape index: {}]   ;;  %s590_s3 = inlined_call_operand.hbm [shape: f32[32,128], index: 3, kind: output, shape index: {}]  }
   0x1   :  { %9 = vsyncpa [#allocation7], 0 }
   0x2   :  { %10 = vsyncpa [#allocation5], 0  ;;  %s505_s12 = smov [#allocation6]   ;;  %s411_s16 = scalar_lea.hbm %s588_s1, 2048 }
   0x3   :  { %s28_s13 = sshll.u32 %s505_s12, 4  ;;  %p412_p0 = scmp.ne.s32.totalorder %s588_s1, %s411_s16  ;;  %s29_s13 = int_to_ptr.vmem [resolvable:$true] %s28_s13 }
   0x4   :  { %p415_p1 = scmp.lt.u32.totalorder %s411_s16, %s588_s1 }
   0x6   :  { %p417_p2 = pnand %p415_p1, %p412_p0 }
   0x8   :  { %420 = shalt.err (!%p417_p2)
}
   0x9   :  { %s421_s21 = scalar_lea.vmem %s29_s13, 2048  ;;  %p426_p4 = scmp.lt.s32.totalorder %s29_s13, %s29_s13 }
   0xa   :  { %p422_p3 = scmp.ne.s32.totalorder %s29_s13, %s421_s21  ;;  %p427_p5 = scmp.lt.s32.totalorder %s421_s21, %s421_s21 }
   0xc   :  { %p428_p6 = por %p427_p5, %p426_p4 }
   0xe   :  { %p429_p7 = pnand %p428_p6, %p422_p3 }
  0x10   :  { %432 = shalt.err (!%p429_p7)
}
  0x11   :  { %s506_s22 = smov 64   ;;  %s507_s23 = smov 4  }
  0x12   :  { %34 = dma.hbm_to_vmem [thread:$0]  %s588_s1, 2048, %s29_s13, [#allocation7], %s506_s22, %s506_s22, %s507_s23  }
  0x13   :  { %s508_s26 = smov [#allocation3]   ;;  %s433_s30 = scalar_lea.hbm %s587_s0, 512 }
  0x14   :  { %s16_s27 = sshll.u32 %s508_s26, 4  ;;  %p434_p8 = scmp.ne.s32.totalorder %s587_s0, %s433_s30  ;;  %s17_s27 = int_to_ptr.vmem [resolvable:$true] %s16_s27 }
  0x15   :  { %p437_p9 = scmp.lt.u32.totalorder %s433_s30, %s587_s0 }
  0x17   :  { %p439_p10 = pnand %p437_p9, %p434_p8 }
  0x19   :  { %442 = shalt.err (!%p439_p10)
}
  0x1a   :  { %s443_s8 = scalar_lea.vmem %s17_s27, 512  ;;  %p448_p12 = scmp.lt.s32.totalorder %s17_s27, %s17_s27 }
  0x1b   :  { %p444_p11 = scmp.ne.s32.totalorder %s17_s27, %s443_s8  ;;  %p449_p13 = scmp.lt.s32.totalorder %s443_s8, %s443_s8 }
  0x1d   :  { %p450_p0 = por %p449_p13, %p448_p12 }
  0x1f   :  { %p451_p1 = pnand %p450_p0, %p444_p11 }
  0x21   :  { %454 = shalt.err (!%p451_p1)
}
  0x22   :  { %s509_s1 = smov 128   ;;  %s510_s9 = smov 8  }
  0x23   :  { %22 = dma.hbm_to_vmem [thread:$0]  %s587_s0, 512, %s17_s27, [#allocation4], %s509_s1, %s509_s1, %s510_s9  }
  0x24   :  { %s511_s12 = smov [#allocation8]   ;;  %s455_s16 = scalar_lea.hbm %s589_s2, 16 }
  0x25   :  { %s41_s13 = sshll.u32 %s511_s12, 4  ;;  %p456_p2 = scmp.ne.s32.totalorder %s589_s2, %s455_s16  ;;  %s42_s13 = int_to_ptr.vmem [resolvable:$true] %s41_s13 }
  0x26   :  { %p459_p3 = scmp.lt.u32.totalorder %s455_s16, %s589_s2 }
  0x28   :  { %p461_p4 = pnand %p459_p3, %p456_p2 }
  0x2a   :  { %464 = shalt.err (!%p461_p4)
}
  0x2b   :  { %s465_s21 = scalar_lea.vmem %s42_s13, 16  ;;  %s469_s0 = scalar_lea.vmem %s42_s13, 32 }
  0x2c   :  { %p466_p5 = scmp.ne.s32.totalorder %s42_s13, %s465_s21  ;;  %p470_p6 = scmp.lt.s32.totalorder %s42_s13, %s42_s13 }
  0x2d   :  { %p471_p7 = scmp.lt.s32.totalorder %s469_s0, %s465_s21 }
  0x2f   :  { %p472_p8 = por %p471_p7, %p470_p6 }
  0x31   :  { %p473_p9 = pnand %p472_p8, %p466_p5 }
  0x33   :  { %476 = shalt.err (!%p473_p9)
}
  0x34   :  { %44 = dma.hbm_to_vmem [thread:$0]  %s589_s2, 16, %s42_s13, [#allocation7]  }
  0x35   :  { %499 = dma.done.wait [#allocation4], 512  }
  0x36   :  { %500 = vsyncadd [#allocation4], 4294966784 }
  0x37   :  { %501 = dma.done.wait [#allocation7], 2064  }
  0x38   :  { %502 = vsyncadd [#allocation7], 4294965232  ;;  %v389_v0 = vld [vmem:[#allocation6 + $0x40] sm:$0xff]   ;;  %v391_v2 = vld [vmem:[#allocation6 + $0x48] sm:$0xff]   ;;  %s512_s2 = smov [#allocation9]  }
  0x39   :  { %v390_v1 = vld [vmem:[#allocation6] sm:$0xff]   ;;  %337 = vmatprep.subr.bf16.mxu0 %v389_v0  ;;  %365 = vmatprep.subr.bf16.mxu1 %v389_v0  ;;  %v392_v3 = vld [vmem:[#allocation6 + $0x8] sm:$0xff]   ;;  %v393_v4 = vld [vmem:[#allocation6 + $0x50] sm:$0xff]   ;;  %s303_s24 = sshll.u32 %s512_s2, 4  ;;  %s304_s24 = int_to_ptr.vmem [resolvable:$true] %s303_s24 }
  0x3a   :  { %338 = vmatpush3.bf16.msra.mxu0 %v390_v1  ;;  %373 = vmatpush3.bf16.msra.mxu1 %v390_v1  ;;  %v394_v5 = vld [vmem:[#allocation6 + $0x10] sm:$0xff]   ;;  %v395_v6 = vld [vmem:[#allocation6 + $0x58] sm:$0xff]   ;;  %v397_v8 = vld [vmem:[#allocation6 + $0x60] sm:$0xff]   ;;  %s477_s25 = scalar_lea.vmem %s304_s24, 512  ;;  %p482_p11 = scmp.lt.s32.totalorder %s304_s24, %s304_s24 }
  0x3b   :  { %339 = vmatprep.subr.bf16.mxu0 %v391_v2  ;;  %366 = vmatprep.subr.bf16.mxu1 %v391_v2  ;;  %v396_v7 = vld [vmem:[#allocation6 + $0x18] sm:$0xff]   ;;  %v398_v9 = vld [vmem:[#allocation6 + $0x20] sm:$0xff]   ;;  %v399_v10 = vld [vmem:[#allocation6 + $0x68] sm:$0xff]   ;;  %p478_p10 = scmp.ne.s32.totalorder %s304_s24, %s477_s25  ;;  %p483_p12 = scmp.lt.s32.totalorder %s477_s25, %s477_s25 }
  0x3c   :  { %v407_v11 = vld [vmem:[#allocation3 + $0x4] ss:$8 sps:$4 sm:$0xff]   ;;  %v410_v12 = vld [vmem:[#allocation3 + $0x14] ss:$8 sps:$4 sm:$0xff]   ;;  %v405_v18 = vld [vmem:[#allocation3] ss:$8 sps:$4 sm:$0xff]  }
  0x3d   :  { %v400_v13 = vld [vmem:[#allocation6 + $0x28] sm:$0xff]   ;;  %v401_v14 = vld [vmem:[#allocation6 + $0x70] sm:$0xff]   ;;  %251 = vmatprep.mubr.bf16.mxu0 %v407_v11  ;;  %259 = vmatprep.mubr.bf16.mxu1 %v410_v12  ;;  %v403_v16 = vld [vmem:[#allocation6 + $0x78] sm:$0xff]   ;;  %p484_p13 = por %p483_p12, %p482_p11 }
  0x3e   :  { %340 = vmatpush3.bf16.msra.mxu0 %v392_v3  ;;  %374 = vmatpush3.bf16.msra.mxu1 %v392_v3  ;;  %v402_v15 = vld [vmem:[#allocation6 + $0x30] sm:$0xff]   ;;  %v404_v17 = vld [vmem:[#allocation6 + $0x38] sm:$0xff]   ;;  %v336_v23 = vld [vmem:[#allocation8] ss:$0 sm:$0xff] }
  0x3f   :  { %341 = vmatprep.subr.bf16.mxu0 %v393_v4  ;;  %367 = vmatprep.subr.bf16.mxu1 %v393_v4  ;;  %v408_v19 = vld [vmem:[#allocation3 + $0x10] ss:$8 sps:$4 sm:$0xff]   ;;  %p485_p0 = pnand %p484_p13, %p478_p10 }
  0x42   :  { %342 = vmatpush3.bf16.msra.mxu0 %v394_v5  ;;  %375 = vmatpush3.bf16.msra.mxu1 %v394_v5 }
  0x43   :  { %343 = vmatprep.subr.bf16.mxu0 %v395_v6  ;;  %368 = vmatprep.subr.bf16.mxu1 %v395_v6 }
  0x46   :  { %344 = vmatpush3.bf16.msra.mxu0 %v396_v7  ;;  %376 = vmatpush3.bf16.msra.mxu1 %v396_v7 }
  0x47   :  { %345 = vmatprep.subr.bf16.mxu0 %v397_v8  ;;  %369 = vmatprep.subr.bf16.mxu1 %v397_v8 }
  0x4a   :  { %346 = vmatpush3.bf16.msra.mxu0 %v398_v9  ;;  %377 = vmatpush3.bf16.msra.mxu1 %v398_v9 }
  0x4b   :  { %347 = vmatprep.subr.bf16.mxu0 %v399_v10  ;;  %370 = vmatprep.subr.bf16.mxu1 %v399_v10 }
  0x4e   :  { %348 = vmatpush3.bf16.msra.mxu0 %v400_v13  ;;  %378 = vmatpush3.bf16.msra.mxu1 %v400_v13 }
  0x4f   :  { %349 = vmatprep.subr.bf16.mxu0 %v401_v14  ;;  %371 = vmatprep.subr.bf16.mxu1 %v401_v14 }
  0x52   :  { %350 = vmatpush3.bf16.msra.mxu0 %v402_v15  ;;  %379 = vmatpush3.bf16.msra.mxu1 %v402_v15 }
  0x53   :  { %351 = vmatprep.subr.bf16.mxu0 %v403_v16  ;;  %372 = vmatprep.subr.bf16.mxu1 %v403_v16 }
  0x56   :  { %352 = vmatpush3.bf16.msra.mxu0 %v404_v17  ;;  %380 = vmatpush3.bf16.msra.mxu1 %v404_v17 }
  0x59   :  { %252 = vmatmul.mubr.bf16.vlgmr.msra.gmra.mrb[0].mxu0 %v405_v18  ;;  %260 = vmatmul.mubr.bf16.vlgmr.msra.gmra.mrb[0].mxu1 %v408_v19 }
 0x12c   :  { %v353_v20 = vpop.f32.mrb[0].mxu0  ;;  %v359_v21 = vpop.f32.mrb[0].mxu1 }
 0x12d   :  { %v354_v22 = vpop.f32.mrb[1].mxu0  ;;  %v360_v24 = vpop.f32.mrb[1].mxu1 }
 0x12e   :  { %v355_v25 = vadd.f32 %v354_v22, %v353_v20  ;;  %v361_v26 = vadd.f32 %v360_v24, %v359_v21  ;;  %v356_v27 = vpop.f32.mrb[2].mxu0  ;;  %v362_v28 = vpop.f32.mrb[2].mxu1 }
 0x12f   :  { %v357_v29 = vpop.f32.mrb[3].mxu0  ;;  %v363_v30 = vpop.f32.mrb[3].mxu1 }
 0x130   :  { %v290_v31 = vadd.f32 %v355_v25, %v336_v23  ;;  %v292_v32 = vadd.f32 %v361_v26, %v336_v23  ;;  %v358_v33 = vadd.f32 %v357_v29, %v356_v27  ;;  %v364_v34 = vadd.f32 %v363_v30, %v362_v28 }
 0x132   :  { %294 = vst [vmem:[#allocation9] sm:$0xff] %v290_v31  ;;  %296 = vst [vmem:[#allocation9 + $0x10] sm:$0xff] %v292_v32  ;;  %v291_v35 = vadd.f32 %v358_v33, %v336_v23  ;;  %v293_v36 = vadd.f32 %v364_v34, %v336_v23 }
 0x134   :  { %295 = vst [vmem:[#allocation9 + $0x8] sm:$0xff] %v291_v35  ;;  %297 = vst [vmem:[#allocation9 + $0x18] sm:$0xff] %v293_v36 }
 0x135   :  { %488 = shalt.err (!%p485_p0)
}
 0x136   :  { %s489_s28 = scalar_lea.hbm %s590_s3, 512 }
 0x137   :  { %p490_p1 = scmp.ne.s32.totalorder %s590_s3, %s489_s28  ;;  %p493_p2 = scmp.lt.u32.totalorder %s489_s28, %s590_s3 }
 0x139   :  { %p495_p3 = pnand %p493_p2, %p490_p1 }
 0x13b   :  { %498 = shalt.err (!%p495_p3)
}
 0x13c   :  { %309 = dma.vmem_to_hbm [thread:$0]  %s304_s24, 512, %s590_s3, [#allocation5], %s509_s1, %s509_s1, %s510_s9  }
 0x13d   :  { %503 = dma.done.wait [#allocation5], 512  }
 0x13e   :  { %504 = vsyncadd [#allocation5], 4294966784 }
 0x13f   :  { %313 = vsyncpa [#allocation4], 1 }
 0x140   :  { %314 = vsyncpa [#allocation7], 1 }
 0x141   :  { %315 = vsyncpa [#allocation5], 1 }

// kernel: fullmodel_forward.5
= control target key start
LH: loop header
LB: loop body
LE: loop exit
PB: predicated region body
PF: predicated region fallthrough
CT: control target
= control target key end

     0   :  { %8 = vsyncpa [#allocation4], 0  ;;  %s706_s0 = inlined_call_operand.hbm [shape: bf16[128,128], index: 0, kind: input, shape index: {}]   ;;  %s707_s1 = inlined_call_operand.hbm [shape: bf16[128,128], index: 1, kind: input, shape index: {}]   ;;  %s708_s2 = inlined_call_operand.hbm [shape: f32[1,128], index: 2, kind: input, shape index: {}]   ;;  %s709_s3 = inlined_call_operand.hbm [shape: f32[128,128], index: 3, kind: output, shape index: {}]  }
   0x1   :  { %9 = vsyncpa [#allocation7], 0 }
   0x2   :  { %10 = vsyncpa [#allocation5], 0  ;;  %s623_s12 = smov [#allocation6]   ;;  %s624_s14 = smov [#allocation3]  }
   0x3   :  { %s28_s13 = sshll.u32 %s623_s12, 4  ;;  %s16_s15 = sshll.u32 %s624_s14, 4  ;;  %s29_s13 = int_to_ptr.vmem [resolvable:$true] %s28_s13  ;;  %s651_s15 = int_to_ptr.vmem [resolvable:$true] %s16_s15 }
   0x4   :  { %s529_s18 = scalar_lea.hbm %s707_s1, 1024 }
   0x5   :  { %p530_p0 = scmp.ne.s32.totalorder %s707_s1, %s529_s18  ;;  %p533_p1 = scmp.lt.u32.totalorder %s529_s18, %s707_s1 }
   0x7   :  { %p535_p2 = pnand %p533_p1, %p530_p0 }
   0x9   :  { %538 = shalt.err (!%p535_p2)
}
   0xa   :  { %s539_s23 = scalar_lea.vmem %s29_s13, 1024  ;;  %p544_p4 = scmp.lt.s32.totalorder %s29_s13, %s29_s13 }
   0xb   :  { %p540_p3 = scmp.ne.s32.totalorder %s29_s13, %s539_s23  ;;  %p545_p5 = scmp.lt.s32.totalorder %s539_s23, %s539_s23 }
   0xd   :  { %p546_p6 = por %p545_p5, %p544_p4 }
   0xf   :  { %p547_p7 = pnand %p546_p6, %p540_p3 }
  0x11   :  { %550 = shalt.err (!%p547_p7)
}
  0x12   :  { %s625_s24 = smov 64   ;;  %s626_s25 = smov 4  }
  0x13   :  { %34 = dma.hbm_to_vmem [thread:$0]  %s707_s1, 1024, %s29_s13, [#allocation7], %s625_s24, %s625_s24, %s626_s25  }
  0x14   :  { %s551_s30 = scalar_lea.hbm %s706_s0, 1024 }
  0x15   :  { %p552_p8 = scmp.ne.s32.totalorder %s706_s0, %s551_s30  ;;  %p555_p9 = scmp.lt.u32.totalorder %s551_s30, %s706_s0 }
  0x17   :  { %p557_p10 = pnand %p555_p9, %p552_p8 }
  0x19   :  { %560 = shalt.err (!%p557_p10)
}
  0x1a   :  { %s561_s8 = scalar_lea.vmem %s651_s15, 1024  ;;  %p566_p12 = scmp.lt.s32.totalorder %s651_s15, %s651_s15 }
  0x1b   :  { %p562_p11 = scmp.ne.s32.totalorder %s651_s15, %s561_s8  ;;  %p567_p13 = scmp.lt.s32.totalorder %s561_s8, %s561_s8 }
  0x1d   :  { %p568_p0 = por %p567_p13, %p566_p12 }
  0x1f   :  { %p569_p1 = pnand %p568_p0, %p562_p11 }
  0x21   :  { %572 = shalt.err (!%p569_p1)
}
  0x22   :  { %22 = dma.hbm_to_vmem [thread:$0]  %s706_s0, 1024, %s651_s15, [#allocation4], %s625_s24, %s625_s24, %s626_s25  }
  0x23   :  { %s627_s10 = smov [#allocation8]   ;;  %s573_s14 = scalar_lea.hbm %s708_s2, 16 }
  0x24   :  { %s41_s11 = sshll.u32 %s627_s10, 4  ;;  %p574_p2 = scmp.ne.s32.totalorder %s708_s2, %s573_s14  ;;  %s42_s11 = int_to_ptr.vmem [resolvable:$true] %s41_s11 }
  0x25   :  { %p577_p3 = scmp.lt.u32.totalorder %s573_s14, %s708_s2 }
  0x27   :  { %p579_p4 = pnand %p577_p3, %p574_p2 }
  0x29   :  { %582 = shalt.err (!%p579_p4)
}
  0x2a   :  { %s583_s20 = scalar_lea.vmem %s42_s11, 16  ;;  %s587_s0 = scalar_lea.vmem %s42_s11, 32 }
  0x2b   :  { %p584_p5 = scmp.ne.s32.totalorder %s42_s11, %s583_s20  ;;  %p588_p6 = scmp.lt.s32.totalorder %s42_s11, %s42_s11 }
  0x2c   :  { %p589_p7 = scmp.lt.s32.totalorder %s587_s0, %s583_s20 }
  0x2e   :  { %p590_p8 = por %p589_p7, %p588_p6 }
  0x30   :  { %p591_p9 = pnand %p590_p8, %p584_p5 }
  0x32   :  { %594 = shalt.err (!%p591_p9)
}
  0x33   :  { %44 = dma.hbm_to_vmem [thread:$0]  %s708_s2, 16, %s42_s11, [#allocation7]  }
  0x34   :  { %617 = dma.done.wait [#allocation4], 1024  }
  0x35   :  { %618 = vsyncadd [#allocation4], 4294966272 }
  0x36   :  { %619 = dma.done.wait [#allocation7], 1040  }
  0x37   :  { %620 = vsyncadd [#allocation7], 4294966256  ;;  %v513_v0 = vld [vmem:[#allocation6] sm:$0xff]   ;;  %v514_v1 = vld [vmem:[#allocation6 + $0x8] sm:$0xff]   ;;  %s628_s2 = smov [#allocation9]  }
  0x38   :  { %457 = vmatprep.subr.bf16.mxu0 %v513_v0  ;;  %489 = vmatprep.subr.bf16.mxu1 %v513_v0  ;;  %v515_v2 = vld [vmem:[#allocation6 + $0x10] sm:$0xff]   ;;  %v516_v3 = vld [vmem:[#allocation6 + $0x18] sm:$0xff]   ;;  %v521_v4 = vld [vmem:[#allocation3] sm:$0xff]   ;;  %s411_s22 = sshll.u32 %s628_s2, 4  ;;  %s412_s22 = int_to_ptr.vmem [resolvable:$true] %s411_s22 }
  0x39   :  { %458 = vmatpush3.bf16.msra.mxu0 %v513_v0  ;;  %497 = vmatpush3.bf16.msra.mxu1 %v513_v0  ;;  %v522_v5 = vld [vmem:[#allocation3 + $0x20] sm:$0xff]   ;;  %v518_v7 = vld [vmem:[#allocation6 + $0x28] sm:$0xff]   ;;  %v519_v8 = vld [vmem:[#allocation6 + $0x30] sm:$0xff]   ;;  %s595_s23 = scalar_lea.vmem %s412_s22, 2048  ;;  %p600_p11 = scmp.lt.s32.totalorder %s412_s22, %s412_s22 }
  0x3a   :  { %459 = vmatprep.subr.bf16.mxu0 %v514_v1  ;;  %490 = vmatprep.subr.bf16.mxu1 %v514_v1  ;;  %v517_v6 = vld [vmem:[#allocation6 + $0x20] sm:$0xff]   ;;  %v520_v9 = vld [vmem:[#allocation6 + $0x38] sm:$0xff]   ;;  %v523_v10 = vld [vmem:[#allocation3 + $0x8] sm:$0xff]   ;;  %p596_p10 = scmp.ne.s32.totalorder %s412_s22, %s595_s23  ;;  %p601_p12 = scmp.lt.s32.totalorder %s595_s23, %s595_s23 }
  0x3b   :  { %473 = vmatprep.mubr.bf16.mxu0 %v521_v4  ;;  %481 = vmatprep.mubr.bf16.mxu1 %v522_v5  ;;  %v524_v11 = vld [vmem:[#allocation3 + $0x28] sm:$0xff]   ;;  %v525_v12 = vld [vmem:[#allocation3 + $0x10] sm:$0xff]   ;;  %v527_v14 = vld [vmem:[#allocation3 + $0x18] sm:$0xff]  }
  0x3c   :  { %v526_v13 = vld [vmem:[#allocation3 + $0x30] sm:$0xff]   ;;  %v528_v15 = vld [vmem:[#allocation3 + $0x38] sm:$0xff]   ;;  %v440_v16 = vld [vmem:[#allocation8] ss:$0 sm:$0xff]  ;;  %p602_p13 = por %p601_p12, %p600_p11 }
  0x3d   :  { %460 = vmatpush3.bf16.msra.mxu0 %v514_v1  ;;  %498 = vmatpush3.bf16.msra.mxu1 %v514_v1 }
  0x3e   :  { %461 = vmatprep.subr.bf16.mxu0 %v515_v2  ;;  %491 = vmatprep.subr.bf16.mxu1 %v515_v2  ;;  %p603_p0 = pnand %p602_p13, %p596_p10 }
  0x41   :  { %462 = vmatpush3.bf16.msra.mxu0 %v515_v2  ;;  %499 = vmatpush3.bf16.msra.mxu1 %v515_v2 }
  0x42   :  { %463 = vmatprep.subr.bf16.mxu0 %v516_v3  ;;  %492 = vmatprep.subr.bf16.mxu1 %v516_v3 }
  0x45   :  { %464 = vmatpush3.bf16.msra.mxu0 %v516_v3  ;;  %500 = vmatpush3.bf16.msra.mxu1 %v516_v3 }
  0x46   :  { %465 = vmatprep.subr.bf16.mxu0 %v517_v6  ;;  %493 = vmatprep.subr.bf16.mxu1 %v517_v6 }
  0x49   :  { %466 = vmatpush3.bf16.msra.mxu0 %v517_v6  ;;  %501 = vmatpush3.bf16.msra.mxu1 %v517_v6 }
  0x4a   :  { %467 = vmatprep.subr.bf16.mxu0 %v518_v7  ;;  %494 = vmatprep.subr.bf16.mxu1 %v518_v7 }
  0x4d   :  { %468 = vmatpush3.bf16.msra.mxu0 %v518_v7  ;;  %502 = vmatpush3.bf16.msra.mxu1 %v518_v7 }
  0x4e   :  { %469 = vmatprep.subr.bf16.mxu0 %v519_v8  ;;  %495 = vmatprep.subr.bf16.mxu1 %v519_v8 }
  0x51   :  { %470 = vmatpush3.bf16.msra.mxu0 %v519_v8  ;;  %503 = vmatpush3.bf16.msra.mxu1 %v519_v8 }
  0x52   :  { %471 = vmatprep.subr.bf16.mxu0 %v520_v9  ;;  %496 = vmatprep.subr.bf16.mxu1 %v520_v9 }
  0x55   :  { %472 = vmatpush3.bf16.msra.mxu0 %v520_v9  ;;  %504 = vmatpush3.bf16.msra.mxu1 %v520_v9 }
  0x58   :  { %474 = vmatmul.mubr.bf16.vlgmr.msra.gmra.mrb[0].mxu0 %v523_v10  ;;  %482 = vmatmul.mubr.bf16.vlgmr.msra.gmra.mrb[0].mxu1 %v524_v11 }
  0x59   :  { %477 = vmatprep.mubr.bf16.mxu0 %v525_v12  ;;  %485 = vmatprep.mubr.bf16.mxu1 %v526_v13 }
  0x60   :  { %478 = vmatmul.mubr.bf16.gmra.mrb[4].mxu0 %v527_v14  ;;  %486 = vmatmul.mubr.bf16.gmra.mrb[4].mxu1 %v528_v15 }
 0x12b   :  { %v475_v17 = vpop.f32.mrb[0].mxu0  ;;  %v483_v18 = vpop.f32.mrb[0].mxu1 }
 0x12c   :  { %v376_v19 = vadd.f32 %v475_v17, %v440_v16  ;;  %v384_v20 = vadd.f32 %v483_v18, %v440_v16  ;;  %v253_v21 = vpop.f32.mrb[1].mxu0  ;;  %v285_v22 = vpop.f32.mrb[1].mxu1 }
 0x12d   :  { %v374_v23 = vadd.f32 %v440_v16, %v253_v21  ;;  %v382_v24 = vadd.f32 %v440_v16, %v285_v22  ;;  %v476_v25 = vpop.f32.mrb[2].mxu0  ;;  %v484_v26 = vpop.f32.mrb[2].mxu1 }
 0x12e   :  { %392 = vst [vmem:[#allocation9 + $0x10] sm:$0xff] %v376_v19  ;;  %400 = vst [vmem:[#allocation9 + $0x50] sm:$0xff] %v384_v20  ;;  %v377_v27 = vadd.f32 %v476_v25, %v440_v16  ;;  %v385_v28 = vadd.f32 %v484_v26, %v440_v16  ;;  %v256_v29 = vpop.f32.mrb[3].mxu0  ;;  %v288_v30 = vpop.f32.mrb[3].mxu1 }
 0x12f   :  { %390 = vst [vmem:[#allocation9] sm:$0xff] %v374_v23  ;;  %398 = vst [vmem:[#allocation9 + $0x40] sm:$0xff] %v382_v24  ;;  %v375_v31 = vadd.f32 %v440_v16, %v256_v29  ;;  %v383_v32 = vadd.f32 %v440_v16, %v288_v30 }
 0x130   :  { %393 = vst [vmem:[#allocation9 + $0x18] sm:$0xff] %v377_v27  ;;  %401 = vst [vmem:[#allocation9 + $0x58] sm:$0xff] %v385_v28 }
 0x131   :  { %391 = vst [vmem:[#allocation9 + $0x8] sm:$0xff] %v375_v31  ;;  %399 = vst [vmem:[#allocation9 + $0x48] sm:$0xff] %v383_v32 }
 0x133   :  { %v479_v33 = vpop.f32.mrb[4].mxu0  ;;  %v487_v34 = vpop.f32.mrb[4].mxu1 }
 0x134   :  { %v380_v35 = vadd.f32 %v479_v33, %v440_v16  ;;  %v388_v36 = vadd.f32 %v487_v34, %v440_v16  ;;  %v269_v37 = vpop.f32.mrb[5].mxu0  ;;  %v301_v38 = vpop.f32.mrb[5].mxu1 }
 0x135   :  { %v378_v39 = vadd.f32 %v440_v16, %v269_v37  ;;  %v386_v40 = vadd.f32 %v440_v16, %v301_v38  ;;  %v480_v41 = vpop.f32.mrb[6].mxu0  ;;  %v488_v42 = vpop.f32.mrb[6].mxu1 }
 0x136   :  { %396 = vst [vmem:[#allocation9 + $0x30] sm:$0xff] %v380_v35  ;;  %404 = vst [vmem:[#allocation9 + $0x70] sm:$0xff] %v388_v36  ;;  %v381_v43 = vadd.f32 %v480_v41, %v440_v16  ;;  %v389_v44 = vadd.f32 %v488_v42, %v440_v16  ;;  %v272_v45 = vpop.f32.mrb[7].mxu0  ;;  %v304_v46 = vpop.f32.mrb[7].mxu1 }
 0x137   :  { %394 = vst [vmem:[#allocation9 + $0x20] sm:$0xff] %v378_v39  ;;  %402 = vst [vmem:[#allocation9 + $0x60] sm:$0xff] %v386_v40  ;;  %v379_v47 = vadd.f32 %v440_v16, %v272_v45  ;;  %v387_v48 = vadd.f32 %v440_v16, %v304_v46 }
 0x138   :  { %397 = vst [vmem:[#allocation9 + $0x38] sm:$0xff] %v381_v43  ;;  %405 = vst [vmem:[#allocation9 + $0x78] sm:$0xff] %v389_v44 }
 0x139   :  { %395 = vst [vmem:[#allocation9 + $0x28] sm:$0xff] %v379_v47  ;;  %403 = vst [vmem:[#allocation9 + $0x68] sm:$0xff] %v387_v48 }
 0x13a   :  { %606 = shalt.err (!%p603_p0)
}
 0x13b   :  { %s607_s26 = scalar_lea.hbm %s709_s3, 2048 }
 0x13c   :  { %p608_p1 = scmp.ne.s32.totalorder %s709_s3, %s607_s26  ;;  %p611_p2 = scmp.lt.u32.totalorder %s607_s26, %s709_s3 }
 0x13e   :  { %p613_p3 = pnand %p611_p2, %p608_p1 }
 0x140   :  { %616 = shalt.err (!%p613_p3)
}
 0x141   :  { %s629_s4 = smov 128   ;;  %s630_s5 = smov 8  }
 0x142   :  { %417 = dma.vmem_to_hbm [thread:$0]  %s412_s22, 2048, %s709_s3, [#allocation5], %s629_s4, %s629_s4, %s630_s5  }
 0x143   :  { %621 = dma.done.wait [#allocation5], 2048  }
 0x144   :  { %622 = vsyncadd [#allocation5], 4294965248 }
 0x145   :  { %421 = vsyncpa [#allocation4], 1 }
 0x146   :  { %422 = vsyncpa [#allocation7], 1 }
 0x147   :  { %423 = vsyncpa [#allocation5], 1 }

// kernel: fullmodel_forward.7
= control target key start
LH: loop header
LB: loop body
LE: loop exit
PB: predicated region body
PF: predicated region fallthrough
CT: control target
= control target key end

     0   :  { %8 = vsyncpa [#allocation4], 0  ;;  %s566_s0 = inlined_call_operand.hbm [shape: bf16[64,128], index: 0, kind: input, shape index: {}]   ;;  %s567_s1 = inlined_call_operand.hbm [shape: bf16[128,128], index: 1, kind: input, shape index: {}]   ;;  %s568_s2 = inlined_call_operand.hbm [shape: f32[1,128], index: 2, kind: input, shape index: {}]   ;;  %s569_s3 = inlined_call_operand.hbm [shape: f32[64,128], index: 3, kind: output, shape index: {}]  }
   0x1   :  { %9 = vsyncpa [#allocation7], 0 }
   0x2   :  { %10 = vsyncpa [#allocation5], 0  ;;  %s483_s12 = smov [#allocation6]   ;;  %s484_s14 = smov [#allocation3]  }
   0x3   :  { %s28_s13 = sshll.u32 %s483_s12, 4  ;;  %s16_s15 = sshll.u32 %s484_s14, 4  ;;  %s29_s13 = int_to_ptr.vmem [resolvable:$true] %s28_s13  ;;  %s511_s15 = int_to_ptr.vmem [resolvable:$true] %s16_s15 }
   0x4   :  { %s389_s18 = scalar_lea.hbm %s567_s1, 1024 }
   0x5   :  { %p390_p0 = scmp.ne.s32.totalorder %s567_s1, %s389_s18  ;;  %p393_p1 = scmp.lt.u32.totalorder %s389_s18, %s567_s1 }
   0x7   :  { %p395_p2 = pnand %p393_p1, %p390_p0 }
   0x9   :  { %398 = shalt.err (!%p395_p2)
}
   0xa   :  { %s399_s23 = scalar_lea.vmem %s29_s13, 1024  ;;  %p404_p4 = scmp.lt.s32.totalorder %s29_s13, %s29_s13 }
   0xb   :  { %p400_p3 = scmp.ne.s32.totalorder %s29_s13, %s399_s23  ;;  %p405_p5 = scmp.lt.s32.totalorder %s399_s23, %s399_s23 }
   0xd   :  { %p406_p6 = por %p405_p5, %p404_p4 }
   0xf   :  { %p407_p7 = pnand %p406_p6, %p400_p3 }
  0x11   :  { %410 = shalt.err (!%p407_p7)
}
  0x12   :  { %s485_s24 = smov 64   ;;  %s486_s25 = smov 4  }
  0x13   :  { %34 = dma.hbm_to_vmem [thread:$0]  %s567_s1, 1024, %s29_s13, [#allocation7], %s485_s24, %s485_s24, %s486_s25  }
  0x14   :  { %s411_s30 = scalar_lea.hbm %s566_s0, 512 }
  0x15   :  { %p412_p8 = scmp.ne.s32.totalorder %s566_s0, %s411_s30  ;;  %p415_p9 = scmp.lt.u32.totalorder %s411_s30, %s566_s0 }
  0x17   :  { %p417_p10 = pnand %p415_p9, %p412_p8 }
  0x19   :  { %420 = shalt.err (!%p417_p10)
}
  0x1a   :  { %s421_s8 = scalar_lea.vmem %s511_s15, 512  ;;  %p426_p12 = scmp.lt.s32.totalorder %s511_s15, %s511_s15 }
  0x1b   :  { %p422_p11 = scmp.ne.s32.totalorder %s511_s15, %s421_s8  ;;  %p427_p13 = scmp.lt.s32.totalorder %s421_s8, %s421_s8 }
  0x1d   :  { %p428_p0 = por %p427_p13, %p426_p12 }
  0x1f   :  { %p429_p1 = pnand %p428_p0, %p422_p11 }
  0x21   :  { %432 = shalt.err (!%p429_p1)
}
  0x22   :  { %22 = dma.hbm_to_vmem [thread:$0]  %s566_s0, 512, %s511_s15, [#allocation4], %s485_s24, %s485_s24, %s486_s25  }
  0x23   :  { %s487_s10 = smov [#allocation8]   ;;  %s433_s14 = scalar_lea.hbm %s568_s2, 16 }
  0x24   :  { %s41_s11 = sshll.u32 %s487_s10, 4  ;;  %p434_p2 = scmp.ne.s32.totalorder %s568_s2, %s433_s14  ;;  %s42_s11 = int_to_ptr.vmem [resolvable:$true] %s41_s11 }
  0x25   :  { %p437_p3 = scmp.lt.u32.totalorder %s433_s14, %s568_s2 }
  0x27   :  { %p439_p4 = pnand %p437_p3, %p434_p2 }
  0x29   :  { %442 = shalt.err (!%p439_p4)
}
  0x2a   :  { %s443_s20 = scalar_lea.vmem %s42_s11, 16  ;;  %s447_s0 = scalar_lea.vmem %s42_s11, 32 }
  0x2b   :  { %p444_p5 = scmp.ne.s32.totalorder %s42_s11, %s443_s20  ;;  %p448_p6 = scmp.lt.s32.totalorder %s42_s11, %s42_s11 }
  0x2c   :  { %p449_p7 = scmp.lt.s32.totalorder %s447_s0, %s443_s20 }
  0x2e   :  { %p450_p8 = por %p449_p7, %p448_p6 }
  0x30   :  { %p451_p9 = pnand %p450_p8, %p444_p5 }
  0x32   :  { %454 = shalt.err (!%p451_p9)
}
  0x33   :  { %44 = dma.hbm_to_vmem [thread:$0]  %s568_s2, 16, %s42_s11, [#allocation7]  }
  0x34   :  { %477 = dma.done.wait [#allocation4], 512  }
  0x35   :  { %478 = vsyncadd [#allocation4], 4294966784 }
  0x36   :  { %479 = dma.done.wait [#allocation7], 1040  }
  0x37   :  { %480 = vsyncadd [#allocation7], 4294966256  ;;  %v377_v0 = vld [vmem:[#allocation6] sm:$0xff]   ;;  %v378_v1 = vld [vmem:[#allocation6 + $0x8] sm:$0xff]   ;;  %s488_s2 = smov [#allocation9]  }
  0x38   :  { %329 = vmatprep.subr.bf16.mxu0 %v377_v0  ;;  %353 = vmatprep.subr.bf16.mxu1 %v377_v0  ;;  %v379_v2 = vld [vmem:[#allocation6 + $0x10] sm:$0xff]   ;;  %v380_v3 = vld [vmem:[#allocation6 + $0x18] sm:$0xff]   ;;  %v385_v4 = vld [vmem:[#allocation3] sm:$0xff]   ;;  %s291_s22 = sshll.u32 %s488_s2, 4  ;;  %s292_s22 = int_to_ptr.vmem [resolvable:$true] %s291_s22 }
  0x39   :  { %330 = vmatpush3.bf16.msra.mxu0 %v377_v0  ;;  %361 = vmatpush3.bf16.msra.mxu1 %v377_v0  ;;  %v386_v5 = vld [vmem:[#allocation3 + $0x10] sm:$0xff]   ;;  %v381_v6 = vld [vmem:[#allocation6 + $0x20] sm:$0xff]   ;;  %v382_v7 = vld [vmem:[#allocation6 + $0x28] sm:$0xff]   ;;  %s455_s23 = scalar_lea.vmem %s292_s22, 1024  ;;  %p460_p11 = scmp.lt.s32.totalorder %s292_s22, %s292_s22 }
  0x3a   :  { %331 = vmatprep.subr.bf16.mxu0 %v378_v1  ;;  %354 = vmatprep.subr.bf16.mxu1 %v378_v1  ;;  %v383_v8 = vld [vmem:[#allocation6 + $0x30] sm:$0xff]   ;;  %v384_v9 = vld [vmem:[#allocation6 + $0x38] sm:$0xff]   ;;  %v387_v10 = vld [vmem:[#allocation3 + $0x8] sm:$0xff]   ;;  %p456_p10 = scmp.ne.s32.totalorder %s292_s22, %s455_s23  ;;  %p461_p12 = scmp.lt.s32.totalorder %s455_s23, %s455_s23 }
  0x3b   :  { %345 = vmatprep.mubr.bf16.mxu0 %v385_v4  ;;  %349 = vmatprep.mubr.bf16.mxu1 %v386_v5  ;;  %v388_v11 = vld [vmem:[#allocation3 + $0x18] sm:$0xff]   ;;  %v316_v12 = vld [vmem:[#allocation8] ss:$0 sm:$0xff] }
  0x3c   :  { %p462_p13 = por %p461_p12, %p460_p11 }
  0x3d   :  { %332 = vmatpush3.bf16.msra.mxu0 %v378_v1  ;;  %362 = vmatpush3.bf16.msra.mxu1 %v378_v1 }
  0x3e   :  { %333 = vmatprep.subr.bf16.mxu0 %v379_v2  ;;  %355 = vmatprep.subr.bf16.mxu1 %v379_v2  ;;  %p463_p0 = pnand %p462_p13, %p456_p10 }
  0x41   :  { %334 = vmatpush3.bf16.msra.mxu0 %v379_v2  ;;  %363 = vmatpush3.bf16.msra.mxu1 %v379_v2 }
  0x42   :  { %335 = vmatprep.subr.bf16.mxu0 %v380_v3  ;;  %356 = vmatprep.subr.bf16.mxu1 %v380_v3 }
  0x45   :  { %336 = vmatpush3.bf16.msra.mxu0 %v380_v3  ;;  %364 = vmatpush3.bf16.msra.mxu1 %v380_v3 }
  0x46   :  { %337 = vmatprep.subr.bf16.mxu0 %v381_v6  ;;  %357 = vmatprep.subr.bf16.mxu1 %v381_v6 }
  0x49   :  { %338 = vmatpush3.bf16.msra.mxu0 %v381_v6  ;;  %365 = vmatpush3.bf16.msra.mxu1 %v381_v6 }
  0x4a   :  { %339 = vmatprep.subr.bf16.mxu0 %v382_v7  ;;  %358 = vmatprep.subr.bf16.mxu1 %v382_v7 }
  0x4d   :  { %340 = vmatpush3.bf16.msra.mxu0 %v382_v7  ;;  %366 = vmatpush3.bf16.msra.mxu1 %v382_v7 }
  0x4e   :  { %341 = vmatprep.subr.bf16.mxu0 %v383_v8  ;;  %359 = vmatprep.subr.bf16.mxu1 %v383_v8 }
  0x51   :  { %342 = vmatpush3.bf16.msra.mxu0 %v383_v8  ;;  %367 = vmatpush3.bf16.msra.mxu1 %v383_v8 }
  0x52   :  { %343 = vmatprep.subr.bf16.mxu0 %v384_v9  ;;  %360 = vmatprep.subr.bf16.mxu1 %v384_v9 }
  0x55   :  { %344 = vmatpush3.bf16.msra.mxu0 %v384_v9  ;;  %368 = vmatpush3.bf16.msra.mxu1 %v384_v9 }
  0x58   :  { %346 = vmatmul.mubr.bf16.vlgmr.msra.gmra.mrb[0].mxu0 %v387_v10  ;;  %350 = vmatmul.mubr.bf16.vlgmr.msra.gmra.mrb[0].mxu1 %v388_v11 }
 0x12b   :  { %v347_v13 = vpop.f32.mrb[0].mxu0  ;;  %v351_v14 = vpop.f32.mrb[0].mxu1 }
 0x12c   :  { %v272_v15 = vadd.f32 %v347_v13, %v316_v12  ;;  %v276_v16 = vadd.f32 %v351_v14, %v316_v12  ;;  %v205_v17 = vpop.f32.mrb[1].mxu0  ;;  %v221_v18 = vpop.f32.mrb[1].mxu1 }
 0x12d   :  { %v270_v19 = vadd.f32 %v316_v12, %v205_v17  ;;  %v274_v20 = vadd.f32 %v316_v12, %v221_v18  ;;  %v348_v21 = vpop.f32.mrb[2].mxu0  ;;  %v352_v22 = vpop.f32.mrb[2].mxu1 }
 0x12e   :  { %280 = vst [vmem:[#allocation9 + $0x10] sm:$0xff] %v272_v15  ;;  %284 = vst [vmem:[#allocation9 + $0x30] sm:$0xff] %v276_v16  ;;  %v273_v23 = vadd.f32 %v348_v21, %v316_v12  ;;  %v277_v24 = vadd.f32 %v352_v22, %v316_v12  ;;  %v208_v25 = vpop.f32.mrb[3].mxu0  ;;  %v224_v26 = vpop.f32.mrb[3].mxu1 }
 0x12f   :  { %278 = vst [vmem:[#allocation9] sm:$0xff] %v270_v19  ;;  %282 = vst [vmem:[#allocation9 + $0x20] sm:$0xff] %v274_v20  ;;  %v271_v27 = vadd.f32 %v316_v12, %v208_v25  ;;  %v275_v28 = vadd.f32 %v316_v12, %v224_v26 }
 0x130   :  { %281 = vst [vmem:[#allocation9 + $0x18] sm:$0xff] %v273_v23  ;;  %285 = vst [vmem:[#allocation9 + $0x38] sm:$0xff] %v277_v24 }
 0x131   :  { %279 = vst [vmem:[#allocation9 + $0x8] sm:$0xff] %v271_v27  ;;  %283 = vst [vmem:[#allocation9 + $0x28] sm:$0xff] %v275_v28 }
 0x132   :  { %466 = shalt.err (!%p463_p0)
}
 0x133   :  { %s467_s26 = scalar_lea.hbm %s569_s3, 1024 }
 0x134   :  { %p468_p1 = scmp.ne.s32.totalorder %s569_s3, %s467_s26  ;;  %p471_p2 = scmp.lt.u32.totalorder %s467_s26, %s569_s3 }
 0x136   :  { %p473_p3 = pnand %p471_p2, %p468_p1 }
 0x138   :  { %476 = shalt.err (!%p473_p3)
}
 0x139   :  { %s489_s4 = smov 128   ;;  %s490_s5 = smov 8  }
 0x13a   :  { %297 = dma.vmem_to_hbm [thread:$0]  %s292_s22, 1024, %s569_s3, [#allocation5], %s489_s4, %s489_s4, %s490_s5  }
 0x13b   :  { %481 = dma.done.wait [#allocation5], 1024  }
 0x13c   :  { %482 = vsyncadd [#allocation5], 4294966272 }
 0x13d   :  { %301 = vsyncpa [#allocation4], 1 }
 0x13e   :  { %302 = vsyncpa [#allocation7], 1 }
 0x13f   :  { %303 = vsyncpa [#allocation5], 1 }

// kernel: fullmodel_forward.6
= control target key start
LH: loop header
LB: loop body
LE: loop exit
PB: predicated region body
PF: predicated region fallthrough
CT: control target
= control target key end

     0   :  { %s3010_s0 = inlined_call_operand.hbm [shape: f32[8,16,32], index: 0, kind: input, shape index: {}]   ;;  %s3011_s1 = inlined_call_operand.hbm [shape: f32[8,16,32], index: 1, kind: input, shape index: {}]   ;;  %s3012_s2 = inlined_call_operand.hbm [shape: f32[8,8,32], index: 2, kind: input, shape index: {}]   ;;  %s3013_s3 = inlined_call_operand.hbm [shape: bf16[32,64], index: 3, kind: input, shape index: {}]   ;;  %s3014_s4 = inlined_call_operand.hbm [shape: f32[1,64], index: 4, kind: input, shape index: {}]   ;;  %s3015_s5 = inlined_call_operand.hbm [shape: bf16[32,160], index: 5, kind: input, shape index: {}]   ;;  %s3016_s6 = inlined_call_operand.hbm [shape: f32[1,32], index: 6, kind: input, shape index: {}]   ;;  %s3017_s7 = inlined_call_operand.hbm [shape: f32[1,32], index: 7, kind: input, shape index: {}]   ;;  %s3018_s8 = inlined_call_operand.<no memory space> [shape: f32[1,1], index: 8, kind: input, shape index: {}]   ;;  %s3019_s9 = inlined_call_operand.hbm [shape: bf16[32,128], index: 9, kind: input, shape index: {}]   ;;  %s3020_s10 = inlined_call_operand.hbm [shape: bf16[32,128], index: 10, kind: input, shape index: {}]   ;;  %s3021_s11 = inlined_call_operand.hbm [shape: f32[1,128], index: 11, kind: input, shape index: {}]   ;;  %s3022_s12 = inlined_call_operand.hbm [shape: bf16[8,8,32], index: 12, kind: output, shape index: {0}]   ;;  %s3023_s13 = inlined_call_operand.hbm [shape: f32[8,8,128], index: 13, kind: output, shape index: {1}]  }
   0x1   :  { %v19_v0 = vstv %s3018_s8 }
   0x2   :  { %20 = vst [vmem:[#allocation2] sm:$0x1] %v19_v0 }
   0x3   :  { %21 = vsyncpa [#allocation4], 0 }
   0x4   :  { %22 = vsyncpa [#allocation7], 0 }
   0x5   :  { %23 = vsyncpa [#allocation10], 0 }
   0x6   :  { %24 = vsyncpa [#allocation13], 0 }
   0x7   :  { %25 = vsyncpa [#allocation16], 0 }
   0x8   :  { %26 = vsyncpa [#allocation19], 0 }
   0x9   :  { %27 = vsyncpa [#allocation5], 0 }
   0xa   :  { %28 = vsyncpa [#allocation23], 0  ;;  %s2106_s27 = smov [#allocation6]   ;;  %s2107_s29 = smov [#allocation9]  }
   0xb   :  { %s46_s28 = sshll.u32 %s2106_s27, 4  ;;  %s70_s30 = sshll.u32 %s2107_s29, 4  ;;  %s47_s28 = int_to_ptr.vmem [resolvable:$true] %s46_s28  ;;  %s2205_s30 = int_to_ptr.vmem [resolvable:$true] %s70_s30 }
   0xc   :  { %s1780_s8 = scalar_lea.hbm %s3011_s1, 2048 }
   0xd   :  { %p1781_p0 = scmp.ne.s32.totalorder %s3011_s1, %s1780_s8  ;;  %p1784_p1 = scmp.lt.u32.totalorder %s1780_s8, %s3011_s1 }
   0xf   :  { %p1786_p2 = pnand %p1784_p1, %p1781_p0 }
  0x11   :  { %1789 = shalt.err (!%p1786_p2)
}
  0x12   :  { %s1790_s20 = scalar_lea.vmem %s47_s28, 2048  ;;  %p1795_p4 = scmp.lt.s32.totalorder %s47_s28, %s47_s28 }
  0x13   :  { %p1791_p3 = scmp.ne.s32.totalorder %s47_s28, %s1790_s20  ;;  %p1796_p5 = scmp.lt.s32.totalorder %s1790_s20, %s1790_s20 }
  0x15   :  { %p1797_p6 = por %p1796_p5, %p1795_p4 }
  0x17   :  { %p1798_p7 = pnand %p1797_p6, %p1791_p3 }
  0x19   :  { %1801 = shalt.err (!%p1798_p7)
}
  0x1a   :  { %s2108_s21 = smov 128   ;;  %s2109_s22 = smov 8  }
  0x1b   :  { %52 = dma.hbm_to_vmem [thread:$0]  %s3011_s1, 2048, %s47_s28, [#allocation7], %s2108_s21, %s2108_s21, %s2109_s22  }
  0x1c   :  { %s1802_s27 = scalar_lea.hbm %s3013_s3, 256 }
  0x1d   :  { %p1803_p8 = scmp.ne.s32.totalorder %s3013_s3, %s1802_s27  ;;  %p1806_p9 = scmp.lt.u32.totalorder %s1802_s27, %s3013_s3 }
  0x1f   :  { %p1808_p10 = pnand %p1806_p9, %p1803_p8 }
  0x21   :  { %1811 = shalt.err (!%p1808_p10)
}
  0x22   :  { %s1812_s16 = scalar_lea.vmem %s2205_s30, 256  ;;  %p1817_p12 = scmp.lt.s32.totalorder %s2205_s30, %s2205_s30 }
  0x23   :  { %p1813_p11 = scmp.ne.s32.totalorder %s2205_s30, %s1812_s16  ;;  %p1818_p13 = scmp.lt.s32.totalorder %s1812_s16, %s1812_s16 }
  0x25   :  { %p1819_p0 = por %p1818_p13, %p1817_p12 }
  0x27   :  { %p1820_p1 = pnand %p1819_p0, %p1813_p11 }
  0x29   :  { %1823 = shalt.err (!%p1820_p1)
}
  0x2a   :  { %s2110_s1 = smov 64   ;;  %s2111_s28 = smov 4  }
  0x2b   :  { %76 = dma.hbm_to_vmem [thread:$0]  %s3013_s3, 256, %s2205_s30, [#allocation10], %s2110_s1, %s2110_s1, %s2111_s28  }
  0x2c   :  { %s2112_s19 = smov [#allocation12]   ;;  %s2113_s23 = smov [#allocation15]  }
  0x2d   :  { %s92_s20 = sshll.u32 %s2112_s19, 4  ;;  %s115_s24 = sshll.u32 %s2113_s23, 4  ;;  %s93_s20 = int_to_ptr.vmem [resolvable:$true] %s92_s20  ;;  %s116_s24 = int_to_ptr.vmem [resolvable:$true] %s115_s24 }
  0x2e   :  { %s1824_s27 = scalar_lea.hbm %s3015_s5, 512 }
  0x2f   :  { %p1825_p2 = scmp.ne.s32.totalorder %s3015_s5, %s1824_s27  ;;  %p1828_p3 = scmp.lt.u32.totalorder %s1824_s27, %s3015_s5 }
  0x31   :  { %p1830_p4 = pnand %p1828_p3, %p1825_p2 }
  0x33   :  { %1833 = shalt.err (!%p1830_p4)
}
  0x34   :  { %s1834_s3 = scalar_lea.vmem %s93_s20, 512  ;;  %p1839_p6 = scmp.lt.s32.totalorder %s93_s20, %s93_s20 }
  0x35   :  { %p1835_p5 = scmp.ne.s32.totalorder %s93_s20, %s1834_s3  ;;  %p1840_p7 = scmp.lt.s32.totalorder %s1834_s3, %s1834_s3 }
  0x37   :  { %p1841_p8 = por %p1840_p7, %p1839_p6 }
  0x39   :  { %p1842_p9 = pnand %p1841_p8, %p1835_p5 }
  0x3b   :  { %1845 = shalt.err (!%p1842_p9)
}
  0x3c   :  { %98 = dma.hbm_to_vmem [thread:$0]  %s3015_s5, 512, %s93_s20, [#allocation13], %s2108_s21, %s2108_s21, %s2109_s22  }
  0x3d   :  { %s1846_s19 = scalar_lea.hbm %s3017_s7, 16 }
  0x3e   :  { %p1847_p10 = scmp.ne.s32.totalorder %s3017_s7, %s1846_s19  ;;  %p1850_p11 = scmp.lt.u32.totalorder %s1846_s19, %s3017_s7 }
  0x40   :  { %p1852_p12 = pnand %p1850_p11, %p1847_p10 }
  0x42   :  { %1855 = shalt.err (!%p1852_p12)
}
  0x43   :  { %s1856_s29 = scalar_lea.vmem %s116_s24, 16  ;;  %s1860_s14 = scalar_lea.vmem %s116_s24, 32 }
  0x44   :  { %p1857_p13 = scmp.ne.s32.totalorder %s116_s24, %s1856_s29  ;;  %p1861_p0 = scmp.lt.s32.totalorder %s116_s24, %s116_s24 }
  0x45   :  { %p1862_p1 = scmp.lt.s32.totalorder %s1860_s14, %s1856_s29 }
  0x47   :  { %p1863_p2 = por %p1862_p1, %p1861_p0 }
  0x49   :  { %p1864_p3 = pnand %p1863_p2, %p1857_p13 }
  0x4b   :  { %1867 = shalt.err (!%p1864_p3)
}
  0x4c   :  { %118 = dma.hbm_to_vmem [thread:$0]  %s3017_s7, 16, %s116_s24, [#allocation16]  }
  0x4d   :  { %s2114_s15 = smov [#allocation18]   ;;  %s2115_s3 = smov [#allocation3]  }
  0x4e   :  { %s138_s8 = sshll.u32 %s2114_s15, 4  ;;  %s34_s30 = sshll.u32 %s2115_s3, 4  ;;  %s139_s8 = int_to_ptr.vmem [resolvable:$true] %s138_s8  ;;  %s2269_s30 = int_to_ptr.vmem [resolvable:$true] %s34_s30 }
  0x4f   :  { %s1868_s18 = scalar_lea.hbm %s3020_s10, 256 }
  0x50   :  { %p1869_p4 = scmp.ne.s32.totalorder %s3020_s10, %s1868_s18  ;;  %p1872_p5 = scmp.lt.u32.totalorder %s1868_s18, %s3020_s10 }
  0x52   :  { %p1874_p6 = pnand %p1872_p5, %p1869_p4 }
  0x54   :  { %1877 = shalt.err (!%p1874_p6)
}
  0x55   :  { %s1878_s7 = scalar_lea.vmem %s139_s8, 256  ;;  %p1883_p8 = scmp.lt.s32.totalorder %s139_s8, %s139_s8 }
  0x56   :  { %p1879_p7 = scmp.ne.s32.totalorder %s139_s8, %s1878_s7  ;;  %p1884_p9 = scmp.lt.s32.totalorder %s1878_s7, %s1878_s7 }
  0x58   :  { %p1885_p10 = por %p1884_p9, %p1883_p8 }
  0x5a   :  { %p1886_p11 = pnand %p1885_p10, %p1879_p7 }
  0x5c   :  { %1889 = shalt.err (!%p1886_p11)
}
  0x5d   :  { %144 = dma.hbm_to_vmem [thread:$0]  %s3020_s10, 256, %s139_s8, [#allocation19], %s2110_s1, %s2110_s1, %s2111_s28  }
  0x5e   :  { %s1890_s5 = scalar_lea.hbm %s3010_s0, 2048 }
  0x5f   :  { %p1891_p12 = scmp.ne.s32.totalorder %s3010_s0, %s1890_s5  ;;  %p1894_p13 = scmp.lt.u32.totalorder %s1890_s5, %s3010_s0 }
  0x61   :  { %p1896_p0 = pnand %p1894_p13, %p1891_p12 }
  0x63   :  { %1899 = shalt.err (!%p1896_p0)
}
  0x64   :  { %s1900_s17 = scalar_lea.vmem %s2269_s30, 2048  ;;  %p1905_p2 = scmp.lt.s32.totalorder %s2269_s30, %s2269_s30 }
  0x65   :  { %p1901_p1 = scmp.ne.s32.totalorder %s2269_s30, %s1900_s17  ;;  %p1906_p3 = scmp.lt.s32.totalorder %s1900_s17, %s1900_s17 }
  0x67   :  { %p1907_p4 = por %p1906_p3, %p1905_p2 }
  0x69   :  { %p1908_p5 = pnand %p1907_p4, %p1901_p1 }
  0x6b   :  { %1911 = shalt.err (!%p1908_p5)
}
  0x6c   :  { %40 = dma.hbm_to_vmem [thread:$0]  %s3010_s0, 2048, %s2269_s30, [#allocation4], %s2108_s21, %s2108_s21, %s2109_s22  }
  0x6d   :  { %s2116_s18 = smov [#allocation8]   ;;  %s2117_s23 = smov [#allocation11]  }
  0x6e   :  { %s58_s19 = sshll.u32 %s2116_s18, 4  ;;  %s83_s25 = sshll.u32 %s2117_s23, 4  ;;  %s59_s19 = int_to_ptr.vmem [resolvable:$true] %s58_s19  ;;  %s84_s25 = int_to_ptr.vmem [resolvable:$true] %s83_s25 }
  0x6f   :  { %s1912_s24 = scalar_lea.hbm %s3012_s2, 1024 }
  0x70   :  { %p1913_p6 = scmp.ne.s32.totalorder %s3012_s2, %s1912_s24  ;;  %p1916_p7 = scmp.lt.u32.totalorder %s1912_s24, %s3012_s2 }
  0x72   :  { %p1918_p8 = pnand %p1916_p7, %p1913_p6 }
  0x74   :  { %1921 = shalt.err (!%p1918_p8)
}
  0x75   :  { %s1922_s0 = scalar_lea.vmem %s59_s19, 1024  ;;  %p1927_p10 = scmp.lt.s32.totalorder %s59_s19, %s59_s19 }
  0x76   :  { %p1923_p9 = scmp.ne.s32.totalorder %s59_s19, %s1922_s0  ;;  %p1928_p11 = scmp.lt.s32.totalorder %s1922_s0, %s1922_s0 }
  0x78   :  { %p1929_p12 = por %p1928_p11, %p1927_p10 }
  0x7a   :  { %p1930_p13 = pnand %p1929_p12, %p1923_p9 }
  0x7c   :  { %1933 = shalt.err (!%p1930_p13)
}
  0x7d   :  { %64 = dma.hbm_to_vmem [thread:$0]  %s3012_s2, 1024, %s59_s19, [#allocation7], %s2108_s21, %s2108_s21, %s2109_s22  }
  0x7e   :  { %s1934_s16 = scalar_lea.hbm %s3014_s4, 16 }
  0x7f   :  { %p1935_p0 = scmp.ne.s32.totalorder %s3014_s4, %s1934_s16  ;;  %p1938_p1 = scmp.lt.u32.totalorder %s1934_s16, %s3014_s4 }
  0x81   :  { %p1940_p2 = pnand %p1938_p1, %p1935_p0 }
  0x83   :  { %1943 = shalt.err (!%p1940_p2)
}
  0x84   :  { %s1944_s23 = scalar_lea.vmem %s84_s25, 16  ;;  %s1948_s26 = scalar_lea.vmem %s84_s25, 32 }
  0x85   :  { %p1945_p3 = scmp.ne.s32.totalorder %s84_s25, %s1944_s23  ;;  %p1949_p4 = scmp.lt.s32.totalorder %s84_s25, %s84_s25 }
  0x86   :  { %p1950_p5 = scmp.lt.s32.totalorder %s1948_s26, %s1944_s23 }
  0x88   :  { %p1951_p6 = por %p1950_p5, %p1949_p4 }
  0x8a   :  { %p1952_p7 = pnand %p1951_p6, %p1945_p3 }
  0x8c   :  { %1955 = shalt.err (!%p1952_p7)
}
  0x8d   :  { %86 = dma.hbm_to_vmem [thread:$0]  %s3014_s4, 16, %s84_s25, [#allocation10]  }
  0x8e   :  { %s2118_s7 = smov [#allocation14]   ;;  %s2119_s27 = smov [#allocation17]  }
  0x8f   :  { %s105_s24 = sshll.u32 %s2118_s7, 4  ;;  %s126_s29 = sshll.u32 %s2119_s27, 4  ;;  %s106_s24 = int_to_ptr.vmem [resolvable:$true] %s105_s24  ;;  %s2333_s29 = int_to_ptr.vmem [resolvable:$true] %s126_s29 }
  0x90   :  { %s1956_s0 = scalar_lea.hbm %s3016_s6, 16 }
  0x91   :  { %p1957_p8 = scmp.ne.s32.totalorder %s3016_s6, %s1956_s0  ;;  %p1960_p9 = scmp.lt.u32.totalorder %s1956_s0, %s3016_s6 }
  0x93   :  { %p1962_p10 = pnand %p1960_p9, %p1957_p8 }
  0x95   :  { %1965 = shalt.err (!%p1962_p10)
}
  0x96   :  { %s1966_s4 = scalar_lea.vmem %s106_s24, 16  ;;  %s1970_s25 = scalar_lea.vmem %s106_s24, 32 }
  0x97   :  { %p1967_p11 = scmp.ne.s32.totalorder %s106_s24, %s1966_s4  ;;  %p1971_p12 = scmp.lt.s32.totalorder %s106_s24, %s106_s24 }
  0x98   :  { %p1972_p13 = scmp.lt.s32.totalorder %s1970_s25, %s1966_s4 }
  0x9a   :  { %p1973_p0 = por %p1972_p13, %p1971_p12 }
  0x9c   :  { %p1974_p1 = pnand %p1973_p0, %p1967_p11 }
  0x9e   :  { %1977 = shalt.err (!%p1974_p1)
}
  0x9f   :  { %108 = dma.hbm_to_vmem [thread:$0]  %s3016_s6, 16, %s106_s24, [#allocation13]  }
  0xa0   :  { %s1978_s18 = scalar_lea.hbm %s3019_s9, 256 }
  0xa1   :  { %p1979_p2 = scmp.ne.s32.totalorder %s3019_s9, %s1978_s18  ;;  %p1982_p3 = scmp.lt.u32.totalorder %s1978_s18, %s3019_s9 }
  0xa3   :  { %p1984_p4 = pnand %p1982_p3, %p1979_p2 }
  0xa5   :  { %1987 = shalt.err (!%p1984_p4)
}
  0xa6   :  { %s1988_s7 = scalar_lea.vmem %s2333_s29, 256  ;;  %p1993_p6 = scmp.lt.s32.totalorder %s2333_s29, %s2333_s29 }
  0xa7   :  { %p1989_p5 = scmp.ne.s32.totalorder %s2333_s29, %s1988_s7  ;;  %p1994_p7 = scmp.lt.s32.totalorder %s1988_s7, %s1988_s7 }
  0xa9   :  { %p1995_p8 = por %p1994_p7, %p1993_p6 }
  0xab   :  { %p1996_p9 = pnand %p1995_p8, %p1989_p5 }
  0xad   :  { %1999 = shalt.err (!%p1996_p9)
}
  0xae   :  { %132 = dma.hbm_to_vmem [thread:$0]  %s3019_s9, 256, %s2333_s29, [#allocation16], %s2110_s1, %s2110_s1, %s2111_s28  }
  0xaf   :  { %s2120_s27 = smov [#allocation20]   ;;  %s2000_s30 = scalar_lea.hbm %s3021_s11, 16 }
  0xb0   :  { %s151_s14 = sshll.u32 %s2120_s27, 4  ;;  %p2001_p10 = scmp.ne.s32.totalorder %s3021_s11, %s2000_s30  ;;  %s152_s14 = int_to_ptr.vmem [resolvable:$true] %s151_s14 }
  0xb1   :  { %p2004_p11 = scmp.lt.u32.totalorder %s2000_s30, %s3021_s11 }
  0xb3   :  { %p2006_p12 = pnand %p2004_p11, %p2001_p10 }
  0xb5   :  { %2009 = shalt.err (!%p2006_p12)
}
  0xb6   :  { %s2010_s25 = scalar_lea.vmem %s152_s14, 16  ;;  %s2014_s9 = scalar_lea.vmem %s152_s14, 32 }
  0xb7   :  { %p2011_p13 = scmp.ne.s32.totalorder %s152_s14, %s2010_s25  ;;  %p2015_p0 = scmp.lt.s32.totalorder %s152_s14, %s152_s14 }
  0xb8   :  { %p2016_p1 = scmp.lt.s32.totalorder %s2014_s9, %s2010_s25 }
  0xba   :  { %p2017_p2 = por %p2016_p1, %p2015_p0 }
  0xbc   :  { %p2018_p3 = pnand %p2017_p2, %p2011_p13 }
  0xbe   :  { %2021 = shalt.err (!%p2018_p3)
}
  0xbf   :  { %154 = dma.hbm_to_vmem [thread:$0]  %s3021_s11, 16, %s152_s14, [#allocation19]  }
  0xc0   :  { %2078 = dma.done.wait [#allocation4], 2048  }
  0xc1   :  { %2079 = vsyncadd [#allocation4], 4294965248 }
  0xc2   :  { %2080 = dma.done.wait [#allocation7], 3072  }
  0xc3   :  { %2081 = vsyncadd [#allocation7], 4294964224 }
  0xc4   :  { %2082 = dma.done.wait [#allocation10], 272  }
  0xc5   :  { %2083 = vsyncadd [#allocation10], 4294967024 }
  0xc6   :  { %2084 = dma.done.wait [#allocation13], 528  }
  0xc7   :  { %2085 = vsyncadd [#allocation13], 4294966768 }
  0xc8   :  { %2086 = dma.done.wait [#allocation16], 272  }
  0xc9   :  { %2087 = vsyncadd [#allocation16], 4294967024 }
  0xca   :  { %2088 = dma.done.wait [#allocation19], 272  }
  0xcb   :  { %2089 = vsyncadd [#allocation19], 4294967024  ;;  %v2121_v1 = vmov 0.0   ;;  %vm2122_vm0 = vmmov 0   ;;  %v2379_v2 = vld [vmem:[#allocation6] sm:$0xff]  ;;  %v2381_v3 = vld [vmem:[#allocation6 + $0x8] sm:$0xff] }
  0xcc   :  { %1660 = vmatprep.subr.bf16.mxu0 %v2121_v1  ;;  %1664 = vmatprep.mubr.msk.bf16.mxu0 %vm2122_vm0, %v2121_v1  ;;  %3047 = vst [vmem:[#allocation32_spill] sm:$0xff] %v2379_v2  ;;  %3048 = vst [vmem:[#allocation33_spill] sm:$0xff] %v2381_v3  ;;  %v2383_v4 = vld [vmem:[#allocation6 + $0x10] sm:$0xff]  ;;  %v2385_v5 = vld [vmem:[#allocation6 + $0x18] sm:$0xff]  ;;  %vm221_vm1 = vcmask 261120   ;;  %vm338_vm2 = vcmask 1041409  }
  0xcd   :  { %3049 = vst [vmem:[#allocation34_spill] sm:$0xff] %v2383_v4  ;;  %3050 = vst [vmem:[#allocation35_spill] sm:$0xff] %v2385_v5  ;;  %v2387_v6 = vld [vmem:[#allocation6 + $0x20] sm:$0xff]  ;;  %v2389_v7 = vld [vmem:[#allocation6 + $0x28] sm:$0xff]  ;;  %vm340_vm3 = vcmask 1042434   ;;  %vm342_vm4 = vcmask 1043459  }
  0xce   :  { %3051 = vst [vmem:[#allocation36_spill] sm:$0xff] %v2387_v6  ;;  %3052 = vst [vmem:[#allocation37_spill] sm:$0xff] %v2389_v7  ;;  %v2391_v8 = vld [vmem:[#allocation6 + $0x30] sm:$0xff]  ;;  %v2393_v9 = vld [vmem:[#allocation6 + $0x38] sm:$0xff]  ;;  %vm344_vm5 = vcmask 1044484   ;;  %vm346_vm6 = vcmask 1045509  }
  0xcf   :  { %3053 = vst [vmem:[#allocation38_spill] sm:$0xff] %v2391_v8  ;;  %3054 = vst [vmem:[#allocation39_spill] sm:$0xff] %v2393_v9  ;;  %v2395_v10 = vld [vmem:[#allocation6 + $0x40] sm:$0xff]  ;;  %v2397_v11 = vld [vmem:[#allocation6 + $0x48] sm:$0xff]  ;;  %vm348_vm7 = vcmask 1046534   ;;  %vm350_vm8 = vcmask 1047559  }
  0xd0   :  { %3055 = vst [vmem:[#allocation40_spill] sm:$0xff] %v2395_v10  ;;  %3056 = vst [vmem:[#allocation41_spill] sm:$0xff] %v2397_v11  ;;  %v2399_v12 = vld [vmem:[#allocation6 + $0x50] sm:$0xff]  ;;  %v2401_v13 = vld [vmem:[#allocation6 + $0x58] sm:$0xff]  ;;  %s2519_s11 = smov 0  }
  0xd1   :  { %3057 = vst [vmem:[#allocation42_spill] sm:$0xff] %v2399_v12  ;;  %3058 = vst [vmem:[#allocation43_spill] sm:$0xff] %v2401_v13  ;;  %v2403_v14 = vld [vmem:[#allocation6 + $0x60] sm:$0xff]  ;;  %v2405_v15 = vld [vmem:[#allocation6 + $0x68] sm:$0xff] }
  0xd2   :  { %3059 = vst [vmem:[#allocation44_spill] sm:$0xff] %v2403_v14  ;;  %v2407_v16 = vld [vmem:[#allocation6 + $0x70] sm:$0xff]  ;;  %v2409_v17 = vld [vmem:[#allocation6 + $0x78] sm:$0xff]  ;;  %v2415_v20 = vld [vmem:[#allocation12 + $0x10] sm:$0xff] }
  0xd3   :  { %v2411_v18 = vld [vmem:[#allocation12] sm:$0xff]  ;;  %v2413_v19 = vld [vmem:[#allocation12 + $0x8] sm:$0xff]  ;;  %v2417_v21 = vld [vmem:[#allocation12 + $0x18] sm:$0xff] }
  0xd4   :  { %v2419_v22 = vld [vmem:[#allocation17] sm:$0xf]  ;;  %v2421_v23 = vld [vmem:[#allocation17 + $0x4] sm:$0xf]  ;;  %v2423_v24 = vld [vmem:[#allocation17 + $0x8] sm:$0xf] }
  0xd5   :  { %v2425_v25 = vld [vmem:[#allocation17 + $0xc] sm:$0xf]  ;;  %v2427_v26 = vld [vmem:[#allocation18] sm:$0xf]  ;;  %v2429_v27 = vld [vmem:[#allocation18 + $0x4] sm:$0xf] }
  0xd6   :  { %v2431_v28 = vld [vmem:[#allocation18 + $0x8] sm:$0xf]  ;;  %v2433_v29 = vld [vmem:[#allocation18 + $0xc] sm:$0xf]  ;;  %v2437_v31 = vld [vmem:[#allocation2] ss:$0 sm:$0xff] }
  0xd7   :  { %3060 = vst [vmem:[#allocation45_spill] sm:$0xff] %v2431_v28  ;;  %v2435_v30 = vld [vmem:[#allocation14] ss:$0 sm:$0xff]  ;;  %v2439_v32 = vld [vmem:[#allocation20] ss:$0 sm:$0xff]  ;;  %v1734_v34 = vld [vmem:[#allocation9] sm:$0xff]  }
  0xd8   :  { %3061 = vst [vmem:[#allocation46_spill] sm:$0xff] %v2439_v32  ;;  %v2441_v33 = vld [vmem:[#allocation15] ss:$0 sm:$0xff]  ;;  %v1735_v35 = vld [vmem:[#allocation9 + $0x8] sm:$0xff]   ;;  %v2443_v36 = vld [vmem:[#allocation3] sm:$0xff]  ;;  %1661 = vmatpush3.bf16.msra.mxu0 %v1734_v34 }
  0xd9   :  { %3062 = vst [vmem:[#allocation47_spill] sm:$0xff] %v2443_v36  ;;  %v2445_v37 = vld [vmem:[#allocation3 + $0x8] sm:$0xff]  ;;  %v2447_v38 = vld [vmem:[#allocation3 + $0x10] sm:$0xff]  ;;  %v2449_v39 = vld [vmem:[#allocation3 + $0x18] sm:$0xff]  ;;  %v222_v40 = vsel %vm221_vm1, %v2443_v36, 0.0  ;;  %1662 = vmatprep.subr.bf16.mxu0 %v2121_v1 }
  0xda   :  { %3063 = vst [vmem:[#allocation48_spill] sm:$0xff] %v2445_v37  ;;  %3064 = vst [vmem:[#allocation49_spill] sm:$0xff] %v2447_v38  ;;  %v2453_v41 = vld [vmem:[#allocation3 + $0x20] sm:$0xff]  ;;  %v2455_v42 = vld [vmem:[#allocation3 + $0x28] sm:$0xff]  ;;  %v223_v44 = vsel %vm221_vm1, %v2445_v37, 0.0  ;;  %v231_v45 = vsel %vm221_vm1, %v2447_v38, 0.0 }
  0xdb   :  { %3065 = vst [vmem:[#allocation50_spill] sm:$0xff] %v2449_v39  ;;  %3066 = vst [vmem:[#allocation51_spill] sm:$0xff] %v2453_v41  ;;  %v2457_v43 = vld [vmem:[#allocation3 + $0x30] sm:$0xff]  ;;  %v232_v46 = vsel %vm221_vm1, %v2449_v39, 0.0  ;;  %v2465_v47 = vld [vmem:[#allocation3 + $0x38] sm:$0xff]  ;;  %v224_v50 = vadd.f32 %v223_v44, %v222_v40  ;;  %v240_v52 = vsel %vm221_vm1, %v2453_v41, 0.0 }
  0xdc   :  { %3067 = vst [vmem:[#allocation52_spill] sm:$0xff] %v2455_v42  ;;  %3068 = vst [vmem:[#allocation53_spill] sm:$0xff] %v2457_v43  ;;  %v2467_v48 = vld [vmem:[#allocation3 + $0x40] sm:$0xff]  ;;  %v2469_v49 = vld [vmem:[#allocation3 + $0x48] sm:$0xff]  ;;  %v233_v51 = vadd.f32 %v232_v46, %v231_v45  ;;  %v241_v53 = vsel %vm221_vm1, %v2455_v42, 0.0  ;;  %v249_v57 = vsel %vm221_vm1, %v2457_v43, 0.0  ;;  %1663 = vmatpush3.bf16.msra.mxu0 %v1735_v35 }
  0xdd   :  { %3069 = vst [vmem:[#allocation54_spill] sm:$0xff] %v2465_v47  ;;  %3070 = vst [vmem:[#allocation55_spill] sm:$0xff] %v2467_v48  ;;  %v2475_v54 = vld [vmem:[#allocation3 + $0x50] sm:$0xff]  ;;  %v2477_v55 = vld [vmem:[#allocation3 + $0x58] sm:$0xff]  ;;  %v242_v56 = vadd.f32 %v241_v53, %v240_v52  ;;  %v250_v58 = vsel %vm221_vm1, %v2465_v47, 0.0  ;;  %v258_v59 = vsel %vm221_vm1, %v2467_v48, 0.0 }
  0xde   :  { %3071 = vst [vmem:[#allocation56_spill] sm:$0xff] %v2469_v49  ;;  %3072 = vst [vmem:[#allocation57_spill] sm:$0xff] %v2475_v54  ;;  %v2485_v60 = vld [vmem:[#allocation3 + $0x60] sm:$0xff]  ;;  %v2487_v61 = vld [vmem:[#allocation3 + $0x68] sm:$0xff]  ;;  %v225_v62 = vrot.slane %v224_v50, 4  ;;  %v234_v63 = vrot.slane %v233_v51, 4  ;;  %v251_v0 = vadd.f32 %v250_v58, %v249_v57 }
  0xdf   :  { %3073 = vst [vmem:[#allocation58_spill] sm:$0xff] %v2477_v55  ;;  %3074 = vst [vmem:[#allocation59_spill] sm:$0xff] %v2485_v60  ;;  %v259_v1 = vsel %vm221_vm1, %v2469_v49, 0.0  ;;  %v243_v34 = vrot.slane %v242_v56, 4  ;;  %v267_v44 = vsel %vm221_vm1, %v2475_v54, 0.0  ;;  %v268_v45 = vsel %vm221_vm1, %v2477_v55, 0.0 }
  0xe0   :  { %3075 = vst [vmem:[#allocation60_spill] sm:$0xff] %v2487_v61  ;;  %v260_v40 = vadd.f32 %v259_v1, %v258_v59  ;;  %v2495_v46 = vld [vmem:[#allocation3 + $0x70] sm:$0xff]  ;;  %v226_v35 = vadd.f32 %v225_v62, %v224_v50  ;;  %v235_v52 = vadd.f32 %v234_v63, %v233_v51  ;;  %v252_v53 = vrot.slane %v251_v0, 4  ;;  %v2501_v59 = vld [vmem:[#allocation3 + $0x78] sm:$0xff] }
  0xe1   :  { %3076 = vst [vmem:[#allocation61_spill] sm:$0xff] %v2495_v46  ;;  %v269_v32 = vadd.f32 %v268_v45, %v267_v44  ;;  %v244_v48 = vadd.f32 %v243_v34, %v242_v56  ;;  %v276_v57 = vsel %vm221_vm1, %v2485_v60, 0.0  ;;  %v277_v58 = vsel %vm221_vm1, %v2487_v61, 0.0  ;;  %3077 = vst [vmem:[#allocation62_spill] sm:$0xff] %v2501_v59 }
  0xe2   :  { %v261_v47 = vrot.slane %v260_v40, 4  ;;  %v227_v1 = vrot.slane %v226_v35, 2  ;;  %v236_v54 = vrot.slane %v235_v52, 2  ;;  %v253_v49 = vadd.f32 %v252_v53, %v251_v0 }
  0xe3   :  { %v270_v55 = vrot.slane %v269_v32, 4  ;;  %v245_v43 = vrot.slane %v244_v48, 2  ;;  %v278_v50 = vadd.f32 %v277_v58, %v276_v57  ;;  %v285_v51 = vsel %vm221_vm1, %v2495_v46, 0.0 }
  0xe4   :  { %v262_v41 = vadd.f32 %v261_v47, %v260_v40  ;;  %v228_v56 = vadd.f32 %v227_v1, %v226_v35  ;;  %v237_v62 = vadd.f32 %v236_v54, %v235_v52  ;;  %v254_v63 = vrot.slane %v253_v49, 2 }
  0xe5   :  { %v271_v34 = vadd.f32 %v270_v55, %v269_v32  ;;  %v246_v44 = vadd.f32 %v245_v43, %v244_v48  ;;  %v279_v60 = vrot.slane %v278_v50, 4  ;;  %v286_v61 = vsel %vm221_vm1, %v2501_v59, 0.0 }
  0xe6   :  { %v263_v45 = vrot.slane %v262_v41, 2  ;;  %v229_v42 = vrot.slane %v228_v56, 1  ;;  %v238_v0 = vrot.slane %v237_v62, 1  ;;  %v255_v53 = vadd.f32 %v254_v63, %v253_v49 }
  0xe7   :  { %v272_v38 = vrot.slane %v271_v34, 2  ;;  %v247_v47 = vrot.slane %v246_v44, 1  ;;  %v280_v57 = vadd.f32 %v279_v60, %v278_v50  ;;  %v287_v58 = vadd.f32 %v286_v61, %v285_v51 }
  0xe8   :  { %v264_v40 = vadd.f32 %v263_v45, %v262_v41  ;;  %v230_v54 = vadd.f32 %v229_v42, %v228_v56  ;;  %v239_v35 = vadd.f32 %v238_v0, %v237_v62  ;;  %v256_v32 = vrot.slane %v255_v53, 1 }
  0xe9   :  { %v273_v43 = vadd.f32 %v272_v38, %v271_v34  ;;  %v248_v48 = vadd.f32 %v247_v47, %v246_v44  ;;  %v281_v52 = vrot.slane %v280_v57, 2  ;;  %v288_v1 = vrot.slane %v287_v58, 4 }
  0xea   :  { %v265_v55 = vrot.slane %v264_v40, 1  ;;  %v257_v59 = vadd.f32 %v256_v32, %v255_v53  ;;  %v295_v39 = vmul.f32 0.0625, %v230_v54  ;;  %v296_v36 = vmul.f32 0.0625, %v239_v35 }
  0xeb   :  { %v274_v46 = vrot.slane %v273_v43, 1  ;;  %v282_v63 = vadd.f32 %v281_v52, %v280_v57  ;;  %v289_v37 = vadd.f32 %v288_v1, %v287_v58  ;;  %v297_v28 = vmul.f32 0.0625, %v248_v48 }
  0xec   :  { %v266_v49 = vadd.f32 %v265_v55, %v264_v40  ;;  %v298_v60 = vmul.f32 0.0625, %v257_v59  ;;  %v303_v61 = vpack.c.bf16 %v295_v39, %v295_v39  ;;  %v304_v50 = vpack.c.bf16 %v296_v36, %v296_v36 }
  0xed   :  { %v275_v41 = vadd.f32 %v274_v46, %v273_v43  ;;  %v283_v42 = vrot.slane %v282_v63, 1  ;;  %v290_v51 = vrot.slane %v289_v37, 2  ;;  %v305_v38 = vpack.c.bf16 %v297_v28, %v297_v28 }
  0xee   :  { %v299_v56 = vmul.f32 0.0625, %v266_v49  ;;  %v306_v34 = vpack.c.bf16 %v298_v60, %v298_v60  ;;  %v330_v44 = vunpack.c.l.b16 %v303_v61  ;;  %v331_v45 = vunpack.c.l.b16 %v304_v50  ;;  %v1627_v61 = vld [vmem:[#allocation11] ss:$0 sm:$0xff] }
  0xef   :  { %v300_v62 = vmul.f32 0.0625, %v275_v41  ;;  %v284_v0 = vadd.f32 %v283_v42, %v282_v63  ;;  %v291_v53 = vadd.f32 %v290_v51, %v289_v37  ;;  %v332_v54 = vunpack.c.l.b16 %v305_v38 }
  0xf0   :  { %v307_v47 = vpack.c.bf16 %v299_v56, %v299_v56  ;;  %v333_v57 = vunpack.c.l.b16 %v306_v34  ;;  %v339_v58 = vsel %vm338_vm2, %v331_v45, %v330_v44 }
  0xf1   :  { %v308_v40 = vpack.c.bf16 %v300_v62, %v300_v62  ;;  %v292_v46 = vrot.slane %v291_v53, 1  ;;  %v301_v39 = vmul.f32 0.0625, %v284_v0  ;;  %v341_v59 = vsel %vm340_vm3, %v332_v54, %v339_v58 }
  0xf2   :  { %v334_v36 = vunpack.c.l.b16 %v307_v47  ;;  %v343_v28 = vsel %vm342_vm4, %v333_v57, %v341_v59 }
  0xf3   :  { %v335_v35 = vunpack.c.l.b16 %v308_v40  ;;  %v293_v32 = vadd.f32 %v292_v46, %v291_v53  ;;  %v309_v43 = vpack.c.bf16 %v301_v39, %v301_v39 }
  0xf4   :  { %v345_v37 = vsel %vm344_vm5, %v334_v36, %v343_v28 }
  0xf5   :  { %v302_v48 = vmul.f32 0.0625, %v293_v32  ;;  %v336_v55 = vunpack.c.l.b16 %v309_v43  ;;  %v347_v52 = vsel %vm346_vm6, %v335_v35, %v345_v37 }
  0xf7   :  { %v310_v1 = vpack.c.bf16 %v302_v48, %v302_v48  ;;  %v349_v49 = vsel %vm348_vm7, %v336_v55, %v347_v52 }
  0xf9   :  { %v337_v63 = vunpack.c.l.b16 %v310_v1 }
  0xfb   :  { %v351_v41 = vsel %vm350_vm8, %v337_v63, %v349_v49 }
  0xfc   :  { %v352_v60 = vpack.c.b16 %v351_v41, %v351_v41 }
  0xfe   :  { %1665 = vmatmul.mubr.msk.bf16.vlgmr.msra.gmra.mrb[0].mxu0 %vm221_vm1, %v352_v60 }
 0x1d1   :  { %v402_v50 = vpop.f32.mrb[0].mxu0 }
 0x1d2   :  { %v403_v42 = vadd.f32 %v1627_v61, %v402_v50   ;;  %v1666_v51 = vpop.f32.mrb[1].mxu0 }
 0x1d3   :  { %v405_v56 = vpop.f32.mrb[2].mxu0 }
 0x1d4   :  { %v1667_v38 = vpop.f32.mrb[3].mxu0  ;;  %v3078_v62 = vmov %v403_v42 }
 0x1d5 LB: > { %v1632_v34 = vcombine.high %v2411_v18, %v2413_v19  ;;  %v1631_v44 = vcombine.low %v2411_v18, %v2413_v19  ;;  %v1634_v45 = vcombine.high %v2415_v20, %v2417_v21  ;;  %v2123_v0 = vmov 0   ;;  %v3079_v2 = vld [vmem:[#allocation32_spill] sm:$0xff]  ;;  %v3080_v3 = vld [vmem:[#allocation33_spill] sm:$0xff]  ;;  %v3081_v4 = vld [vmem:[#allocation34_spill] sm:$0xff]  ;;  %s2125_s17 = smov 96   ;;  %s1639_s10 = sshll.u32 %s2104_s11, 3  ;;  %s2104_s11 = sphi %s2519_s11, %s429_s11   ;;  %v2100_v42 = vphi %v403_v42, %v1570_v42   ;;  %v2096_v62 = vphi %v3078_v62, %v1467_v62  }
 0x1d6   : > { %488 = vmatprep.mubr.bf16.mxu0 %v2123_v0  ;;  %v1633_v53 = vcombine.low %v2415_v20, %v2417_v21  ;;  %1736 = vset.pattern.permute.xlu0 %v2123_v0  ;;  %v432_v47 = vpack.c.bf16 %v2100_v42, %v2100_v42  ;;  %v2124_v54 = vmov 1966171168   ;;  %v509_v57 = vlaneseq  ;;  %v3082_v5 = vld [vmem:[#allocation35_spill] sm:$0xff]  ;;  %v3083_v6 = vld [vmem:[#allocation36_spill] sm:$0xff]  ;;  %v3084_v7 = vld [vmem:[#allocation37_spill] sm:$0xff]  ;;  %s1288_s8 = scalar_lea.vmem [#allocation8], %s1639_s10 }
 0x1d7   : > { %456 = vmatprep.subr.bf16.mxu0 %v1632_v34  ;;  %1737 = vset.pattern.permute.xlu1 %v2123_v0  ;;  %v507_v40 = vunpack.c.l.s4 %v2124_v54  ;;  %v3085_v10 = vld [vmem:[#allocation40_spill] sm:$0xff]  ;;  %v3086_v11 = vld [vmem:[#allocation41_spill] sm:$0xff]  ;;  %v3087_v8 = vld [vmem:[#allocation38_spill] sm:$0xff]  ;;  %vm748_vm9 = vcmask 130112   ;;  %vm821_vm10 = vcmask 130048   ;;  %vm2127_vm11 = vmmov 0  }
 0x1d8   : > { %457 = vmatpush1.bf16.msra.mxu0 %v1631_v44  ;;  %v2538_v46 = vshrl.u32 %v509_v57, 7  ;;  %v3088_v9 = vld [vmem:[#allocation39_spill] sm:$0xff]  ;;  %v3089_v12 = vld [vmem:[#allocation42_spill] sm:$0xff]  ;;  %v3091_v14 = vld [vmem:[#allocation44_spill] sm:$0xff]  ;;  %s1566_s18 = scalar_lea.vmem [#allocation22], %s1639_s10  ;;  %vm1439_vm12 = vcmask 785408  }
 0x1d9   : > { %458 = vmatprep.subr.bf16.mxu0 %v1634_v45  ;;  %v508_v58 = vunpack.c.0.s8 %v507_v40  ;;  %v3090_v13 = vld [vmem:[#allocation43_spill] sm:$0xff]  ;;  %s2128_s23 = smov 64   ;;  %s2129_s26 = smov 32   ;;  %vm1483_vm13 = vcmask 257024  }
 0x1da   : > { %v2548_v48 = vsub.s32 0, %v2538_v46  ;;  %s1649_s2 = sshll.u32 %s2104_s11, 2  ;;  %s429_s11 = sadd.s32 1, %s2104_s11  }
 0x1db   : > { %v511_v39 = vsub.s32 %v508_v58, %v2538_v46  ;;  %s1482_s19 = scalar_lea.vmem [#allocation21], %s1649_s2  ;;  %p426_p4 = scmp.ge.s32.totalorder %s429_s11, 8  }
 0x1dc   : > { %459 = vmatpush1.bf16.msra.mxu0 %v1633_v53  ;;  %s2130_s7 = smov (%p426_p4), [#allocation21]   ;;  %s2131_s24 = smov (%p426_p4), [#allocation22]  }
 0x1dd   :  { %s1577_s6 = sshll.u32 (%p426_p4), %s2130_s7, 4  ;;  %s1589_s27 = sshll.u32 (%p426_p4), %s2131_s24, 4  ;;  %s1578_s6 = int_to_ptr.vmem [resolvable:$true] %s1577_s6  ;;  %s2973_s27 = int_to_ptr.vmem [resolvable:$true] %s1589_s27 }
 0x1de   :  { %s2022_s14 = scalar_lea.vmem (%p426_p4), %s1578_s6, 512  ;;  %p2027_p6 = scmp.lt.s32.totalorder (%p426_p4), %s1578_s6, %s1578_s6 }
 0x1df   : > { %1635 = vmatmul.mubr.msk.bf16.vlgmr.msra.gmra.mrb[0].mxu0 %vm221_vm1, %v432_v47  ;;  %p2023_p5 = scmp.ne.s32.totalorder (%p426_p4), %s1578_s6, %s2022_s14  ;;  %p2028_p7 = scmp.lt.s32.totalorder (%p426_p4), %s2022_s14, %s2022_s14 }
 0x1e1   :  { %p2029_p8 = por (%p426_p4), %p2028_p7, %p2027_p6 }
 0x1e3   :  { %p2030_p9 = pnand (%p426_p4), %p2029_p8, %p2023_p5 }
 0x2b2   : > { %v2541_v36 = vpop.f32.mrb[0].mxu0 }
 0x2b3   : > { %v503_v59 = vadd.f32 %v2435_v30, %v2541_v36  ;;  %v2545_v35 = vpop.f32.mrb[1].mxu0 }
 0x2b4   : > { %v494_v28 = vpop.f32.mrb[2].mxu0 }
 0x2b5   : > { %v505_v32 = vcombine.high %v503_v59, %v503_v59  ;;  %v512_v43 = vrot.slane %v503_v59, %v511_v39  ;;  %v495_v37 = vpop.f32.mrb[3].mxu0 }
 0x2b7   : > { %v519_v55 = vrot.slane %v505_v32, %v511_v39  ;;  %v520_v52 = vcombine.high %v512_v43, %v512_v43  ;;  %v528_v1 = vrot.slane %v512_v43, %v511_v39 }
 0x2b9   : > { %v557_v49 = vrot.slane %v528_v1, %v2548_v48  ;;  %v542_v63 = vrot.slane %v520_v52, %v511_v39  ;;  %v550_v41 = vcombine.high %v528_v1, %v528_v1  ;;  %v535_v60 = vrot.slane %v519_v55, %v511_v39 }
 0x2ba   : > { %v521_v56 = vcombine.high %v519_v55, %v519_v55 }
 0x2bb   : > { %v594_v61 = vadd.f32 %v557_v49, %v3079_v2  ;;  %v561_v50 = vrot.slane %v542_v63, %v2548_v48  ;;  %v595_v42 = vadd.f32 %v557_v49, %v3080_v3  ;;  %v565_v51 = vrot.slane %v550_v41, %v2548_v48 }
 0x2bc   : > { %v573_v38 = vrot.slane %v535_v60, %v2548_v48  ;;  %v552_v47 = vcombine.high %v542_v63, %v542_v63  ;;  %v549_v52 = vrot.slane %v521_v56, %v511_v39  ;;  %v551_v56 = vcombine.high %v535_v60, %v535_v60 }
 0x2bd   : > { %v610_v34 = vmax.f32 %v594_v61, 0.0  ;;  %v596_v44 = vadd.f32 %v561_v50, %v3081_v4  ;;  %v611_v45 = vmax.f32 %v595_v42, 0.0  ;;  %v597_v0 = vadd.f32 %v561_v50, %v3082_v5 }
 0x2be   : > { %v598_v53 = vadd.f32 %v565_v51, %v3083_v6  ;;  %v599_v59 = vadd.f32 %v565_v51, %v3084_v7  ;;  %v602_v32 = vadd.f32 %v573_v38, %v3085_v10  ;;  %v603_v1 = vadd.f32 %v573_v38, %v3086_v11 }
 0x2bf   : > { %v632_v54 = vmul.f32 %v2441_v33, %v610_v34  ;;  %v612_v40 = vmax.f32 %v596_v44, 0.0  ;;  %v613_v58 = vmax.f32 %v597_v0, 0.0  ;;  %v633_v55 = vmul.f32 %v2441_v33, %v611_v45 }
 0x2c0   : > { %v614_v28 = vmax.f32 %v598_v53, 0.0  ;;  %v615_v41 = vmax.f32 %v599_v59, 0.0  ;;  %v569_v61 = vrot.slane %v552_v47, %v2548_v48  ;;  %v618_v42 = vmax.f32 %v602_v32, 0.0 }
 0x2c1   : > { %v648_v43 = vsel %vm221_vm1, %v632_v54, 0.0  ;;  %v634_v37 = vmul.f32 %v2441_v33, %v612_v40  ;;  %v635_v63 = vmul.f32 %v2441_v33, %v613_v58  ;;  %v651_v51 = vsel %vm221_vm1, %v633_v55, 0.0 }
 0x2c2   : > { %649 = vadd.xlane.f32.xlu0 %v648_v43  ;;  %v636_v50 = vmul.f32 %v2441_v33, %v614_v28  ;;  %v600_v34 = vadd.f32 %v569_v61, %v3087_v8  ;;  %v577_v39 = vrot.slane %v549_v52, %v2548_v48  ;;  %v637_v44 = vmul.f32 %v2441_v33, %v615_v41 }
 0x2c3   : > { %v654_v49 = vsel %vm221_vm1, %v634_v37, 0.0  ;;  %v657_v38 = vsel %vm221_vm1, %v635_v63, 0.0  ;;  %v619_v45 = vmax.f32 %v603_v1, 0.0  ;;  %v601_v0 = vadd.f32 %v569_v61, %v3088_v9 }
 0x2c4   : > { %655 = vadd.xlane.f32.xlu1 %v654_v49  ;;  %v660_v53 = vsel %vm221_vm1, %v636_v50, 0.0  ;;  %v640_v47 = vmul.f32 %v2441_v33, %v618_v42  ;;  %v616_v54 = vmax.f32 %v600_v34, 0.0  ;;  %v604_v40 = vadd.f32 %v577_v39, %v3089_v12 }
 0x2c5   : > { %v581_v58 = vrot.slane %v551_v56, %v2548_v48  ;;  %v553_v59 = vcombine.high %v549_v52, %v549_v52  ;;  %v663_v60 = vsel %vm221_vm1, %v637_v44, 0.0  ;;  %v641_v28 = vmul.f32 %v2441_v33, %v619_v45 }
 0x2c6   : > { %652 = vadd.xlane.f32.xlu0 %v651_v51  ;;  %v617_v32 = vmax.f32 %v601_v0, 0.0  ;;  %v605_v43 = vadd.f32 %v577_v39, %v3090_v13  ;;  %v672_v37 = vsel %vm221_vm1, %v640_v47, 0.0  ;;  %v638_v55 = vmul.f32 %v2441_v33, %v616_v54 }
 0x2c7   : > { %v620_v1 = vmax.f32 %v604_v40, 0.0  ;;  %v606_v49 = vadd.f32 %v581_v58, %v3091_v14  ;;  %v585_v63 = vrot.slane %v553_v59, %v2548_v48  ;;  %v675_v52 = vsel %vm221_vm1, %v641_v28, 0.0 }
 0x2c8   : > { %658 = vadd.xlane.f32.xlu1 %v657_v38  ;;  %v639_v41 = vmul.f32 %v2441_v33, %v617_v32  ;;  %v621_v61 = vmax.f32 %v605_v43, 0.0  ;;  %v607_v50 = vadd.f32 %v581_v58, %v2405_v15  ;;  %v666_v42 = vsel %vm221_vm1, %v638_v55, 0.0 }
 0x2c9   : > { %v642_v51 = vmul.f32 %v2441_v33, %v620_v1  ;;  %v622_v34 = vmax.f32 %v606_v49, 0.0  ;;  %v608_v39 = vadd.f32 %v585_v63, %v2407_v16  ;;  %v609_v45 = vadd.f32 %v585_v63, %v2409_v17 }
 0x2ca   : > { %661 = vadd.xlane.f32.xlu0 %v660_v53  ;;  %v669_v56 = vsel %vm221_vm1, %v639_v41, 0.0  ;;  %v643_v38 = vmul.f32 %v2441_v33, %v621_v61  ;;  %v623_v44 = vmax.f32 %v607_v50, 0.0 }
 0x2cb   : > { %v678_v0 = vsel %vm221_vm1, %v642_v51, 0.0  ;;  %v644_v53 = vmul.f32 %v2441_v33, %v622_v34  ;;  %v624_v47 = vmax.f32 %v608_v39, 0.0  ;;  %v625_v58 = vmax.f32 %v609_v45, 0.0 }
 0x2cc   : > { %664 = vadd.xlane.f32.xlu1 %v663_v60  ;;  %v681_v54 = vsel %vm221_vm1, %v643_v38, 0.0  ;;  %v645_v40 = vmul.f32 %v2441_v33, %v623_v44 }
 0x2cd   : > { %v684_v59 = vsel %vm221_vm1, %v644_v53, 0.0  ;;  %v646_v60 = vmul.f32 %v2441_v33, %v624_v47  ;;  %v647_v32 = vmul.f32 %v2441_v33, %v625_v58 }
 0x2ce   : > { %673 = vadd.xlane.f32.xlu0 %v672_v37  ;;  %v687_v28 = vsel %vm221_vm1, %v645_v40, 0.0 }
 0x2cf   : > { %v690_v43 = vsel %vm221_vm1, %v646_v60, 0.0  ;;  %v693_v37 = vsel %vm221_vm1, %v647_v32, 0.0 }
 0x2d0   : > { %676 = vadd.xlane.f32.xlu1 %v675_v52 }
 0x2d2   : > { %667 = vadd.xlane.f32.xlu0 %v666_v42 }
 0x2d4   : > { %670 = vadd.xlane.f32.xlu1 %v669_v56  ;;  %v738_v56 = vand.u32 127, %v509_v57 }
 0x2d6   : > { %679 = vadd.xlane.f32.xlu0 %v678_v0  ;;  %v743_v44 = vadd.s32 4294967288, %v738_v56  ;;  %v2609_v53 = vsub.s32 %v738_v56, %v2538_v46 }
 0x2d8   : > { %682 = vadd.xlane.f32.xlu1 %v681_v54  ;;  %v2612_v47 = vsub.s32 %v743_v44, %v2538_v46 }
 0x2da   : > { %685 = vadd.xlane.f32.xlu0 %v684_v59 }
 0x2dc   : > { %688 = vadd.xlane.f32.xlu1 %v687_v28 }
 0x2de   : > { %691 = vadd.xlane.f32.xlu0 %v690_v43 }
 0x2e0   : > { %694 = vadd.xlane.f32.xlu1 %v693_v37 }
 0x2f4   : > { %702 = vperm.xlu0 %1736, %v2437_v31  }
 0x34f   : > { %v650_v55 = vpop.xlane.xlu0 %649 }
 0x351   : > { %v656_v1 = vpop.xlane.xlu1 %655 }
 0x353   : > { %v653_v49 = vpop.xlane.xlu0 %652 }
 0x355   : > { %v659_v63 = vpop.xlane.xlu1 %658 }
 0x357   : > { %v662_v52 = vpop.xlane.xlu0 %661 }
 0x359   : > { %v665_v41 = vpop.xlane.xlu1 %664 }
 0x35b   : > { %v674_v61 = vpop.xlane.xlu0 %673 }
 0x35d   : > { %v677_v42 = vpop.xlane.xlu1 %676 }
 0x35f   : > { %v668_v50 = vpop.xlane.xlu0 %667 }
 0x361   : > { %v671_v34 = vpop.xlane.xlu1 %670 }
 0x363   : > { %v680_v51 = vpop.xlane.xlu0 %679 }
 0x365   : > { %v683_v38 = vpop.xlane.xlu1 %682 }
 0x367   : > { %v686_v39 = vpop.xlane.xlu0 %685 }
 0x369   : > { %v689_v0 = vpop.xlane.xlu1 %688 }
 0x36b   : > { %v692_v45 = vpop.xlane.xlu0 %691 }
 0x373   : > { %v703_v54 = vpop.permute.xlu0 %702 }
 0x374   : > { %v705_v40 = vadd.f32 %v703_v54, %v650_v55  ;;  %v2614_v58 = vadd.f32 %v703_v54, %v653_v49  ;;  %v2616_v59 = vadd.f32 %v703_v54, %v656_v1  ;;  %v2618_v60 = vadd.f32 %v703_v54, %v659_v63 }
 0x375   : > { %v2620_v28 = vadd.f32 %v703_v54, %v662_v52  ;;  %v2622_v57 = vadd.f32 %v703_v54, %v665_v41  ;;  %v2624_v32 = vadd.f32 %v703_v54, %v668_v50  ;;  %v2626_v43 = vadd.f32 %v703_v54, %v671_v34  ;;  %v695_v52 = vpop.xlane.xlu1 %694 }
 0x376   : > { %v2628_v37 = vadd.f32 %v703_v54, %v674_v61  ;;  %v2630_v56 = vadd.f32 %v703_v54, %v677_v42  ;;  %v2632_v55 = vadd.f32 %v703_v54, %v680_v51  ;;  %v2634_v49 = vadd.f32 %v703_v54, %v683_v38 }
 0x377   : > { %v2636_v1 = vadd.f32 %v703_v54, %v686_v39  ;;  %v2638_v63 = vadd.f32 %v703_v54, %v689_v0  ;;  %v742_v41 = vrot.slane %v705_v40, %v2609_v53  ;;  %v747_v50 = vrot.slane %v2614_v58, %v2612_v47 }
 0x378   : > { %v753_v61 = vrot.slane %v2616_v59, %v2609_v53  ;;  %v757_v42 = vrot.slane %v2618_v60, %v2612_v47  ;;  %v2647_v51 = vadd.f32 %v703_v54, %v692_v45  ;;  %v2649_v34 = vadd.f32 %v703_v54, %v695_v52 }
 0x379   : > { %v762_v39 = vrot.slane %v2620_v28, %v2609_v53  ;;  %v766_v38 = vrot.slane %v2622_v57, %v2612_v47  ;;  %v749_v44 = vsel %vm748_vm9, %v747_v50, %v742_v41  ;;  %v771_v2 = vrot.slane %v2624_v32, %v2609_v53 }
 0x37a   : > { %v758_v0 = vsel %vm748_vm9, %v757_v42, %v753_v61  ;;  %v775_v3 = vrot.slane %v2626_v43, %v2612_v47  ;;  %v780_v54 = vrot.slane %v2628_v37, %v2609_v53  ;;  %v784_v52 = vrot.slane %v2630_v56, %v2612_v47 }
 0x37b   : > { %v767_v45 = vsel %vm748_vm9, %v766_v38, %v762_v39  ;;  %v789_v4 = vrot.slane %v2632_v55, %v2609_v53  ;;  %v793_v41 = vrot.slane %v2634_v49, %v2612_v47  ;;  %v798_v50 = vrot.slane %v2636_v1, %v2609_v53 }
 0x37c   : > { %v802_v61 = vrot.slane %v2638_v63, %v2612_v47  ;;  %v813_v42 = vsel %vm338_vm2, %v758_v0, %v749_v44  ;;  %v776_v39 = vsel %vm748_vm9, %v775_v3, %v771_v2  ;;  %v807_v38 = vrot.slane %v2647_v51, %v2609_v53 }
 0x37d   : > { %v811_v5 = vrot.slane %v2649_v34, %v2612_v47  ;;  %v814_v6 = vsel %vm340_vm3, %v767_v45, %v813_v42  ;;  %v785_v7 = vsel %vm748_vm9, %v784_v52, %v780_v54  ;;  %v794_v9 = vsel %vm748_vm9, %v793_v41, %v789_v4 }
 0x37e   : > { %v815_v8 = vsel %vm342_vm4, %v776_v39, %v814_v6  ;;  %v803_v44 = vsel %vm748_vm9, %v802_v61, %v798_v50  ;;  %v3042_v6 = vsub.s32 3, %v2538_v46  ;;  %v3044_v4 = vsub.s32 1, %v2538_v46 }
 0x37f   : > { %v816_v10 = vsel %vm344_vm5, %v785_v7, %v815_v8  ;;  %v812_v3 = vsel %vm748_vm9, %v811_v5, %v807_v38  ;;  %v3041_v41 = vsub.s32 5, %v2538_v46  ;;  %v3040_v38 = vsub.s32 6, %v2538_v46 }
 0x380   : > { %v817_v2 = vsel %vm346_vm6, %v794_v9, %v816_v10  ;;  %v3046_v9 = vsub.s32 4, %v2538_v46 }
 0x381   : > { %v818_v0 = vsel %vm348_vm7, %v803_v44, %v817_v2 }
 0x382   : > { %v819_v11 = vsel %vm350_vm8, %v812_v3, %v818_v0 }
 0x383   : > { %v822_v45 = vsel %vm821_vm10, %v819_v11, -inf }
 0x384   : > { %823 = vmax.xlane.f32.xlu1 %v822_v45  ;;  %v3045_v45 = vsub.s32 7, %v2538_v46 }
 0x411   : > { %v824_v54 = vpop.xlane.xlu1 %823 }
 0x412   : > { %v829_v7 = vrot.slane %v824_v54, %v2548_v48  ;;  %v841_v5 = vrot.slane %v824_v54, %v3042_v6  ;;  %v833_v10 = vrot.slane %v824_v54, %v3044_v4  ;;  %v845_v50 = vrot.slane %v824_v54, %v3046_v9 }
 0x413   : > { %v849_v44 = vrot.slane %v824_v54, %v3041_v41 }
 0x414   : > { %v866_v8 = vsub.f32 %v705_v40, %v829_v7  ;;  %v867_v52 = vsub.f32 %v2614_v58, %v829_v7  ;;  %v873_v61 = vsub.f32 %v2626_v43, %v841_v5  ;;  %v3043_v40 = vsub.s32 2, %v2538_v46 }
 0x415   : > { %v868_v42 = vsub.f32 %v2616_v59, %v833_v10  ;;  %v875_v58 = vsub.f32 %v2630_v56, %v845_v50  ;;  %v869_v0 = vsub.f32 %v2618_v60, %v833_v10  ;;  %v853_v59 = vrot.slane %v824_v54, %v3040_v38 }
 0x416   : > { %v882_v11 = vmul.f32 1.442695, %v866_v8  ;;  %v884_v39 = vmul.f32 1.442695, %v867_v52  ;;  %v896_v2 = vmul.f32 1.442695, %v873_v61  ;;  %v837_v3 = vrot.slane %v824_v54, %v3043_v40 }
 0x417   : > { %v886_v43 = vmul.f32 1.442695, %v868_v42  ;;  %v877_v7 = vsub.f32 %v2634_v49, %v849_v44  ;;  %v900_v8 = vmul.f32 1.442695, %v875_v58  ;;  %v888_v56 = vmul.f32 1.442695, %v869_v0 }
 0x418   : > { %1738 = vpow2.f32 %v882_v11  ;;  %v870_v52 = vsub.f32 %v2620_v28, %v837_v3  ;;  %v857_v60 = vrot.slane %v824_v54, %v3045_v45  ;;  %v879_v10 = vsub.f32 %v2638_v63, %v853_v59 }
 0x419   : > { %1740 = vpow2.f32 %v884_v39  ;;  %v904_v61 = vmul.f32 1.442695, %v877_v7  ;;  %v871_v42 = vsub.f32 %v2622_v57, %v837_v3  ;;  %v872_v54 = vsub.f32 %v2624_v32, %v841_v5 }
 0x41a   : > { %1742 = vpow2.f32 %v896_v2  ;;  %v890_v49 = vmul.f32 1.442695, %v870_v52  ;;  %v881_v28 = vsub.f32 %v2649_v34, %v857_v60  ;;  %v908_v58 = vmul.f32 1.442695, %v879_v10 }
 0x41b   : > { %1744 = vpow2.f32 %v886_v43  ;;  %v892_v63 = vmul.f32 1.442695, %v871_v42  ;;  %v874_v34 = vsub.f32 %v2628_v37, %v845_v50  ;;  %v894_v3 = vmul.f32 1.442695, %v872_v54 }
 0x41c   : > { %1746 = vpow2.f32 %v900_v8  ;;  %v912_v57 = vmul.f32 1.442695, %v881_v28  ;;  %v876_v32 = vsub.f32 %v2632_v55, %v849_v44  ;;  %v878_v37 = vsub.f32 %v2636_v1, %v853_v59 }
 0x41d   : > { %1748 = vpow2.f32 %v888_v56  ;;  %v898_v5 = vmul.f32 1.442695, %v874_v34  ;;  %v880_v55 = vsub.f32 %v2647_v51, %v857_v60 }
 0x41e   : > { %1750 = vpow2.f32 %v904_v61  ;;  %v902_v50 = vmul.f32 1.442695, %v876_v32  ;;  %v906_v44 = vmul.f32 1.442695, %v878_v37 }
 0x41f   : > { %1752 = vpow2.f32 %v890_v49  ;;  %v910_v1 = vmul.f32 1.442695, %v880_v55 }
 0x420   : > { %1754 = vpow2.f32 %v908_v58 }
 0x421   : > { %1756 = vpow2.f32 %v892_v63 }
 0x422   : > { %v2718_v11 = vpop.eup %1738  ;;  %1758 = vpow2.f32 %v912_v57 }
 0x423   : > { %931 = vperm.xlu1 %1737, %v2718_v11   ;;  %v2725_v39 = vpop.eup %1740  ;;  %1760 = vpow2.f32 %v894_v3 }
 0x424   : > { %v2730_v2 = vpop.eup %1742  ;;  %1762 = vpow2.f32 %v898_v5 }
 0x425   : > { %v2732_v0 = vpop.eup %1744  ;;  %952 = vperm.xlu0 %1736, %v2730_v2   ;;  %1764 = vpow2.f32 %v902_v50 }
 0x426   : > { %v2737_v43 = vpop.eup %1746  ;;  %1766 = vpow2.f32 %v906_v44 }
 0x427   : > { %934 = vperm.xlu1 %1737, %v2725_v39   ;;  %v2739_v7 = vpop.eup %1748  ;;  %1768 = vpow2.f32 %v910_v1 }
 0x428   : > { %v2744_v8 = vpop.eup %1750 }
 0x429   : > { %958 = vperm.xlu0 %1736, %v2737_v43   ;;  %v2746_v52 = vpop.eup %1752 }
 0x42a   : > { %v2751_v56 = vpop.eup %1754 }
 0x42b   : > { %937 = vperm.xlu1 %1737, %v2732_v0   ;;  %v2753_v10 = vpop.eup %1756 }
 0x42c   : > { %v2758_v61 = vpop.eup %1758 }
 0x42d   : > { %964 = vperm.xlu0 %1736, %v2744_v8   ;;  %v2760_v42 = vpop.eup %1760 }
 0x42e   : > { %v2764_v59 = vpop.eup %1762 }
 0x42f   : > { %940 = vperm.xlu1 %1737, %v2739_v7   ;;  %v2767_v49 = vpop.eup %1764 }
 0x430   : > { %v2770_v51 = vpop.eup %1766 }
 0x431   : > { %970 = vperm.xlu0 %1736, %v2751_v56   ;;  %v1769_v60 = vpop.eup %1768 }
 0x433   : > { %943 = vperm.xlu1 %1737, %v2746_v52  }
 0x435   : > { %976 = vperm.xlu0 %1736, %v2758_v61  }
 0x437   : > { %946 = vperm.xlu1 %1737, %v2753_v10  }
 0x43b   : > { %949 = vperm.xlu1 %1737, %v2760_v42  }
 0x43f   : > { %955 = vperm.xlu1 %1737, %v2764_v59  }
 0x443   : > { %961 = vperm.xlu1 %1737, %v2767_v49  }
 0x447   : > { %967 = vperm.xlu1 %1737, %v2770_v51  }
 0x44b   : > { %973 = vperm.xlu1 %1737, %v1769_v60  }
 0x4a2   : > { %v932_v28 = vpop.permute.xlu1 %931 }
 0x4a3   : > { %v981_v12 = vrot.slane %v932_v28, %v2609_v53 }
 0x4a4   : > { %v953_v57 = vpop.permute.xlu0 %952 }
 0x4a5   : > { %v1012_v9 = vrot.slane %v953_v57, %v2612_v47 }
 0x4a6   : > { %v935_v58 = vpop.permute.xlu1 %934 }
 0x4a7   : > { %v985_v41 = vrot.slane %v935_v58, %v2612_v47 }
 0x4a8   : > { %v959_v3 = vpop.permute.xlu0 %958 }
 0x4aa   : > { %v938_v54 = vpop.permute.xlu1 %937 }
 0x4ab   : > { %v990_v6 = vrot.slane %v938_v54, %v2609_v53  ;;  %v986_v54 = vsel %vm748_vm9, %v985_v41, %v981_v12 }
 0x4ac   : > { %v965_v37 = vpop.permute.xlu0 %964 }
 0x4ae   : > { %v941_v63 = vpop.permute.xlu1 %940 }
 0x4af   : > { %v994_v55 = vrot.slane %v941_v63, %v2612_v47 }
 0x4b0   : > { %v971_v44 = vpop.permute.xlu0 %970 }
 0x4b1   : > { %v995_v63 = vsel %vm748_vm9, %v994_v55, %v990_v6  ;;  %v1039_v57 = vrot.slane %v971_v44, %v2612_v47 }
 0x4b2   : > { %v944_v34 = vpop.permute.xlu1 %943  ;;  %v1050_v28 = vsel %vm338_vm2, %v995_v63, %v986_v54 }
 0x4b3   : > { %v999_v4 = vrot.slane %v944_v34, %v2609_v53 }
 0x4b4   : > { %v977_v6 = vpop.permute.xlu0 %976 }
 0x4b6   : > { %v947_v32 = vpop.permute.xlu1 %946 }
 0x4b7   : > { %v1003_v1 = vrot.slane %v947_v32, %v2612_v47  ;;  %v1021_v32 = vrot.slane %v959_v3, %v2612_v47 }
 0x4b9   : > { %v1004_v58 = vsel %vm748_vm9, %v1003_v1, %v999_v4 }
 0x4ba   : > { %v950_v5 = vpop.permute.xlu1 %949  ;;  %v1051_v3 = vsel %vm340_vm3, %v1004_v58, %v1050_v28  ;;  %v3092_v58 = vsub.s32 4, %v2538_v46 }
 0x4bb   : > { %v1008_v40 = vrot.slane %v950_v5, %v2609_v53  ;;  %v1030_v5 = vrot.slane %v965_v37, %v2612_v47 }
 0x4bd   : > { %v1013_v34 = vsel %vm748_vm9, %v1012_v9, %v1008_v40  ;;  %v1048_v9 = vrot.slane %v977_v6, %v2612_v47 }
 0x4be   : > { %v956_v50 = vpop.permute.xlu1 %955  ;;  %v1052_v41 = vsel %vm342_vm4, %v1013_v34, %v1051_v3  ;;  %v3094_v3 = vsub.s32 1, %v2538_v46 }
 0x4bf   : > { %v1017_v45 = vrot.slane %v956_v50, %v2609_v53 }
 0x4c2   : > { %v962_v38 = vpop.permute.xlu1 %961 }
 0x4c3   : > { %v1026_v13 = vrot.slane %v962_v38, %v2609_v53  ;;  %v1022_v38 = vsel %vm748_vm9, %v1021_v32, %v1017_v45 }
 0x4c4   : > { %v1053_v40 = vsel %vm344_vm5, %v1022_v38, %v1052_v41 }
 0x4c5   : > { %v1031_v4 = vsel %vm748_vm9, %v1030_v5, %v1026_v13 }
 0x4c6   : > { %v968_v14 = vpop.permute.xlu1 %967  ;;  %v1054_v37 = vsel %vm346_vm6, %v1031_v4, %v1053_v40  ;;  %v3098_v40 = vsub.s32 6, %v2538_v46 }
 0x4c7   : > { %v1035_v50 = vrot.slane %v968_v14, %v2609_v53 }
 0x4c9   : > { %v1040_v12 = vsel %vm748_vm9, %v1039_v57, %v1035_v50  ;;  %v3093_v57 = vsub.s32 7, %v2538_v46 }
 0x4ca   : > { %v974_v55 = vpop.permute.xlu1 %973  ;;  %v1055_v45 = vsel %vm348_vm7, %v1040_v12, %v1054_v37  ;;  %v3096_v12 = vsub.s32 3, %v2538_v46 }
 0x4cb   : > { %v1044_v14 = vrot.slane %v974_v55, %v2609_v53 }
 0x4cd   : > { %v1049_v44 = vsel %vm748_vm9, %v1048_v9, %v1044_v14  ;;  %v3097_v9 = vsub.s32 5, %v2538_v46 }
 0x4ce   : > { %v1056_v1 = vsel %vm350_vm8, %v1049_v44, %v1055_v45 }
 0x4cf   : > { %v1058_v13 = vsel %vm821_vm10, %v1056_v1, 0.0 }
 0x4d0   : > { %1059 = vadd.xlane.f32.xlu1 %v1058_v13 }
 0x55d   : > { %v1060_v63 = vpop.xlane.xlu1 %1059 }
 0x55e   : > { %1770 = vrcp.f32 %v1060_v63 }
 0x568   : > { %v1771_v32 = vpop.eup %1770 }
 0x569   : > { %v1082_v54 = vrot.slane %v1771_v32, %v3092_v58  ;;  %v1066_v5 = vrot.slane %v1771_v32, %v2548_v48  ;;  %v1094_v28 = vrot.slane %v1771_v32, %v3093_v57  ;;  %v1070_v4 = vrot.slane %v1771_v32, %v3094_v3  ;;  %v3100_v58 = vld [vmem:[#allocation48_spill] sm:$0xff]  ;;  %v3102_v57 = vld [vmem:[#allocation50_spill] sm:$0xff] }
 0x56a   : > { %v1078_v41 = vrot.slane %v1771_v32, %v3096_v12  ;;  %v1086_v14 = vrot.slane %v1771_v32, %v3097_v9  ;;  %v1090_v37 = vrot.slane %v1771_v32, %v3098_v40  ;;  %v3106_v9 = vld [vmem:[#allocation53_spill] sm:$0xff] }
 0x56b   : > { %v1112_v34 = vmul.f32 %v2737_v43, %v1082_v54  ;;  %v1103_v50 = vmul.f32 %v2718_v11, %v1066_v5  ;;  %v1117_v6 = vmul.f32 %v1769_v60, %v1094_v28  ;;  %v1104_v38 = vmul.f32 %v2725_v39, %v1066_v5 }
 0x56c   : > { %v1105_v55 = vmul.f32 %v2732_v0, %v1070_v4  ;;  %v1106_v48 = vmul.f32 %v2739_v7, %v1070_v4  ;;  %v3095_v11 = vsub.s32 2, %v2538_v46  ;;  %v1109_v0 = vmul.f32 %v2760_v42, %v1078_v41 }
 0x56d   : > { %1166 = vperm.xlu1 %1737, %v1112_v34   ;;  %1121 = vperm.xlu0 %1736, %v1103_v50   ;;  %v1111_v7 = vmul.f32 %v2764_v59, %v1082_v54  ;;  %v1115_v42 = vmul.f32 %v2770_v51, %v1090_v37  ;;  %v1118_v59 = vmul.f32 %v2758_v61, %v1094_v28  ;;  %v3099_v61 = vld [vmem:[#allocation45_spill] sm:$0xff]  ;;  %v3101_v34 = vld [vmem:[#allocation47_spill] sm:$0xff] }
 0x56e   : > { %v1074_v43 = vrot.slane %v1771_v32, %v3095_v11  ;;  %v1640_v46 = vcombine.low %v2427_v26, %v2429_v27  ;;  %v1641_v51 = vcombine.low %v3099_v61, %v2433_v29 }
 0x570   : > { %v1107_v60 = vmul.f32 %v2746_v52, %v1074_v43  ;;  %v1108_v39 = vmul.f32 %v2753_v10, %v1074_v43  ;;  %v1113_v52 = vmul.f32 %v2767_v49, %v1086_v14  ;;  %v1114_v10 = vmul.f32 %v2744_v8, %v1086_v14  ;;  %v3104_v43 = vld [vmem:[#allocation52_spill] sm:$0xff] }
 0x571   : > { %1191 = vperm.xlu1 %1737, %v1117_v6   ;;  %1126 = vperm.xlu0 %1736, %v1104_v38   ;;  %v1643_v8 = vcombine.low %v2419_v22, %v2421_v23  ;;  %v2126_v49 = vmov 0.0   ;;  %v3103_v38 = vld [vmem:[#allocation49_spill] sm:$0xff] }
 0x572   : > { %1676 = vmatprep.subr.bf16.mxu0 %v2126_v49  ;;  %1668 = vmatprep.subr.bf16.mxu1 %v2126_v49 }
 0x573   : > { %1677 = vmatpush3.bf16.msra.mxu0 %v1643_v8  ;;  %1669 = vmatpush3.bf16.msra.mxu1 %v1640_v46 }
 0x574   : > { %1678 = vmatprep.subr.bf16.mxu0 %v2126_v49  ;;  %1670 = vmatprep.subr.bf16.mxu1 %v2126_v49 }
 0x575   : > { %1435 = vrot.lane.b32.xlu1 %v2541_v36, %s2125_s17  ;;  %1131 = vperm.xlu0 %1736, %v1105_v55   ;;  %v1110_v36 = vmul.f32 %v2730_v2, %v1078_v41  ;;  %v1116_v2 = vmul.f32 %v2751_v56, %v1090_v37  ;;  %v1644_v56 = vcombine.low %v2423_v24, %v2425_v25 }
 0x576   : > { %1680 = vmatprep.mubr.msk.bf16.mxu0 %vm2127_vm11, %v2126_v49  ;;  %1672 = vmatprep.mubr.msk.bf16.mxu1 %vm2127_vm11, %v2126_v49 }
 0x577   : > { %1679 = vmatpush3.bf16.msra.mxu0 %v1644_v56  ;;  %1671 = vmatpush3.bf16.msra.mxu1 %v1641_v51  ;;  %v3109_v51 = vld [vmem:[#allocation55_spill] sm:$0xff] }
 0x579   : > { %1136 = vperm.xlu0 %1736, %v1106_v48  }
 0x57d   : > { %1141 = vperm.xlu0 %1736, %v1107_v60  }
 0x581   : > { %1146 = vperm.xlu0 %1736, %v1108_v39  }
 0x585   : > { %1151 = vperm.xlu0 %1736, %v1109_v0   ;;  %v3105_v0 = vld [vmem:[#allocation51_spill] sm:$0xff] }
 0x589   : > { %1156 = vperm.xlu0 %1736, %v1110_v36  }
 0x58d   : > { %1161 = vperm.xlu0 %1736, %v1111_v7  }
 0x591   : > { %1171 = vperm.xlu0 %1736, %v1113_v52   ;;  %v3107_v52 = vld [vmem:[#allocation54_spill] sm:$0xff] }
 0x595   : > { %1176 = vperm.xlu0 %1736, %v1114_v10  }
 0x599   : > { %1181 = vperm.xlu0 %1736, %v1115_v42   ;;  %v3108_v42 = vld [vmem:[#allocation56_spill] sm:$0xff] }
 0x59d   : > { %1186 = vperm.xlu0 %1736, %v1116_v2  }
 0x5a1   : > { %1196 = vperm.xlu0 %1736, %v1118_v59  }
 0x5a5   : > { %1437 = vrot.lane.b32.xlu0 %v2545_v35, %s2125_s17  ;;  %v1289_v35 = vld [vmem:[%s1288_s8] sm:$0xff] }
 0x5a6   : > { %v1290_v44 = vpack.c.bf16 %v1289_v35, %v1289_v35 }
 0x5a8   : > { %1681 = vmatmul.mubr.msk.bf16.vlgmr.msra.gmra.mrb[4].mxu0 %vm221_vm1, %v1290_v44 }
 0x5ec   : > { %v2849_v45 = vpop.permute.xlu0 %1121  ;;  %v2871_v12 = vpop.permute.xlu1 %1166 }
 0x5ed   : > { %v1199_v50 = vmul.f32 %v2849_v45, %v3101_v34  ;;  %v1208_v2 = vmul.f32 %v2871_v12, %v3108_v42 }
 0x5ef   : > { %v1215_v55 = vsel %vm221_vm1, %v1199_v50, 0.0 }
 0x5f0   : > { %v2851_v1 = vpop.permute.xlu0 %1126 }
 0x5f1   : > { %v1200_v54 = vmul.f32 %v2851_v1, %v3100_v58 }
 0x5f3   : > { %v1216_v6 = vsel %vm221_vm1, %v1200_v54, 0.0  ;;  %v1252_v54 = vsel %vm221_vm1, %v1208_v2, 0.0 }
 0x5f4   : > { %v1132_v13 = vpop.permute.xlu0 %1131  ;;  %v1217_v11 = vadd.f32 %v1216_v6, %v1215_v55 }
 0x5f5   : > { %v1201_v3 = vmul.f32 %v1132_v13, %v3103_v38  ;;  %v2893_v38 = vpop.permute.xlu1 %1191 }
 0x5f6   : > { %v1218_v40 = vrot.slane %v1217_v11, 4  ;;  %v1551_v42 = vrot.slane %v2893_v38, %v2609_v53 }
 0x5f7   : > { %v1224_v39 = vsel %vm221_vm1, %v1201_v3, 0.0 }
 0x5f8   : > { %v1137_v63 = vpop.permute.xlu0 %1136  ;;  %v1219_v44 = vadd.f32 %v1218_v40, %v1217_v11  ;;  %v3110_v11 = vld [vmem:[#allocation57_spill] sm:$0xff]  ;;  %v3112_v40 = vld [vmem:[#allocation58_spill] sm:$0xff] }
 0x5f9   : > { %v1202_v28 = vmul.f32 %v1137_v63, %v3102_v57  ;;  %v1501_v55 = vrot.slane %v1137_v63, %v2612_v47 }
 0x5fa   : > { %v1220_v3 = vrot.slane %v1219_v44, 2 }
 0x5fb   : > { %v1225_v48 = vsel %vm221_vm1, %v1202_v28, 0.0 }
 0x5fc   : > { %v2853_v32 = vpop.permute.xlu0 %1141  ;;  %v1226_v41 = vadd.f32 %v1225_v48, %v1224_v39 }
 0x5fd   : > { %v1203_v36 = vmul.f32 %v2853_v32, %v3105_v0  ;;  %v1488_v0 = vrot.slane %v2849_v45, %v2609_v53  ;;  %v2911_v45 = vadd.f32 %v1220_v3, %v1219_v44 }
 0x5fe   : > { %v1227_v8 = vrot.slane %v1226_v41, 4 }
 0x5ff   : > { %v1233_v46 = vsel %vm221_vm1, %v1203_v36, 0.0  ;;  %v1497_v36 = vrot.slane %v1132_v13, %v2609_v53  ;;  %v1506_v13 = vrot.slane %v2853_v32, %v2609_v53 }
 0x600   : > { %v2857_v5 = vpop.permute.xlu0 %1146  ;;  %v1228_v50 = vadd.f32 %v1227_v8, %v1226_v41  ;;  %v1492_v41 = vrot.slane %v2851_v1, %v2612_v47 }
 0x601   : > { %v1204_v60 = vmul.f32 %v2857_v5, %v3104_v43  ;;  %v1528_v43 = vrot.slane %v2871_v12, %v2612_v47  ;;  %v1510_v12 = vrot.slane %v2857_v5, %v2612_v47  ;;  %v1502_v1 = vsel %vm748_vm9, %v1501_v55, %v1497_v36  ;;  %v3113_v55 = vld [vmem:[#allocation59_spill] sm:$0xff] }
 0x602   : > { %v1493_v5 = vsel %vm748_vm9, %v1492_v41, %v1488_v0 }
 0x603   : > { %v1234_v37 = vsel %vm221_vm1, %v1204_v60, 0.0  ;;  %v1511_v32 = vsel %vm748_vm9, %v1510_v12, %v1506_v13 }
 0x604   : > { %v2864_v4 = vpop.permute.xlu0 %1151  ;;  %v1235_v56 = vadd.f32 %v1234_v37, %v1233_v46 }
 0x605   : > { %v1205_v14 = vmul.f32 %v2864_v4, %v3106_v9  ;;  %v1229_v9 = vrot.slane %v1228_v50, 2 }
 0x606   : > { %v1236_v6 = vrot.slane %v1235_v56, 4 }
 0x607   : > { %v1242_v61 = vsel %vm221_vm1, %v1205_v14, 0.0 }
 0x608   : > { %v2875_v7 = vpop.permute.xlu0 %1156 }
 0x609   : > { %v1206_v10 = vmul.f32 %v2875_v7, %v3107_v52  ;;  %v3111_v52 = vld [vmem:[#allocation61_spill] sm:$0xff] }
 0x60a   : > { %v1213_v63 = vmul.f32 %v2893_v38, %v3111_v52  ;;  %v1222_v38 = vrot.slane %v2911_v45, 1 }
 0x60b   : > { %v1243_v59 = vsel %vm221_vm1, %v1206_v10, 0.0  ;;  %v1237_v10 = vadd.f32 %v1236_v6, %v1235_v56  ;;  %v1230_v56 = vadd.f32 %v1229_v9, %v1228_v50  ;;  %v3114_v9 = vld [vmem:[#allocation60_spill] sm:$0xff] }
 0x60c   : > { %v2886_v49 = vpop.permute.xlu0 %1161  ;;  %v1244_v58 = vadd.f32 %v1243_v59, %v1242_v61  ;;  %v1519_v61 = vrot.slane %v2875_v7, %v2612_v47  ;;  %v1278_v44 = vsel %vm221_vm1, %v1213_v63, 0.0 }
 0x60d   : > { %v1207_v35 = vmul.f32 %v2886_v49, %v3109_v51  ;;  %v1524_v6 = vrot.slane %v2886_v49, %v2609_v53 }
 0x60e   : > { %v1245_v48 = vrot.slane %v1244_v58, 4 }
 0x60f   : > { %v1251_v34 = vsel %vm221_vm1, %v1207_v35, 0.0  ;;  %v1529_v12 = vsel %vm748_vm9, %v1528_v43, %v1524_v6 }
 0x610   : > { %v1253_v57 = vadd.f32 %v1252_v54, %v1251_v34  ;;  %v1172_v28 = vpop.permute.xlu0 %1171  ;;  %v1246_v2 = vadd.f32 %v1245_v48, %v1244_v58  ;;  %v1557_v58 = vsel %vm338_vm2, %v1502_v1, %v1493_v5  ;;  %v1238_v54 = vrot.slane %v1237_v10, 2 }
 0x611   : > { %v1209_v39 = vmul.f32 %v1172_v28, %v3110_v11  ;;  %v1515_v34 = vrot.slane %v2864_v4, %v2609_v53  ;;  %v1558_v11 = vsel %vm340_vm3, %v1511_v32, %v1557_v58  ;;  %v1533_v36 = vrot.slane %v1172_v28, %v2609_v53 }
 0x612   : > { %v1254_v60 = vrot.slane %v1253_v57, 4  ;;  %v1239_v4 = vadd.f32 %v1238_v54, %v1237_v10 }
 0x613   : > { %v1260_v8 = vsel %vm221_vm1, %v1209_v39, 0.0  ;;  %v1520_v39 = vsel %vm748_vm9, %v1519_v61, %v1515_v34 }
 0x614   : > { %v1177_v14 = vpop.permute.xlu0 %1176  ;;  %v1255_v59 = vadd.f32 %v1254_v60, %v1253_v57  ;;  %v1247_v57 = vrot.slane %v1246_v2, 2  ;;  %v1231_v60 = vrot.slane %v1230_v56, 1  ;;  %v1559_v10 = vsel %vm342_vm4, %v1520_v39, %v1558_v11 }
 0x615   : > { %v1210_v37 = vmul.f32 %v1177_v14, %v3112_v40  ;;  %v1537_v3 = vrot.slane %v1177_v14, %v2612_v47  ;;  %v1560_v43 = vsel %vm344_vm5, %v1529_v12, %v1559_v10 }
 0x616   : > { %v1256_v7 = vrot.slane %v1255_v59, 2  ;;  %v1248_v63 = vadd.f32 %v1247_v57, %v1246_v2  ;;  %v1240_v2 = vrot.slane %v1239_v4, 1 }
 0x617   : > { %v1261_v46 = vsel %vm221_vm1, %v1210_v37, 0.0  ;;  %v1538_v1 = vsel %vm748_vm9, %v1537_v3, %v1533_v36 }
 0x618   : > { %v1262_v51 = vadd.f32 %v1261_v46, %v1260_v8  ;;  %v1182_v35 = vpop.permute.xlu0 %1181  ;;  %v1257_v37 = vadd.f32 %v1256_v7, %v1255_v59  ;;  %v1232_v59 = vadd.f32 %v1231_v60, %v1230_v56  ;;  %v1561_v54 = vsel %vm346_vm6, %v1538_v1, %v1560_v43 }
 0x619   : > { %v1211_v48 = vmul.f32 %v1182_v35, %v3113_v55  ;;  %v1542_v40 = vrot.slane %v1182_v35, %v2609_v53  ;;  %v1249_v35 = vrot.slane %v1248_v63, 1  ;;  %v1241_v11 = vadd.f32 %v1240_v2, %v1239_v4 }
 0x61a   : > { %v1263_v50 = vrot.slane %v1262_v51, 4  ;;  %v1258_v34 = vrot.slane %v1257_v37, 1  ;;  %v1223_v56 = vadd.f32 %v1222_v38, %v2911_v45  ;;  %v1292_v36 = vpack.c.bf16 %v1232_v59, %v1232_v59 }
 0x61b   : > { %v1269_v13 = vsel %vm221_vm1, %v1211_v48, 0.0  ;;  %v1250_v60 = vadd.f32 %v1249_v35, %v1248_v63 }
 0x61c   : > { %v1264_v0 = vadd.f32 %v1263_v50, %v1262_v51  ;;  %v1187_v41 = vpop.permute.xlu0 %1186  ;;  %v3115_v51 = vld [vmem:[#allocation62_spill] sm:$0xff]  ;;  %v1308_v1 = vunpack.c.l.b16 %v1292_v36 }
 0x61d   : > { %v1212_v49 = vmul.f32 %v1187_v41, %v3114_v9  ;;  %v1546_v52 = vrot.slane %v1187_v41, %v2612_v47  ;;  %v1259_v41 = vadd.f32 %v1258_v34, %v1257_v37  ;;  %v1294_v12 = vpack.c.bf16 %v1250_v60, %v1250_v60  ;;  %v3116_v36 = vld [vmem:[#allocation46_spill] sm:$0xff] }
 0x61e   : > { %v1265_v14 = vrot.slane %v1264_v0, 2 }
 0x61f   : > { %v1270_v8 = vsel %vm221_vm1, %v1212_v49, 0.0  ;;  %v1547_v5 = vsel %vm748_vm9, %v1546_v52, %v1542_v40  ;;  %v1293_v52 = vpack.c.bf16 %v1241_v11, %v1241_v11  ;;  %v1295_v40 = vpack.c.bf16 %v1259_v41, %v1259_v41  ;;  %v1436_v11 = vpop.permute.xlu1 %1435 }
 0x620   : > { %v1266_v28 = vadd.f32 %v1265_v14, %v1264_v0  ;;  %v1271_v46 = vadd.f32 %v1270_v8, %v1269_v13  ;;  %v1197_v61 = vpop.permute.xlu0 %1196  ;;  %v1562_v57 = vsel %vm348_vm7, %v1547_v5, %v1561_v54  ;;  %v1310_v5 = vunpack.c.l.b16 %v1294_v12 }
 0x621   : > { %v1214_v58 = vmul.f32 %v1197_v61, %v3115_v51  ;;  %v1555_v53 = vrot.slane %v1197_v61, %v2612_v47  ;;  %v1309_v63 = vunpack.c.l.b16 %v1293_v52  ;;  %v1311_v37 = vunpack.c.l.b16 %v1295_v40 }
 0x622   : > { %v1272_v32 = vrot.slane %v1271_v46, 4  ;;  %v1267_v7 = vrot.slane %v1266_v28, 1 }
 0x623   : > { %v1279_v6 = vsel %vm221_vm1, %v1214_v58, 0.0  ;;  %v1556_v50 = vsel %vm748_vm9, %v1555_v53, %v1551_v42 }
 0x624   : > { %v1273_v3 = vadd.f32 %v1272_v32, %v1271_v46  ;;  %v1280_v55 = vadd.f32 %v1279_v6, %v1278_v44  ;;  %v1563_v48 = vsel %vm350_vm8, %v1556_v50, %v1562_v57  ;;  %v1268_v49 = vadd.f32 %v1267_v7, %v1266_v28 }
 0x625   : > { %v1565_v47 = vsel %vm821_vm10, %v1563_v48, 0.0  ;;  %v1291_v44 = vpack.c.bf16 %v1223_v56, %v1223_v56 }
 0x626   : > { %v1274_v39 = vrot.slane %v1273_v3, 2  ;;  %v1281_v0 = vrot.slane %v1280_v55, 4  ;;  %1567 = vst [vmem:[%s1566_s18] sm:$0xff] %v1565_v47  ;;  %v1296_v38 = vpack.c.bf16 %v1268_v49, %v1268_v49 }
 0x627   : > { %v1307_v8 = vunpack.c.l.b16 %v1291_v44 }
 0x628   : > { %v1275_v9 = vadd.f32 %v1274_v39, %v1273_v3  ;;  %v1282_v42 = vadd.f32 %v1281_v0, %v1280_v55  ;;  %v1312_v2 = vunpack.c.l.b16 %v1296_v38  ;;  %v1438_v55 = vpop.permute.xlu0 %1437 }
 0x629   : > { %v1315_v28 = vsel %vm338_vm2, %v1308_v1, %v1307_v8  ;;  %v1440_v60 = vsel %vm1439_vm12, %v1436_v11, %v1438_v55 }
 0x62a   : > { %v1276_v14 = vrot.slane %v1275_v9, 1  ;;  %v1283_v4 = vrot.slane %v1282_v42, 2  ;;  %v1316_v51 = vsel %vm340_vm3, %v1309_v63, %v1315_v28 }
 0x62b   : > { %v1317_v53 = vsel %vm342_vm4, %v1310_v5, %v1316_v51 }
 0x62c   : > { %v1284_v13 = vadd.f32 %v1283_v4, %v1282_v42  ;;  %v1277_v45 = vadd.f32 %v1276_v14, %v1275_v9  ;;  %v1318_v59 = vsel %vm344_vm5, %v1311_v37, %v1317_v53 }
 0x62d   : > { %v1319_v54 = vsel %vm346_vm6, %v1312_v2, %v1318_v59 }
 0x62e   : > { %v1285_v10 = vrot.slane %v1284_v13, 1  ;;  %v1297_v46 = vpack.c.bf16 %v1277_v45, %v1277_v45 }
 0x630   : > { %v1286_v61 = vadd.f32 %v1285_v10, %v1284_v13  ;;  %v1313_v43 = vunpack.c.l.b16 %v1297_v46 }
 0x632   : > { %v1298_v58 = vpack.c.bf16 %v1286_v61, %v1286_v61  ;;  %v1320_v32 = vsel %vm348_vm7, %v1313_v43, %v1319_v54 }
 0x634   : > { %v1314_v35 = vunpack.c.l.b16 %v1298_v58 }
 0x636   : > { %v1321_v34 = vsel %vm350_vm8, %v1314_v35, %v1320_v32 }
 0x637   : > { %v1322_v57 = vpack.c.b16 %v1321_v34, %v1321_v34 }
 0x639   : > { %1673 = vmatmul.mubr.msk.bf16.vlgmr.msra.gmra.mrb[0].mxu1 %vm221_vm1, %v1322_v57 }
 0x67b   : > { %v1427_v6 = vpop.f32.mrb[4].mxu0 }
 0x67c   : > { %v1682_v50 = vpop.f32.mrb[5].mxu0 }
 0x67d   : > { %v1430_v7 = vpop.f32.mrb[6].mxu0 }
 0x67e   : > { %v1683_v3 = vpop.f32.mrb[7].mxu0 }
 0x70c   : > { %v1372_v48 = vpop.f32.mrb[0].mxu1 }
 0x70d   : > { %v1428_v47 = vadd.f32 %v1427_v6, %v1372_v48  ;;  %v1674_v56 = vpop.f32.mrb[1].mxu1 }
 0x70e   : > { %v1375_v39 = vpop.f32.mrb[2].mxu1 }
 0x70f   : > { %v1442_v0 = vadd.f32 %v1440_v60, %v1428_v47  ;;  %v1675_v41 = vpop.f32.mrb[3].mxu1 }
 0x711   : > { %v1449_v9 = vadd.f32 %v3116_v36, %v1442_v0 }
 0x713   : > { %1772 = vtanh.f32 %v1449_v9  ;;  %v1647_v49 = vmul.f32 -1.442695, %v1449_v9 }
 0x715   : > { %1774 = vpow2.f32 %v1647_v49 }
 0x71d   : > { %v1773_v42 = vpop.eup %1772 }
 0x71e   : > { %1459 = vrot.lane.b32.xlu1 %v1773_v42, %s2128_s23 }
 0x71f   : > { %v1775_v52 = vpop.eup %1774 }
 0x720   : > { %v1453_v44 = vadd.f32 1.0, %v1775_v52 }
 0x722   : > { %1776 = vrcp.f32 %v1453_v44 }
 0x72c   : > { %v1777_v12 = vpop.eup %1776 }
 0x72d   : > { %v1457_v40 = vmul.f32 %v2096_v62, %v1777_v12 }
 0x790   : > { %v1460_v14 = vpop.permute.xlu1 %1459 }
 0x791   : > { %v1462_v4 = vmul.f32 %v1777_v12, %v1460_v14 }
 0x793   : > { %1464 = vrot.lane.b32.xlu0 %v1462_v4, %s2129_s26 }
 0x805   : > { %v1465_v1 = vpop.permute.xlu0 %1464 }
 0x806   : > { %v1467_v62 = vadd.f32 %v1465_v1, %v1457_v40  }
 0x808   : > { %1778 = vtanh.f32 %v1467_v62 }
 0x812   : > { %v1779_v13 = vpop.eup %1778 }
 0x813   : > { %1470 = vrot.lane.b32.xlu1 %v1779_v13, %s2128_s23 }
 0x885   : > { %v1471_v45 = vpop.permute.xlu1 %1470 }
 0x886   : > { %v1473_v38 = vmul.f32 %v1777_v12, %v1471_v45 }
 0x888   : > { %v1650_v63 = vpack.c.bf16 %v1473_v38, %v1473_v38  ;;  %1569 = vrot.lane.b32.xlu1 %v1473_v38, %s2129_s26 }
 0x88a   : > { %1478 = vrot.lane.b32.xlu0 %v1650_v63, %s2129_s26 }
 0x8f7   :  { %428 = sbr.rel (!%p426_p4) target bundleno = 469 (0x1d5), region = 130 }
 0x8fa   : > { %v1570_v42 = vpop.permute.xlu1 %1569  }
 0x8fc   : > { %v1479_v8 = vpop.permute.xlu0 %1478 }
 0x8fd   : > { %1484 = vst.msk [vmem:[%s1482_s19] sm:$0xf] %vm1483_vm13, %v1479_v8 }
 0x8fe   :  { %2033 = shalt.err (!%p2030_p9)
}
 0x8ff   :  { %s2034_s30 = scalar_lea.hbm %s3022_s12, 512 }
 0x900   :  { %p2035_p10 = scmp.ne.s32.totalorder %s3022_s12, %s2034_s30  ;;  %p2038_p11 = scmp.lt.u32.totalorder %s2034_s30, %s3022_s12 }
 0x902   :  { %p2040_p12 = pnand %p2038_p11, %p2035_p10 }
 0x904   :  { %2043 = shalt.err (!%p2040_p12)
}
 0x905   :  { %1583 = dma.vmem_to_hbm [thread:$0]  %s1578_s6, 512, %s3022_s12, [#allocation5], %s2110_s1, %s2110_s1, %s2111_s28  }
 0x906   :  { %s2044_s29 = scalar_lea.vmem %s2973_s27, 1024  ;;  %p2049_p0 = scmp.lt.s32.totalorder %s2973_s27, %s2973_s27 }
 0x907   :  { %p2045_p13 = scmp.ne.s32.totalorder %s2973_s27, %s2044_s29  ;;  %p2050_p1 = scmp.lt.s32.totalorder %s2044_s29, %s2044_s29 }
 0x909   :  { %p2051_p2 = por %p2050_p1, %p2049_p0 }
 0x90b   :  { %p2052_p3 = pnand %p2051_p2, %p2045_p13 }
 0x90d   :  { %2055 = shalt.err (!%p2052_p3)
}
 0x90e   :  { %s2056_s17 = scalar_lea.hbm %s3023_s13, 1024 }
 0x90f   :  { %p2057_p4 = scmp.ne.s32.totalorder %s3023_s13, %s2056_s17  ;;  %p2060_p5 = scmp.lt.u32.totalorder %s2056_s17, %s3023_s13 }
 0x911   :  { %p2062_p6 = pnand %p2060_p5, %p2057_p4 }
 0x913   :  { %2065 = shalt.err (!%p2062_p6)
}
 0x914   :  { %1595 = dma.vmem_to_hbm [thread:$0]  %s2973_s27, 1024, %s3023_s13, [#allocation23], %s2108_s21, %s2108_s21, %s2109_s22  }
 0x915   :  { %2090 = dma.done.wait [#allocation5], 512  }
 0x916   :  { %2091 = vsyncadd [#allocation5], 4294966784 }
 0x917   :  { %2092 = dma.done.wait [#allocation23], 1024  }
 0x918   :  { %2093 = vsyncadd [#allocation23], 4294966272 }
 0x919   :  { %1602 = vsyncpa [#allocation4], 1 }
 0x91a   :  { %1603 = vsyncpa [#allocation7], 1 }
 0x91b   :  { %1604 = vsyncpa [#allocation10], 1 }
 0x91c   :  { %1605 = vsyncpa [#allocation13], 1 }
 0x91d   :  { %1606 = vsyncpa [#allocation16], 1 }
 0x91e   :  { %1607 = vsyncpa [#allocation19], 1 }
 0x91f   :  { %1608 = vsyncpa [#allocation5], 1 }
 0x920   :  { %1609 = vsyncpa [#allocation23], 1 }

</bundles_post_ra>
